<compile_context>
chip_gen: v5e
topology: v5e:2x2
jax: 0.10.0
libtpu: 0.0.40
codegen_flags: <defaults>
</compile_context>

<pallas_src>
import functools

import jax
import jax.numpy as jnp
from jax import lax
from jax.experimental import pallas as pl
from jax.experimental.pallas import tpu as pltpu


# ------------------------------ Pallas kernel -------------------------------

def _bottleneck_kernel(x_ref, w1_ref, b1_ref, w2_ref, b2_ref, w3_ref, b3_ref,
                       ws_ref, bs_ref, ml_ref, mr_ref, o_ref, o1pad_ref,
                       *, H, W, c1, base):
    """Fused Bottleneck forward for one image (rows = H*W, channels = lanes).

    x_ref    : (H*W, Cin)   bf16   flattened NHWC input
    w1_ref   : (Cin, c1)    bf16   conv1 weight (BN1 scale folded in)
    w2_ref   : (9, c1, c1)  bf16   conv2 weight per 3x3 tap (BN2 folded in)
    w3_ref   : (c1, c3)     bf16   conv3 weight (BN3 folded in)
    ws_ref   : (Cin, c3)    bf16   shortcut weight (BN_sc folded in)
    b*_ref   : (1, c)       f32    folded BN biases
    ml/mr    : (H*W, 1)     f32    column-edge masks (left / right tap)
    o_ref    : (H*W, c3)    f32    output
    o1pad_ref: (H*W+2*base, c1) f32 VMEM scratch, row-zero-padded o1
    """
    HW = H * W
    x = x_ref[...]                                                  # bf16

    # ---- conv1 (1x1) + bn1 + relu -> zero-padded VMEM scratch ----
    o1 = jnp.dot(x, w1_ref[...], preferred_element_type=jnp.float32)
    o1 = jnp.maximum(o1 + b1_ref[...], 0.0)                         # (HW, c1) f32

    o1pad_ref[...] = jnp.zeros_like(o1pad_ref)
    o1pad_ref[base:base + HW, :] = o1

    # ---- conv2 (3x3, pad=1, stride=1) + bn2 + relu via 9 shifted dots ----
    # For output position p = h*W + w, tap (dy, dx) reads flat row p + s with
    # s = (dy-1)*W + (dx-1).  Vertical out-of-range taps land in the zeroed
    # pad rows of the scratch; horizontal wrap-around is killed by the masks.
    acc = jnp.zeros((HW, c1), jnp.float32)
    for tap in range(9):
        dy, dx = tap // 3, tap % 3
        s = (dy - 1) * W + (dx - 1)
        win = o1pad_ref[base + s:base + s + HW, :]                  # (HW, c1) f32
        if dx == 0:
            win = win * ml_ref[...]
        elif dx == 2:
            win = win * mr_ref[...]
        acc = acc + jnp.dot(win.astype(jnp.bfloat16), w2_ref[tap],
                            preferred_element_type=jnp.float32)
    o2 = jnp.maximum(acc + b2_ref[...], 0.0).astype(jnp.bfloat16)   # (HW, c1)

    # ---- conv3 (1x1) + bn3  +  shortcut (1x1 conv + bn)  + add + relu ----
    main = jnp.dot(o2, w3_ref[...], preferred_element_type=jnp.float32) + b3_ref[...]
    sc = jnp.dot(x, ws_ref[...], preferred_element_type=jnp.float32) + bs_ref[...]
    o_ref[...] = jnp.maximum(main + sc, 0.0).astype(o_ref.dtype)


# ------------------------------ JAX glue ------------------------------------

def grouped_to_dense(w, groups):
    """PyTorch grouped conv weight (Cout, Cin//g, KH, KW) -> dense
    block-diagonal matmul weight of shape (KH*KW, Cin, Cout)."""
    cout, cin_g, kh, kw = w.shape
    cin = cin_g * groups
    cout_g = cout // groups
    dense = jnp.zeros((kh, kw, cin, cout), w.dtype)
    for g in range(groups):
        blk = jnp.transpose(w[g * cout_g:(g + 1) * cout_g], (2, 3, 1, 0))
        dense = dense.at[:, :, g * cin_g:(g + 1) * cin_g,
                         g * cout_g:(g + 1) * cout_g].set(blk)
    return dense.reshape(kh * kw, cin, cout)


def fold_bn(gamma, beta, mean, var, eps=1e-5):
    scale = gamma / jnp.sqrt(var + eps)
    bias = beta - mean * scale
    return scale.reshape(1, -1), bias.reshape(1, -1)


# ----------------------- Bottleneck parameters & forward --------------------

EXPANSION = 4


def init_params(key, in_planes, planes, alpha, num_estimators, gamma, groups):
    e_in = in_planes * alpha
    c1 = planes * alpha
    c3 = EXPANSION * planes * alpha
    g1 = num_estimators * 1 * groups          # conv1 built with gamma=1
    g2 = num_estimators * gamma * groups
    assert e_in % g1 == 0 and c1 % g1 == 0 and c1 % g2 == 0 and c3 % g2 == 0

    ks = jax.random.split(key, 8)

    def bn_init(k, c):
        k1, k2, k3, k4 = jax.random.split(k, 4)
        return (1.0 + 0.1 * jax.random.normal(k1, (c,), jnp.float32),  # gamma
                0.1 * jax.random.normal(k2, (c,), jnp.float32),        # beta
                0.1 * jax.random.normal(k3, (c,), jnp.float32),        # run mean
                jax.random.uniform(k4, (c,), jnp.float32, 0.5, 1.5))   # run var

    p = {
        "w1": 0.2 * jax.random.normal(ks[0], (c1, e_in // g1, 1, 1), jnp.float32),
        "w2": 0.2 * jax.random.normal(ks[1], (c1, c1 // g2, 3, 3), jnp.float32),
        "w3": 0.2 * jax.random.normal(ks[2], (c3, c1 // g2, 1, 1), jnp.float32),
        "ws": 0.2 * jax.random.normal(ks[3], (c3, e_in // g2, 1, 1), jnp.float32),
        "bn1": bn_init(ks[4], c1),
        "bn2": bn_init(ks[5], c1),
        "bn3": bn_init(ks[6], c3),
        "bns": bn_init(ks[7], c3),
        "g1": g1, "g2": g2, "c1": c1, "c3": c3, "e_in": e_in,
    }
    return p


def bottleneck_forward_pallas(x_nchw, p, stride=1):
    # TODO(synk): stride > 1 not implemented in the fused Pallas path.
    assert stride == 1
    n, cin, h, w = x_nchw.shape
    hw = h * w
    c1, c3 = p["c1"], p["c3"]

    # NCHW -> flattened channels-last (N, H*W, Cin), bf16 MXU operands.
    x2d = jnp.transpose(x_nchw, (0, 2, 3, 1)).reshape(n, hw, cin).astype(jnp.bfloat16)

    s1, b1 = fold_bn(*p["bn1"])
    s2, b2 = fold_bn(*p["bn2"])
    s3, b3 = fold_bn(*p["bn3"])
    ss, bs = fold_bn(*p["bns"])

    # Fold BN scale into the weight columns; keep only bias for the epilogue.
    w1d = (grouped_to_dense(p["w1"], p["g1"])[0] * s1).astype(jnp.bfloat16)  # (Cin, c1)
    w2d = (grouped_to_dense(p["w2"], p["g2"]) * s2).astype(jnp.bfloat16)     # (9, c1, c1)
    w3d = (grouped_to_dense(p["w3"], p["g2"])[0] * s3).astype(jnp.bfloat16)  # (c1, c3)
    wsd = (grouped_to_dense(p["ws"], p["g2"])[0] * ss).astype(jnp.bfloat16)  # (Cin, c3)

    # Column-edge masks for the shifted-dot 3x3 conv (kill horizontal wrap).
    col = jnp.arange(hw, dtype=jnp.int32) % w
    m_left = (col != 0).astype(jnp.float32).reshape(hw, 1)      # tap dx=0 invalid at w==0
    m_right = (col != w - 1).astype(jnp.float32).reshape(hw, 1)  # tap dx=2 invalid at w==W-1

    base = ((w + 1 + 7) // 8) * 8   # 8-aligned start of the valid o1 rows in scratch

    kernel = functools.partial(_bottleneck_kernel, H=h, W=w, c1=c1, base=base)

    out = pl.pallas_call(
        kernel,
        out_shape=jax.ShapeDtypeStruct((n, hw, c3), jnp.float32),
        grid=(n,),
        in_specs=[
            pl.BlockSpec((None, hw, cin), lambda i: (i, 0, 0)),   # x (per image)
            pl.BlockSpec((cin, c1), lambda i: (0, 0)),            # w1
            pl.BlockSpec((1, c1), lambda i: (0, 0)),              # b1
            pl.BlockSpec((9, c1, c1), lambda i: (0, 0, 0)),       # w2 (per tap)
            pl.BlockSpec((1, c1), lambda i: (0, 0)),              # b2
            pl.BlockSpec((c1, c3), lambda i: (0, 0)),             # w3
            pl.BlockSpec((1, c3), lambda i: (0, 0)),              # b3
            pl.BlockSpec((cin, c3), lambda i: (0, 0)),            # w_shortcut
            pl.BlockSpec((1, c3), lambda i: (0, 0)),              # b_shortcut
            pl.BlockSpec((hw, 1), lambda i: (0, 0)),              # mask left
            pl.BlockSpec((hw, 1), lambda i: (0, 0)),              # mask right
        ],
        out_specs=pl.BlockSpec((None, hw, c3), lambda i: (i, 0, 0)),
        scratch_shapes=[pltpu.VMEM((hw + 2 * base, c1), jnp.float32)],
        compiler_params=pltpu.CompilerParams(dimension_semantics=("parallel",)),
    )(x2d, w1d, b1, w2d, b2, w3d, b3, wsd, bs, m_left, m_right)

    return jnp.transpose(out.reshape(n, h, w, c3), (0, 3, 1, 2))  # back to NCHW


# -------------------------- pure-JAX reference -------------------------------

def bottleneck_forward_ref(x_nchw, p, stride=1):
    def conv(x, w, st, pad, groups):
        return lax.conv_general_dilated(
            x, w, (st, st), [(pad, pad), (pad, pad)],
            dimension_numbers=("NCHW", "OIHW", "NCHW"),
            feature_group_count=groups, precision=lax.Precision.HIGHEST)

    def bn(x, params, eps=1e-5):
        g, b, m, v = params
        g, b, m, v = (t[None, :, None, None] for t in (g, b, m, v))
        return (x - m) / jnp.sqrt(v + eps) * g + b

    out = jax.nn.relu(bn(conv(x_nchw, p["w1"], 1, 0, p["g1"]), p["bn1"]))
    out = jax.nn.relu(bn(conv(out, p["w2"], stride, 1, p["g2"]), p["bn2"]))
    out = bn(conv(out, p["w3"], 1, 0, p["g2"]), p["bn3"])
    sc = bn(conv(x_nchw, p["ws"], stride, 0, p["g2"]), p["bns"])
    return jax.nn.relu(out + sc)


# --------------------------------- main --------------------------------------

if __name__ == "__main__":
    # Bottleneck(in_planes=4, planes=4, stride=1, alpha=2, num_estimators=4,
    #            gamma=1, groups=1)  -> input has in_planes*alpha = 8 channels.
    in_planes, planes = 4, 4
    alpha, num_estimators, gamma, groups, stride = 2, 4, 1, 1, 1
    N, H, W = 2, 16, 16

    key = jax.random.PRNGKey(0)
    kx, kp = jax.random.split(key)
    params = init_params(kp, in_planes, planes, alpha, num_estimators, gamma, groups)
    x = jax.random.normal(kx, (N, params["e_in"], H, W), jnp.float32)  # NCHW

    out = jax.block_until_ready(bottleneck_forward_pallas(x, params, stride=stride))
    ref = jax.block_until_ready(bottleneck_forward_ref(x, params, stride=stride))

    assert out.shape == ref.shape == (N, params["c3"], H, W)
    # bf16 MXU operands (f32 accumulation) vs. an f32 HIGHEST-precision
    # reference -> loosened tolerance, checked relative to the output scale.
    err = float(jnp.max(jnp.abs(out - ref)))
    mag = float(jnp.max(jnp.abs(ref)))
    assert err <= 5e-2 * mag + 5e-2, (err, mag)

    print("KERNEL_OK")
</pallas_src>

<mosaic_0001>
module attributes {stable_mosaic.version = 11 : i64} {
  func.func @_bottleneck_kernel(%arg0: i32, %arg1: memref<1x256x8xbf16, #tpu.memory_space<vmem>>, %arg2: memref<8x8xbf16, #tpu.memory_space<vmem>>, %arg3: memref<1x8xf32, #tpu.memory_space<vmem>>, %arg4: memref<9x8x8xbf16, #tpu.memory_space<vmem>>, %arg5: memref<1x8xf32, #tpu.memory_space<vmem>>, %arg6: memref<8x32xbf16, #tpu.memory_space<vmem>>, %arg7: memref<1x32xf32, #tpu.memory_space<vmem>>, %arg8: memref<8x32xbf16, #tpu.memory_space<vmem>>, %arg9: memref<1x32xf32, #tpu.memory_space<vmem>>, %arg10: memref<256x1xf32, #tpu.memory_space<vmem>>, %arg11: memref<256x1xf32, #tpu.memory_space<vmem>>, %arg12: memref<1x256x32xf32, #tpu.memory_space<vmem>>, %arg13: memref<304x8xf32, #tpu.memory_space<vmem>>) attributes {dimension_semantics = [#tpu.dimension_semantics<parallel>], iteration_bounds = array<i64: 2>, scalar_prefetch = 0 : i64, scratch_operands = 1 : i64, tpu.core_type = #tpu.core_type<tc>, window_params = [{transform_indices = @transform_0, window_bounds = array<i64: 1, 256, 8>}, {pipeline_mode = #tpu.pipeline_mode<synchronous>, transform_indices = @transform_1, window_bounds = array<i64: 8, 8>}, {pipeline_mode = #tpu.pipeline_mode<synchronous>, transform_indices = @transform_2, window_bounds = array<i64: 1, 8>}, {pipeline_mode = #tpu.pipeline_mode<synchronous>, transform_indices = @transform_3, window_bounds = array<i64: 9, 8, 8>}, {pipeline_mode = #tpu.pipeline_mode<synchronous>, transform_indices = @transform_4, window_bounds = array<i64: 1, 8>}, {pipeline_mode = #tpu.pipeline_mode<synchronous>, transform_indices = @transform_5, window_bounds = array<i64: 8, 32>}, {pipeline_mode = #tpu.pipeline_mode<synchronous>, transform_indices = @transform_6, window_bounds = array<i64: 1, 32>}, {pipeline_mode = #tpu.pipeline_mode<synchronous>, transform_indices = @transform_7, window_bounds = array<i64: 8, 32>}, {pipeline_mode = #tpu.pipeline_mode<synchronous>, transform_indices = @transform_8, window_bounds = array<i64: 1, 32>}, {pipeline_mode = #tpu.pipeline_mode<synchronous>, transform_indices = @transform_9, window_bounds = array<i64: 256, 1>}, {pipeline_mode = #tpu.pipeline_mode<synchronous>, transform_indices = @transform_10, window_bounds = array<i64: 256, 1>}, {transform_indices = @transform_11, window_bounds = array<i64: 1, 256, 32>}]} {
    %c0 = arith.constant 0 : index
    %c0_0 = arith.constant 0 : index
    %c0_1 = arith.constant 0 : index
    %0 = vector.load %arg1[%c0, %c0_0, %c0_1] : memref<1x256x8xbf16, #tpu.memory_space<vmem>>, vector<1x256x8xbf16>
    %1 = vector.shape_cast %0 : vector<1x256x8xbf16> to vector<256x8xbf16>
    %c0_2 = arith.constant 0 : index
    %c0_3 = arith.constant 0 : index
    %2 = vector.load %arg2[%c0_2, %c0_3] : memref<8x8xbf16, #tpu.memory_space<vmem>>, vector<8x8xbf16>
    %cst = arith.constant dense<0.000000e+00> : vector<256x8xf32>
    %3 = tpu.matmul %1, %2, %cst {dimension_numbers = #tpu.dot_dimension_numbers<[1], [0], [0], [1], [0, 0, 1, 1], [], []>} : vector<256x8xbf16>, vector<8x8xbf16>, vector<256x8xf32> -> vector<256x8xf32>
    %c0_4 = arith.constant 0 : index
    %c0_5 = arith.constant 0 : index
    %4 = vector.load %arg3[%c0_4, %c0_5] : memref<1x8xf32, #tpu.memory_space<vmem>>, vector<1x8xf32>
    %5 = vector.broadcast %4 : vector<1x8xf32> to vector<256x8xf32>
    %6 = arith.addf %3, %5 : vector<256x8xf32>
    %cst_6 = arith.constant 0.000000e+00 : f32
    %7 = vector.broadcast %cst_6 : f32 to vector<256x8xf32>
    %8 = arith.maximumf %6, %7 : vector<256x8xf32>
    %cst_7 = arith.constant 0.000000e+00 : f32
    %9 = vector.broadcast %cst_7 : f32 to vector<304x8xf32>
    %c0_8 = arith.constant 0 : index
    %c0_9 = arith.constant 0 : index
    %10 = vector.load %arg13[%c0_8, %c0_9] : memref<304x8xf32, #tpu.memory_space<vmem>>, vector<304x8xf32>
    tpu.vector_store %arg13[%c0_8, %c0_9], %9 {strides = array<i32>} : memref<304x8xf32, #tpu.memory_space<vmem>>, vector<304x8xf32>,
    %c24 = arith.constant 24 : index
    %c0_10 = arith.constant 0 : index
    %11 = vector.load %arg13[%c24, %c0_10] : memref<304x8xf32, #tpu.memory_space<vmem>>, vector<256x8xf32>
    tpu.vector_store %arg13[%c24, %c0_10], %8 {strides = array<i32>} : memref<304x8xf32, #tpu.memory_space<vmem>>, vector<256x8xf32>,
    %cst_11 = arith.constant 0.000000e+00 : f32
    %12 = vector.broadcast %cst_11 : f32 to vector<256x8xf32>
    %c7 = arith.constant 7 : index
    %c0_12 = arith.constant 0 : index
    %13 = vector.load %arg13[%c7, %c0_12] : memref<304x8xf32, #tpu.memory_space<vmem>>, vector<256x8xf32>
    %c0_13 = arith.constant 0 : index
    %c0_14 = arith.constant 0 : index
    %14 = vector.load %arg10[%c0_13, %c0_14] : memref<256x1xf32, #tpu.memory_space<vmem>>, vector<256x1xf32>
    %15 = vector.broadcast %14 : vector<256x1xf32> to vector<256x8xf32>
    %16 = arith.mulf %13, %15 : vector<256x8xf32>
    %17 = arith.truncf %16 : vector<256x8xf32> to vector<256x8xbf16>
    %c0_15 = arith.constant 0 : index
    %c0_16 = arith.constant 0 : index
    %c0_17 = arith.constant 0 : index
    %18 = vector.load %arg4[%c0_15, %c0_16, %c0_17] : memref<9x8x8xbf16, #tpu.memory_space<vmem>>, vector<1x8x8xbf16>
    %19 = vector.shape_cast %18 : vector<1x8x8xbf16> to vector<8x8xbf16>
    %cst_18 = arith.constant dense<0.000000e+00> : vector<256x8xf32>
    %20 = tpu.matmul %17, %19, %cst_18 {dimension_numbers = #tpu.dot_dimension_numbers<[1], [0], [0], [1], [0, 0, 1, 1], [], []>} : vector<256x8xbf16>, vector<8x8xbf16>, vector<256x8xf32> -> vector<256x8xf32>
    %21 = arith.addf %12, %20 : vector<256x8xf32>
    %c8 = arith.constant 8 : index
    %c0_19 = arith.constant 0 : index
    %22 = vector.load %arg13[%c8, %c0_19] : memref<304x8xf32, #tpu.memory_space<vmem>>, vector<256x8xf32>
    %23 = arith.truncf %22 : vector<256x8xf32> to vector<256x8xbf16>
    %c1 = arith.constant 1 : index
    %c0_20 = arith.constant 0 : index
    %c0_21 = arith.constant 0 : index
    %24 = vector.load %arg4[%c1, %c0_20, %c0_21] : memref<9x8x8xbf16, #tpu.memory_space<vmem>>, vector<1x8x8xbf16>
    %25 = vector.shape_cast %24 : vector<1x8x8xbf16> to vector<8x8xbf16>
    %cst_22 = arith.constant dense<0.000000e+00> : vector<256x8xf32>
    %26 = tpu.matmul %23, %25, %cst_22 {dimension_numbers = #tpu.dot_dimension_numbers<[1], [0], [0], [1], [0, 0, 1, 1], [], []>} : vector<256x8xbf16>, vector<8x8xbf16>, vector<256x8xf32> -> vector<256x8xf32>
    %27 = arith.addf %21, %26 : vector<256x8xf32>
    %c9 = arith.constant 9 : index
    %c0_23 = arith.constant 0 : index
    %28 = vector.load %arg13[%c9, %c0_23] : memref<304x8xf32, #tpu.memory_space<vmem>>, vector<256x8xf32>
    %c0_24 = arith.constant 0 : index
    %c0_25 = arith.constant 0 : index
    %29 = vector.load %arg11[%c0_24, %c0_25] : memref<256x1xf32, #tpu.memory_space<vmem>>, vector<256x1xf32>
    %30 = vector.broadcast %29 : vector<256x1xf32> to vector<256x8xf32>
    %31 = arith.mulf %28, %30 : vector<256x8xf32>
    %32 = arith.truncf %31 : vector<256x8xf32> to vector<256x8xbf16>
    %c2 = arith.constant 2 : index
    %c0_26 = arith.constant 0 : index
    %c0_27 = arith.constant 0 : index
    %33 = vector.load %arg4[%c2, %c0_26, %c0_27] : memref<9x8x8xbf16, #tpu.memory_space<vmem>>, vector<1x8x8xbf16>
    %34 = vector.shape_cast %33 : vector<1x8x8xbf16> to vector<8x8xbf16>
    %cst_28 = arith.constant dense<0.000000e+00> : vector<256x8xf32>
    %35 = tpu.matmul %32, %34, %cst_28 {dimension_numbers = #tpu.dot_dimension_numbers<[1], [0], [0], [1], [0, 0, 1, 1], [], []>} : vector<256x8xbf16>, vector<8x8xbf16>, vector<256x8xf32> -> vector<256x8xf32>
    %36 = arith.addf %27, %35 : vector<256x8xf32>
    %c23 = arith.constant 23 : index
    %c0_29 = arith.constant 0 : index
    %37 = vector.load %arg13[%c23, %c0_29] : memref<304x8xf32, #tpu.memory_space<vmem>>, vector<256x8xf32>
    %c0_30 = arith.constant 0 : index
    %c0_31 = arith.constant 0 : index
    %38 = vector.load %arg10[%c0_30, %c0_31] : memref<256x1xf32, #tpu.memory_space<vmem>>, vector<256x1xf32>
    %39 = vector.broadcast %38 : vector<256x1xf32> to vector<256x8xf32>
    %40 = arith.mulf %37, %39 : vector<256x8xf32>
    %41 = arith.truncf %40 : vector<256x8xf32> to vector<256x8xbf16>
    %c3 = arith.constant 3 : index
    %c0_32 = arith.constant 0 : index
    %c0_33 = arith.constant 0 : index
    %42 = vector.load %arg4[%c3, %c0_32, %c0_33] : memref<9x8x8xbf16, #tpu.memory_space<vmem>>, vector<1x8x8xbf16>
    %43 = vector.shape_cast %42 : vector<1x8x8xbf16> to vector<8x8xbf16>
    %cst_34 = arith.constant dense<0.000000e+00> : vector<256x8xf32>
    %44 = tpu.matmul %41, %43, %cst_34 {dimension_numbers = #tpu.dot_dimension_numbers<[1], [0], [0], [1], [0, 0, 1, 1], [], []>} : vector<256x8xbf16>, vector<8x8xbf16>, vector<256x8xf32> -> vector<256x8xf32>
    %45 = arith.addf %36, %44 : vector<256x8xf32>
    %c24_35 = arith.constant 24 : index
    %c0_36 = arith.constant 0 : index
    %46 = vector.load %arg13[%c24_35, %c0_36] : memref<304x8xf32, #tpu.memory_space<vmem>>, vector<256x8xf32>
    %47 = arith.truncf %46 : vector<256x8xf32> to vector<256x8xbf16>
    %c4 = arith.constant 4 : index
    %c0_37 = arith.constant 0 : index
    %c0_38 = arith.constant 0 : index
    %48 = vector.load %arg4[%c4, %c0_37, %c0_38] : memref<9x8x8xbf16, #tpu.memory_space<vmem>>, vector<1x8x8xbf16>
    %49 = vector.shape_cast %48 : vector<1x8x8xbf16> to vector<8x8xbf16>
    %cst_39 = arith.constant dense<0.000000e+00> : vector<256x8xf32>
    %50 = tpu.matmul %47, %49, %cst_39 {dimension_numbers = #tpu.dot_dimension_numbers<[1], [0], [0], [1], [0, 0, 1, 1], [], []>} : vector<256x8xbf16>, vector<8x8xbf16>, vector<256x8xf32> -> vector<256x8xf32>
    %51 = arith.addf %45, %50 : vector<256x8xf32>
    %c25 = arith.constant 25 : index
    %c0_40 = arith.constant 0 : index
    %52 = vector.load %arg13[%c25, %c0_40] : memref<304x8xf32, #tpu.memory_space<vmem>>, vector<256x8xf32>
    %c0_41 = arith.constant 0 : index
    %c0_42 = arith.constant 0 : index
    %53 = vector.load %arg11[%c0_41, %c0_42] : memref<256x1xf32, #tpu.memory_space<vmem>>, vector<256x1xf32>
    %54 = vector.broadcast %53 : vector<256x1xf32> to vector<256x8xf32>
    %55 = arith.mulf %52, %54 : vector<256x8xf32>
    %56 = arith.truncf %55 : vector<256x8xf32> to vector<256x8xbf16>
    %c5 = arith.constant 5 : index
    %c0_43 = arith.constant 0 : index
    %c0_44 = arith.constant 0 : index
    %57 = vector.load %arg4[%c5, %c0_43, %c0_44] : memref<9x8x8xbf16, #tpu.memory_space<vmem>>, vector<1x8x8xbf16>
    %58 = vector.shape_cast %57 : vector<1x8x8xbf16> to vector<8x8xbf16>
    %cst_45 = arith.constant dense<0.000000e+00> : vector<256x8xf32>
    %59 = tpu.matmul %56, %58, %cst_45 {dimension_numbers = #tpu.dot_dimension_numbers<[1], [0], [0], [1], [0, 0, 1, 1], [], []>} : vector<256x8xbf16>, vector<8x8xbf16>, vector<256x8xf32> -> vector<256x8xf32>
    %60 = arith.addf %51, %59 : vector<256x8xf32>
    %c39 = arith.constant 39 : index
    %c0_46 = arith.constant 0 : index
    %61 = vector.load %arg13[%c39, %c0_46] : memref<304x8xf32, #tpu.memory_space<vmem>>, vector<256x8xf32>
    %c0_47 = arith.constant 0 : index
    %c0_48 = arith.constant 0 : index
    %62 = vector.load %arg10[%c0_47, %c0_48] : memref<256x1xf32, #tpu.memory_space<vmem>>, vector<256x1xf32>
    %63 = vector.broadcast %62 : vector<256x1xf32> to vector<256x8xf32>
    %64 = arith.mulf %61, %63 : vector<256x8xf32>
    %65 = arith.truncf %64 : vector<256x8xf32> to vector<256x8xbf16>
    %c6 = arith.constant 6 : index
    %c0_49 = arith.constant 0 : index
    %c0_50 = arith.constant 0 : index
    %66 = vector.load %arg4[%c6, %c0_49, %c0_50] : memref<9x8x8xbf16, #tpu.memory_space<vmem>>, vector<1x8x8xbf16>
    %67 = vector.shape_cast %66 : vector<1x8x8xbf16> to vector<8x8xbf16>
    %cst_51 = arith.constant dense<0.000000e+00> : vector<256x8xf32>
    %68 = tpu.matmul %65, %67, %cst_51 {dimension_numbers = #tpu.dot_dimension_numbers<[1], [0], [0], [1], [0, 0, 1, 1], [], []>} : vector<256x8xbf16>, vector<8x8xbf16>, vector<256x8xf32> -> vector<256x8xf32>
    %69 = arith.addf %60, %68 : vector<256x8xf32>
    %c40 = arith.constant 40 : index
    %c0_52 = arith.constant 0 : index
    %70 = vector.load %arg13[%c40, %c0_52] : memref<304x8xf32, #tpu.memory_space<vmem>>, vector<256x8xf32>
    %71 = arith.truncf %70 : vector<256x8xf32> to vector<256x8xbf16>
    %c7_53 = arith.constant 7 : index
    %c0_54 = arith.constant 0 : index
    %c0_55 = arith.constant 0 : index
    %72 = vector.load %arg4[%c7_53, %c0_54, %c0_55] : memref<9x8x8xbf16, #tpu.memory_space<vmem>>, vector<1x8x8xbf16>
    %73 = vector.shape_cast %72 : vector<1x8x8xbf16> to vector<8x8xbf16>
    %cst_56 = arith.constant dense<0.000000e+00> : vector<256x8xf32>
    %74 = tpu.matmul %71, %73, %cst_56 {dimension_numbers = #tpu.dot_dimension_numbers<[1], [0], [0], [1], [0, 0, 1, 1], [], []>} : vector<256x8xbf16>, vector<8x8xbf16>, vector<256x8xf32> -> vector<256x8xf32>
    %75 = arith.addf %69, %74 : vector<256x8xf32>
    %c41 = arith.constant 41 : index
    %c0_57 = arith.constant 0 : index
    %76 = vector.load %arg13[%c41, %c0_57] : memref<304x8xf32, #tpu.memory_space<vmem>>, vector<256x8xf32>
    %c0_58 = arith.constant 0 : index
    %c0_59 = arith.constant 0 : index
    %77 = vector.load %arg11[%c0_58, %c0_59] : memref<256x1xf32, #tpu.memory_space<vmem>>, vector<256x1xf32>
    %78 = vector.broadcast %77 : vector<256x1xf32> to vector<256x8xf32>
    %79 = arith.mulf %76, %78 : vector<256x8xf32>
    %80 = arith.truncf %79 : vector<256x8xf32> to vector<256x8xbf16>
    %c8_60 = arith.constant 8 : index
    %c0_61 = arith.constant 0 : index
    %c0_62 = arith.constant 0 : index
    %81 = vector.load %arg4[%c8_60, %c0_61, %c0_62] : memref<9x8x8xbf16, #tpu.memory_space<vmem>>, vector<1x8x8xbf16>
    %82 = vector.shape_cast %81 : vector<1x8x8xbf16> to vector<8x8xbf16>
    %cst_63 = arith.constant dense<0.000000e+00> : vector<256x8xf32>
    %83 = tpu.matmul %80, %82, %cst_63 {dimension_numbers = #tpu.dot_dimension_numbers<[1], [0], [0], [1], [0, 0, 1, 1], [], []>} : vector<256x8xbf16>, vector<8x8xbf16>, vector<256x8xf32> -> vector<256x8xf32>
    %84 = arith.addf %75, %83 : vector<256x8xf32>
    %c0_64 = arith.constant 0 : index
    %c0_65 = arith.constant 0 : index
    %85 = vector.load %arg5[%c0_64, %c0_65] : memref<1x8xf32, #tpu.memory_space<vmem>>, vector<1x8xf32>
    %86 = vector.broadcast %85 : vector<1x8xf32> to vector<256x8xf32>
    %87 = arith.addf %84, %86 : vector<256x8xf32>
    %cst_66 = arith.constant 0.000000e+00 : f32
    %88 = vector.broadcast %cst_66 : f32 to vector<256x8xf32>
    %89 = arith.maximumf %87, %88 : vector<256x8xf32>
    %90 = arith.truncf %89 : vector<256x8xf32> to vector<256x8xbf16>
    %c0_67 = arith.constant 0 : index
    %c0_68 = arith.constant 0 : index
    %91 = vector.load %arg6[%c0_67, %c0_68] : memref<8x32xbf16, #tpu.memory_space<vmem>>, vector<8x32xbf16>
    %cst_69 = arith.constant dense<0.000000e+00> : vector<256x32xf32>
    %92 = tpu.matmul %90, %91, %cst_69 {dimension_numbers = #tpu.dot_dimension_numbers<[1], [0], [0], [1], [0, 0, 1, 1], [], []>} : vector<256x8xbf16>, vector<8x32xbf16>, vector<256x32xf32> -> vector<256x32xf32>
    %c0_70 = arith.constant 0 : index
    %c0_71 = arith.constant 0 : index
    %93 = vector.load %arg7[%c0_70, %c0_71] : memref<1x32xf32, #tpu.memory_space<vmem>>, vector<1x32xf32>
    %94 = vector.broadcast %93 : vector<1x32xf32> to vector<256x32xf32>
    %95 = arith.addf %92, %94 : vector<256x32xf32>
    %c0_72 = arith.constant 0 : index
    %c0_73 = arith.constant 0 : index
    %96 = vector.load %arg8[%c0_72, %c0_73] : memref<8x32xbf16, #tpu.memory_space<vmem>>, vector<8x32xbf16>
    %cst_74 = arith.constant dense<0.000000e+00> : vector<256x32xf32>
    %97 = tpu.matmul %1, %96, %cst_74 {dimension_numbers = #tpu.dot_dimension_numbers<[1], [0], [0], [1], [0, 0, 1, 1], [], []>} : vector<256x8xbf16>, vector<8x32xbf16>, vector<256x32xf32> -> vector<256x32xf32>
    %c0_75 = arith.constant 0 : index
    %c0_76 = arith.constant 0 : index
    %98 = vector.load %arg9[%c0_75, %c0_76] : memref<1x32xf32, #tpu.memory_space<vmem>>, vector<1x32xf32>
    %99 = vector.broadcast %98 : vector<1x32xf32> to vector<256x32xf32>
    %100 = arith.addf %97, %99 : vector<256x32xf32>
    %101 = arith.addf %95, %100 : vector<256x32xf32>
    %cst_77 = arith.constant 0.000000e+00 : f32
    %102 = vector.broadcast %cst_77 : f32 to vector<256x32xf32>
    %103 = arith.maximumf %101, %102 : vector<256x32xf32>
    %c0_78 = arith.constant 0 : index
    %c0_79 = arith.constant 0 : index
    %c0_80 = arith.constant 0 : index
    %104 = vector.load %arg12[%c0_78, %c0_79, %c0_80] : memref<1x256x32xf32, #tpu.memory_space<vmem>>, vector<1x256x32xf32>
    %105 = vector.shape_cast %104 : vector<1x256x32xf32> to vector<256x32xf32>
    %106 = vector.shape_cast %103 : vector<256x32xf32> to vector<1x256x32xf32>
    tpu.vector_store %arg12[%c0_78, %c0_79, %c0_80], %106 {strides = array<i32>} : memref<1x256x32xf32, #tpu.memory_space<vmem>>, vector<1x256x32xf32>,
    return
  }
  func.func @transform_0(%arg0: i32) -> (i32, i32, i32) {
    %c0_i32 = arith.constant 0 : i32
    %c0_i32_0 = arith.constant 0 : i32
    %c0_i32_1 = arith.constant 0 : i32
    return %arg0, %c0_i32, %c0_i32_0 : i32, i32, i32
  }
  func.func @transform_1(%arg0: i32) -> (i32, i32) {
    %c0_i32 = arith.constant 0 : i32
    %c0_i32_0 = arith.constant 0 : i32
    %c0_i32_1 = arith.constant 0 : i32
    return %c0_i32, %c0_i32_0 : i32, i32
  }
  func.func @transform_2(%arg0: i32) -> (i32, i32) {
    %c0_i32 = arith.constant 0 : i32
    %c0_i32_0 = arith.constant 0 : i32
    %c0_i32_1 = arith.constant 0 : i32
    return %c0_i32, %c0_i32_0 : i32, i32
  }
  func.func @transform_3(%arg0: i32) -> (i32, i32, i32) {
    %c0_i32 = arith.constant 0 : i32
    %c0_i32_0 = arith.constant 0 : i32
    %c0_i32_1 = arith.constant 0 : i32
    %c0_i32_2 = arith.constant 0 : i32
    return %c0_i32, %c0_i32_0, %c0_i32_1 : i32, i32, i32
  }
  func.func @transform_4(%arg0: i32) -> (i32, i32) {
    %c0_i32 = arith.constant 0 : i32
    %c0_i32_0 = arith.constant 0 : i32
    %c0_i32_1 = arith.constant 0 : i32
    return %c0_i32, %c0_i32_0 : i32, i32
  }
  func.func @transform_5(%arg0: i32) -> (i32, i32) {
    %c0_i32 = arith.constant 0 : i32
    %c0_i32_0 = arith.constant 0 : i32
    %c0_i32_1 = arith.constant 0 : i32
    return %c0_i32, %c0_i32_0 : i32, i32
  }
  func.func @transform_6(%arg0: i32) -> (i32, i32) {
    %c0_i32 = arith.constant 0 : i32
    %c0_i32_0 = arith.constant 0 : i32
    %c0_i32_1 = arith.constant 0 : i32
    return %c0_i32, %c0_i32_0 : i32, i32
  }
  func.func @transform_7(%arg0: i32) -> (i32, i32) {
    %c0_i32 = arith.constant 0 : i32
    %c0_i32_0 = arith.constant 0 : i32
    %c0_i32_1 = arith.constant 0 : i32
    return %c0_i32, %c0_i32_0 : i32, i32
  }
  func.func @transform_8(%arg0: i32) -> (i32, i32) {
    %c0_i32 = arith.constant 0 : i32
    %c0_i32_0 = arith.constant 0 : i32
    %c0_i32_1 = arith.constant 0 : i32
    return %c0_i32, %c0_i32_0 : i32, i32
  }
  func.func @transform_9(%arg0: i32) -> (i32, i32) {
    %c0_i32 = arith.constant 0 : i32
    %c0_i32_0 = arith.constant 0 : i32
    %c0_i32_1 = arith.constant 0 : i32
    return %c0_i32, %c0_i32_0 : i32, i32
  }
  func.func @transform_10(%arg0: i32) -> (i32, i32) {
    %c0_i32 = arith.constant 0 : i32
    %c0_i32_0 = arith.constant 0 : i32
    %c0_i32_1 = arith.constant 0 : i32
    return %c0_i32, %c0_i32_0 : i32, i32
  }
  func.func @transform_11(%arg0: i32) -> (i32, i32, i32) {
    %c0_i32 = arith.constant 0 : i32
    %c0_i32_0 = arith.constant 0 : i32
    %c0_i32_1 = arith.constant 0 : i32
    return %arg0, %c0_i32, %c0_i32_0 : i32, i32, i32
  }
}

</mosaic_0001>

<bundles_post_ra>
// kernel: tpu_custom_call.1
= control target key start
LH: loop header
LB: loop body
LE: loop exit
PB: predicated region body
PF: predicated region fallthrough
CT: control target
= control target key end

     0   :  { %s4146_s17 = smov 0   ;;  %s6040_s0 = inlined_call_operand.vmem [shape: bf16[2,256,8], index: 0, kind: input, shape index: {}]   ;;  %s6041_s1 = inlined_call_operand.vmem [shape: bf16[8,8], index: 1, kind: input, shape index: {}]   ;;  %s6042_s2 = inlined_call_operand.vmem [shape: f32[1,8], index: 2, kind: input, shape index: {}]   ;;  %s6043_s3 = inlined_call_operand.vmem [shape: bf16[9,8,8], index: 3, kind: input, shape index: {}]   ;;  %s6044_s4 = inlined_call_operand.vmem [shape: f32[1,8], index: 4, kind: input, shape index: {}]   ;;  %s6045_s5 = inlined_call_operand.vmem [shape: bf16[8,32], index: 5, kind: input, shape index: {}]   ;;  %s6046_s6 = inlined_call_operand.vmem [shape: f32[1,32], index: 6, kind: input, shape index: {}]   ;;  %s6047_s7 = inlined_call_operand.vmem [shape: bf16[8,32], index: 7, kind: input, shape index: {}]   ;;  %s6048_s8 = inlined_call_operand.vmem [shape: f32[1,32], index: 8, kind: input, shape index: {}]   ;;  %s6049_s9 = inlined_call_operand.vmem [shape: f32[256,1], index: 9, kind: input, shape index: {}]   ;;  %s6050_s10 = inlined_call_operand.vmem [shape: f32[256,1], index: 10, kind: input, shape index: {}]   ;;  %s6051_s11 = inlined_call_operand.vmem [shape: f32[2,256,32], index: 11, kind: output, shape index: {}]  }
   0x1 LB: > { %s3736_s18 = sadd.s32 4294967295, %s4082_s17   ;;  %p3740_p0 = scmp.ge.s32.totalorder %s4082_s17, 1  ;;  %s4082_s17 = sphi %s4146_s17, %s21_s17  }
   0x2   : > { %p337_p1 = scmp.lt.s32.totalorder %s4082_s17, 3 }
   0x4   : > { %p338_p2 = pnand %p3740_p0, %p337_p1 }
   0x6   : > { %341 = sbr.rel (%p338_p2) target bundleno = 1191 (0x4a7), region = 64 }
   0xb   : > { %v1384_v0 = vld [vmem:[%s6050_s10] sm:$0xff]  ;;  %vm554_vm0 = vcmask 1043456   ;;  %v4084_v3 = vmov 0   ;;  %p377_p3 = scmp.lt.s32.totalorder %s3736_s18, 1  ;;  %v783_v5 = vld [vmem:[%s6049_s9 + $0x10] sm:$0xff]  ;;  %vm505_vm1 = vcmask 64512  }
   0xc   : > { %v781_v1 = vld [vmem:[%s6049_s9] sm:$0xff]  ;;  %4040 = vset.pattern.permute.xlu1 %v4084_v3  ;;  %4039 = vset.pattern.permute.xlu0 %v4084_v3  ;;  %v1385_v7 = vld [vmem:[%s6050_s10 + $0x8] sm:$0xff]  ;;  %v784_v9 = vld [vmem:[%s6049_s9 + $0x18] sm:$0xff]  ;;  %v4085_v42 = vmov 0.0   ;;  %vm3648_vm2 = vcmask 261120  }
   0xd   : > { %v420_v2 = vld [vmem:[%s6041_s1] sm:$0xf]  ;;  %1418 = vperm.xlu1 %4040, %v1384_v0   ;;  %815 = vperm.xlu0 %4039, %v781_v1   ;;  %s6348_s18 = smov (!%p377_p3, %s3736_s18), 1  ;;  %v782_v8 = vld [vmem:[%s6049_s9 + $0x8] sm:$0xff]  ;;  %v1387_v10 = vld [vmem:[%s6050_s10 + $0x18] sm:$0xff]  ;;  %680 = vst.msk [vmem:[#allocation2 + $0x8] sm:$0xff] %vm505_vm1, %v4085_v42 }
   0xe   : > { %v556_v4 = vsel %vm554_vm0, %v420_v2, 0  ;;  %4041 = vset.pattern.permute.xlu2 %v4084_v3  ;;  %s4011_s27 = sshll.u32 %s6348_s18, 7  ;;  %v1386_v11 = vld [vmem:[%s6050_s10 + $0x10] sm:$0xff]  ;;  %v785_v12 = vld [vmem:[%s6049_s9 + $0x20] sm:$0xff]  ;;  %v786_v15 = vld [vmem:[%s6049_s9 + $0x28] sm:$0xff]  ;;  %681 = vst.msk [vmem:[#allocation2 + $0x10] sm:$0xff] %vm505_vm1, %v4085_v42 }
   0xf   : > { %565 = vmatpush.bf16.msra.mxu0 %v556_v4  ;;  %825 = vperm.xlu2 %4041, %v783_v5   ;;  %s4173_s30 = scalar_lea.vmem %s6040_s0, %s4011_s27  ;;  %v1388_v14 = vld [vmem:[%s6050_s10 + $0x20] sm:$0xff]  ;;  %v1389_v16 = vld [vmem:[%s6050_s10 + $0x28] sm:$0xff]  ;;  %v788_v17 = vld [vmem:[%s6049_s9 + $0x38] sm:$0xff]  ;;  %679 = vst.msk [vmem:[#allocation2] sm:$0xff] %vm505_vm1, %v4085_v42  ;;  %s4012_s24 = sshll.u32 %s6348_s18, 8 }
  0x10   : > { %v4013_v6 = vld [vmem:[%s4173_s30] sm:$0xff]  ;;  %v4014_v13 = vld [vmem:[%s4173_s30 + $0x8] sm:$0xff]  ;;  %v787_v18 = vld [vmem:[%s6049_s9 + $0x30] sm:$0xff]  ;;  %682 = vst.msk [vmem:[#allocation2 + $0x18] sm:$0xff] %vm505_vm1, %v4085_v42  ;;  %s5854_s27 = scalar_lea.vmem %s6051_s11, %s4012_s24 }
  0x11   : > { %v1390_v19 = vld [vmem:[%s6050_s10 + $0x30] sm:$0xff]  ;;  %v789_v21 = vld [vmem:[%s6049_s9 + $0x40] sm:$0xff]  ;;  %v1391_v22 = vld [vmem:[%s6050_s10 + $0x38] sm:$0xff]  ;;  %683 = vst.msk [vmem:[#allocation2 + $0x20] sm:$0xff] %vm505_vm1, %v4085_v42 }
  0x12   : > { %3809 = vmatmul.msk.bf16.vlgmr.msra.gmra.mxu0 %vm505_vm1, %v4013_v6  ;;  %v4015_v20 = vld [vmem:[%s4173_s30 + $0x10] sm:$0xff]  ;;  %v790_v23 = vld [vmem:[%s6049_s9 + $0x48] sm:$0xff]  ;;  %v1392_v25 = vld [vmem:[%s6050_s10 + $0x40] sm:$0xff]  ;;  %684 = vst.msk [vmem:[#allocation2 + $0x28] sm:$0xff] %vm505_vm1, %v4085_v42 }
  0x13   : > { %v1393_v24 = vld [vmem:[%s6050_s10 + $0x48] sm:$0xff]  ;;  %v791_v26 = vld [vmem:[%s6049_s9 + $0x50] sm:$0xff]  ;;  %v4016_v27 = vld [vmem:[%s4173_s30 + $0x18] sm:$0xff]  ;;  %685 = vst.msk [vmem:[#allocation2 + $0x30] sm:$0xff] %vm505_vm1, %v4085_v42 }
  0x14   : > { %v1394_v28 = vld [vmem:[%s6050_s10 + $0x50] sm:$0xff]  ;;  %v792_v29 = vld [vmem:[%s6049_s9 + $0x58] sm:$0xff]  ;;  %v794_v31 = vld [vmem:[%s6049_s9 + $0x68] sm:$0xff]  ;;  %686 = vst.msk [vmem:[#allocation2 + $0x38] sm:$0xff] %vm505_vm1, %v4085_v42 }
  0x15   : > { %1423 = vperm.xlu1 %4040, %v1385_v7   ;;  %820 = vperm.xlu0 %4039, %v782_v8   ;;  %v1395_v30 = vld [vmem:[%s6050_s10 + $0x58] sm:$0xff]  ;;  %v793_v32 = vld [vmem:[%s6049_s9 + $0x60] sm:$0xff]  ;;  %v795_v35 = vld [vmem:[%s6049_s9 + $0x70] sm:$0xff]  ;;  %687 = vst.msk [vmem:[#allocation2 + $0x40] sm:$0xff] %vm505_vm1, %v4085_v42 }
  0x16   : > { %v1396_v33 = vld [vmem:[%s6050_s10 + $0x60] sm:$0xff]  ;;  %v1397_v36 = vld [vmem:[%s6050_s10 + $0x68] sm:$0xff]  ;;  %v796_v37 = vld [vmem:[%s6049_s9 + $0x78] sm:$0xff]  ;;  %688 = vst.msk [vmem:[#allocation2 + $0x48] sm:$0xff] %vm505_vm1, %v4085_v42 }
  0x17   : > { %830 = vperm.xlu2 %4041, %v784_v9   ;;  %v4017_v34 = vld [vmem:[%s4173_s30 + $0x20] sm:$0xff]  ;;  %v1399_v38 = vld [vmem:[%s6050_s10 + $0x78] sm:$0xff]  ;;  %v1398_v39 = vld [vmem:[%s6050_s10 + $0x70] sm:$0xff]  ;;  %689 = vst.msk [vmem:[#allocation2 + $0x50] sm:$0xff] %vm505_vm1, %v4085_v42 }
  0x18   : > { %v797_v40 = vld [vmem:[%s6049_s9 + $0x80] sm:$0xff]  ;;  %v4018_v41 = vld [vmem:[%s4173_s30 + $0x28] sm:$0xff]  ;;  %v800_v48 = vld [vmem:[%s6049_s9 + $0x98] sm:$0xff]  ;;  %690 = vst.msk [vmem:[#allocation2 + $0x58] sm:$0xff] %vm505_vm1, %v4085_v42 }
  0x19   : > { %v1400_v43 = vld [vmem:[%s6050_s10 + $0x80] sm:$0xff]  ;;  %v798_v44 = vld [vmem:[%s6049_s9 + $0x88] sm:$0xff]  ;;  %v799_v49 = vld [vmem:[%s6049_s9 + $0x90] sm:$0xff]  ;;  %691 = vst.msk [vmem:[#allocation2 + $0x60] sm:$0xff] %vm505_vm1, %v4085_v42 }
  0x1a   : > { %v1401_v45 = vld [vmem:[%s6050_s10 + $0x88] sm:$0xff]  ;;  %v1021_v46 = vld [vmem:[%s6043_s3] sm:$0xf]  ;;  %v3825_v50 = vld [vmem:[%s6043_s3 + $0x4] sm:$0xf]  ;;  %692 = vst.msk [vmem:[#allocation2 + $0x68] sm:$0xff] %vm505_vm1, %v4085_v42 }
  0x1b   : > { %v1261_v47 = vsel %vm554_vm0, %v1021_v46, 0  ;;  %v1121_v51 = vsel %vm554_vm0, %v3825_v50, 0  ;;  %v1402_v52 = vld [vmem:[%s6050_s10 + $0x90] sm:$0xff]  ;;  %v1022_v53 = vld [vmem:[#allocation2 + $0x8] sm:$0xff]  ;;  %693 = vst.msk [vmem:[#allocation2 + $0x70] sm:$0xff] %vm505_vm1, %v4085_v42  ;;  %v801_v57 = vld [vmem:[%s6049_s9 + $0xa0] sm:$0xff] }
  0x1c   : > { %1270 = vmatpush.bf16.msra.mxu2 %v1261_v47  ;;  %1130 = vmatpush.bf16.msra.mxu1 %v1121_v51  ;;  %v1023_v54 = vld [vmem:[#allocation2 + $0x10] sm:$0xff]  ;;  %694 = vst.msk [vmem:[#allocation2 + $0x78] sm:$0xff] %vm505_vm1, %v4085_v42  ;;  %v1403_v58 = vld [vmem:[%s6050_s10 + $0x98] sm:$0xff]  ;;  %v802_v59 = vld [vmem:[%s6049_s9 + $0xa8] sm:$0xff] }
  0x1d   : > { %1433 = vperm.xlu1 %4040, %v1387_v10   ;;  %1428 = vperm.xlu0 %4039, %v1386_v11   ;;  %v1054_v55 = vpack.c.bf16 %v1023_v54, %v1022_v53  ;;  %v4019_v56 = vld [vmem:[%s4173_s30 + $0x30] sm:$0xff]  ;;  %695 = vst.msk [vmem:[#allocation2 + $0x80] sm:$0xff] %vm505_vm1, %v4085_v42  ;;  %v3875_v60 = vld [vmem:[%s6043_s3 + $0xc] sm:$0xf]  ;;  %v1404_v1 = vld [vmem:[%s6050_s10 + $0xa0] sm:$0xff] }
  0x1e   : > { %696 = vst.msk [vmem:[#allocation2 + $0x88] sm:$0xff] %vm505_vm1, %v4085_v42  ;;  %v1929_v61 = vsel %vm554_vm0, %v3875_v60, 0  ;;  %v3892_v62 = vld [vmem:[%s6043_s3 + $0x10] sm:$0xf]  ;;  %v1405_v0 = vld [vmem:[%s6050_s10 + $0xa8] sm:$0xff]  ;;  %v4020_v6 = vld [vmem:[%s4173_s30 + $0x38] sm:$0xff] }
  0x1f   : > { %835 = vperm.xlu2 %4041, %v785_v12   ;;  %3826 = vmatmul.msk.bf16.vlgmr.msra.gmra.mxu1 %vm505_vm1, %v1054_v55  ;;  %697 = vst.msk [vmem:[#allocation2 + $0x90] sm:$0xff] %vm505_vm1, %v4085_v42  ;;  %v2151_v63 = vsel %vm554_vm0, %v3892_v62, 0  ;;  %v803_v2 = vld [vmem:[%s6049_s9 + $0xb0] sm:$0xff]  ;;  %v3858_v3 = vld [vmem:[%s6043_s3 + $0x8] sm:$0xf]  ;;  %v804_v8 = vld [vmem:[%s6049_s9 + $0xb8] sm:$0xff] }
  0x20   : > { %698 = vst.msk [vmem:[#allocation2 + $0x98] sm:$0xff] %vm505_vm1, %v4085_v42  ;;  %1938 = vmatpush.bf16.msrb.mxu0 %v1929_v61  ;;  %2160 = vmatpush.bf16.msrb.mxu1 %v2151_v63  ;;  %v1675_v5 = vsel %vm554_vm0, %v3858_v3, 0  ;;  %v1406_v7 = vld [vmem:[%s6050_s10 + $0xb0] sm:$0xff]  ;;  %v749_v9 = vld [vmem:[#allocation2 + $0x7] sm:$0xff]  ;;  %v1407_v11 = vld [vmem:[%s6050_s10 + $0xb8] sm:$0xff] }
  0x21   : > { %699 = vst.msk [vmem:[#allocation2 + $0xa0] sm:$0xff] %vm505_vm1, %v4085_v42  ;;  %1684 = vmatpush.bf16.msra.mxu3 %v1675_v5  ;;  %v750_v10 = vld [vmem:[#allocation2 + $0xf] sm:$0xff]  ;;  %v1412_v46 = vld [vmem:[%s6050_s10 + $0xe0] sm:$0xff]  ;;  %v812_v62 = vld [vmem:[%s6049_s9 + $0xf8] sm:$0xff] }
  0x22   : > { %3810 = vmatmul.msk.bf16.gmra.mxu0 %vm505_vm1, %v4014_v13  ;;  %700 = vst.msk [vmem:[#allocation2 + $0xa8] sm:$0xff] %vm505_vm1, %v4085_v42  ;;  %v810_v47 = vld [vmem:[%s6049_s9 + $0xe8] sm:$0xff]  ;;  %v811_v63 = vld [vmem:[%s6049_s9 + $0xf0] sm:$0xff] }
  0x23   : > { %701 = vst.msk [vmem:[#allocation2 + $0xb0] sm:$0xff] %vm505_vm1, %v4085_v42 }
  0x24   : > { %702 = vst.msk [vmem:[#allocation2 + $0xb8] sm:$0xff] %vm505_vm1, %v4085_v42 }
  0x25   : > { %1438 = vperm.xlu1 %4040, %v1388_v14   ;;  %840 = vperm.xlu0 %4039, %v786_v15   ;;  %703 = vst.msk [vmem:[#allocation2 + $0xc0] sm:$0xff] %vm505_vm1, %v4085_v42 }
  0x26   : > { %704 = vst.msk [vmem:[#allocation2 + $0xc8] sm:$0xff] %vm505_vm1, %v4085_v42 }
  0x27   : > { %1443 = vperm.xlu2 %4041, %v1389_v16   ;;  %705 = vst.msk [vmem:[#allocation2 + $0xd0] sm:$0xff] %vm505_vm1, %v4085_v42  ;;  %v806_v16 = vld [vmem:[%s6049_s9 + $0xc8] sm:$0xff] }
  0x28   : > { %706 = vst.msk [vmem:[#allocation2 + $0xd8] sm:$0xff] %vm505_vm1, %v4085_v42 }
  0x29   : > { %707 = vst.msk [vmem:[#allocation2 + $0xe0] sm:$0xff] %vm505_vm1, %v4085_v42 }
  0x2a   : > { %708 = vst.msk [vmem:[#allocation2 + $0xe8] sm:$0xff] %vm505_vm1, %v4085_v42 }
  0x2b   : > { %709 = vst.msk [vmem:[#allocation2 + $0xf0] sm:$0xff] %vm505_vm1, %v4085_v42 }
  0x2c   : > { %710 = vst.msk [vmem:[#allocation2 + $0xf8] sm:$0xff] %vm505_vm1, %v4085_v42 }
  0x2d   : > { %850 = vperm.xlu1 %4040, %v788_v17   ;;  %845 = vperm.xlu0 %4039, %v787_v18   ;;  %711 = vst.msk [vmem:[#allocation2 + $0x100] sm:$0xff] %vm505_vm1, %v4085_v42  ;;  %v805_v17 = vld [vmem:[%s6049_s9 + $0xc0] sm:$0xff] }
  0x2e   : > { %712 = vst.msk [vmem:[#allocation2 + $0x108] sm:$0xff] %vm505_vm1, %v4085_v42  ;;  %v1408_v18 = vld [vmem:[%s6050_s10 + $0xc0] sm:$0xff] }
  0x2f   : > { %1448 = vperm.xlu2 %4041, %v1390_v19   ;;  %713 = vst.msk [vmem:[#allocation2 + $0x110] sm:$0xff] %vm505_vm1, %v4085_v42  ;;  %v4442_v19 = vld [vmem:[%s6042_s2] ss:$0 sm:$0xff] }
  0x30   : > { %714 = vst.msk [vmem:[#allocation2 + $0x118] sm:$0xff] %vm505_vm1, %v4085_v42 }
  0x31   : > { %715 = vst.msk [vmem:[#allocation2 + $0x120] sm:$0xff] %vm505_vm1, %v4085_v42 }
  0x32   : > { %3811 = vmatmul.msk.bf16.gmra.mxu0 %vm505_vm1, %v4015_v20  ;;  %716 = vst.msk [vmem:[#allocation2 + $0x128] sm:$0xff] %vm505_vm1, %v4085_v42  ;;  %v4021_v20 = vld [vmem:[%s4173_s30 + $0x40] sm:$0xff] }
  0x35   : > { %855 = vperm.xlu1 %4040, %v789_v21   ;;  %1453 = vperm.xlu0 %4039, %v1391_v22  }
  0x37   : > { %860 = vperm.xlu2 %4041, %v790_v23   ;;  %v807_v23 = vld [vmem:[%s6049_s9 + $0xd0] sm:$0xff] }
  0x3d   : > { %1463 = vperm.xlu1 %4040, %v1393_v24   ;;  %1458 = vperm.xlu0 %4039, %v1392_v25   ;;  %v1409_v24 = vld [vmem:[%s6050_s10 + $0xc8] sm:$0xff] }
  0x3f   : > { %865 = vperm.xlu2 %4041, %v791_v26  }
  0x42   : > { %3812 = vmatmul.msk.bf16.gmra.mxu0 %vm505_vm1, %v4016_v27  ;;  %v808_v27 = vld [vmem:[%s6049_s9 + $0xd8] sm:$0xff] }
  0x45   : > { %1468 = vperm.xlu1 %4040, %v1394_v28   ;;  %870 = vperm.xlu0 %4039, %v792_v29   ;;  %v1352_v28 = vld [vmem:[#allocation2 + $0x9] sm:$0xff] }
  0x47   : > { %1473 = vperm.xlu2 %4041, %v1395_v30  }
  0x4d   : > { %880 = vperm.xlu1 %4040, %v794_v31   ;;  %875 = vperm.xlu0 %4039, %v793_v32   ;;  %v1411_v31 = vld [vmem:[%s6050_s10 + $0xd8] sm:$0xff]  ;;  %v1410_v32 = vld [vmem:[%s6050_s10 + $0xd0] sm:$0xff] }
  0x4f   : > { %1478 = vperm.xlu2 %4041, %v1396_v33  }
  0x52   : > { %3813 = vmatmul.msk.bf16.gmra.mxu0 %vm505_vm1, %v4017_v34 }
  0x55   : > { %885 = vperm.xlu1 %4040, %v795_v35   ;;  %1483 = vperm.xlu0 %4039, %v1397_v36  }
  0x57   : > { %890 = vperm.xlu2 %4041, %v796_v37  }
  0x5d   : > { %1493 = vperm.xlu1 %4040, %v1399_v38   ;;  %1488 = vperm.xlu0 %4039, %v1398_v39  }
  0x5f   : > { %895 = vperm.xlu2 %4041, %v797_v40   ;;  %v809_v40 = vld [vmem:[%s6049_s9 + $0xe0] sm:$0xff] }
  0x62   : > { %3814 = vmatmul.msk.bf16.gmra.mxu0 %vm505_vm1, %v4018_v41 }
  0x65   : > { %1498 = vperm.xlu1 %4040, %v1400_v43   ;;  %900 = vperm.xlu0 %4039, %v798_v44   ;;  %v4022_v43 = vld [vmem:[%s4173_s30 + $0x48] sm:$0xff] }
  0x67   : > { %1503 = vperm.xlu2 %4041, %v1401_v45  }
  0x69   : > { %v4466_v33 = vpop.permute.xlu2 %825 }
  0x6d   : > { %910 = vperm.xlu1 %4040, %v800_v48   ;;  %905 = vperm.xlu0 %4039, %v799_v49  }
  0x6f   : > { %1508 = vperm.xlu2 %4041, %v1402_v52  }
  0x71   : > { %v4489_v49 = vpop.permute.xlu2 %830 }
  0x72   : > { %3815 = vmatmul.msk.bf16.gmra.mxu0 %vm505_vm1, %v4019_v56  ;;  %v1413_v56 = vld [vmem:[%s6050_s10 + $0xe8] sm:$0xff] }
  0x75   : > { %915 = vperm.xlu1 %4040, %v801_v57   ;;  %1513 = vperm.xlu0 %4039, %v1403_v58  }
  0x77   : > { %920 = vperm.xlu2 %4041, %v802_v59  }
  0x7d   : > { %1523 = vperm.xlu1 %4040, %v1405_v0   ;;  %1518 = vperm.xlu0 %4039, %v1404_v1  }
  0x7f   : > { %v4399_v4 = vpop.permute.xlu0 %815  ;;  %925 = vperm.xlu2 %4041, %v803_v2   ;;  %v4452_v25 = vpop.permute.xlu1 %1418 }
  0x80   : > { %v973_v12 = vmul.f32 %v4399_v4, %v749_v9  ;;  %v1576_v34 = vmul.f32 %v4452_v25, %v1352_v28  ;;  %v1414_v9 = vld [vmem:[%s6050_s10 + $0xf0] sm:$0xff] }
  0x82   : > { %3816 = vmatmul.msk.bf16.gmra.mxu0 %vm505_vm1, %v4020_v6 }
  0x85   : > { %1528 = vperm.xlu1 %4040, %v1406_v7   ;;  %930 = vperm.xlu0 %4039, %v804_v8  }
  0x87   : > { %v4426_v13 = vpop.permute.xlu0 %820  ;;  %1533 = vperm.xlu2 %4041, %v1407_v11   ;;  %v4469_v36 = vpop.permute.xlu1 %1423 }
  0x88   : > { %v974_v14 = vmul.f32 %v4426_v13, %v750_v10 }
  0x8a   : > { %v1005_v15 = vpack.c.bf16 %v974_v14, %v973_v12 }
  0x8c   : > { %3842 = vmatmul.msk.bf16.vlgmr.msra.gmra.mxu2 %vm505_vm1, %v1005_v15  ;;  %v4023_v15 = vld [vmem:[%s4173_s30 + $0x50] sm:$0xff] }
  0x8d   : > { %940 = vperm.xlu1 %4040, %v806_v16   ;;  %935 = vperm.xlu0 %4039, %v805_v17  }
  0x8f   : > { %1538 = vperm.xlu2 %4041, %v1408_v18   ;;  %v567_v21 = vpop.f32.mrf.mxu0  ;;  %v4511_v0 = vpop.permute.xlu0 %1428 }
  0x90   : > { %v568_v22 = vadd.f32 %v4442_v19, %v567_v21  ;;  %v4513_v5 = vpop.permute.xlu1 %1433 }
  0x92   : > { %v647_v26 = vmax.f32 %v568_v22, 0.0  ;;  %3817 = vmatmul.msk.bf16.gmra.mxu0 %vm505_vm1, %v4021_v20  ;;  %v1415_v20 = vld [vmem:[%s6050_s10 + $0xf8] sm:$0xff]  ;;  %v4535_v22 = vpop.permute.xlu2 %835 }
  0x94   : > { %717 = vst.msk [vmem:[#allocation2 + $0x18] sm:$0xff] %vm505_vm1, %v647_v26 }
  0x95   : > { %945 = vperm.xlu1 %4040, %v807_v23   ;;  %1543 = vperm.xlu0 %4039, %v1409_v24  }
  0x97   : > { %950 = vperm.xlu2 %4041, %v808_v27   ;;  %v569_v29 = vpop.f32.mrf.mxu0  ;;  %v4538_v26 = vpop.permute.xlu0 %840 }
  0x98   : > { %v570_v30 = vadd.f32 %v4442_v19, %v569_v29 }
  0x9a   : > { %v648_v35 = vmax.f32 %v570_v30, 0.0 }
  0x9b   : > { %v1353_v37 = vld [vmem:[#allocation2 + $0x11] sm:$0xff] }
  0x9c   : > { %v751_v38 = vld [vmem:[#allocation2 + $0x17] sm:$0xff]  ;;  %718 = vst.msk [vmem:[#allocation2 + $0x20] sm:$0xff] %vm505_vm1, %v648_v35  ;;  %v1577_v39 = vmul.f32 %v4469_v36, %v1353_v37 }
  0x9d   : > { %1553 = vperm.xlu1 %4040, %v1411_v31   ;;  %1548 = vperm.xlu0 %4039, %v1410_v32   ;;  %v4477_v41 = vmul.f32 %v4399_v4, %v751_v38  ;;  %v1024_v50 = vld [vmem:[#allocation2 + $0x18] sm:$0xff]  ;;  %v975_v54 = vmul.f32 %v4466_v33, %v751_v38 }
  0x9e   : > { %v1608_v42 = vpack.c.bf16 %v1577_v39, %v1576_v34 }
  0x9f   : > { %955 = vperm.xlu2 %4041, %v809_v40   ;;  %v572_v44 = vpop.f32.mrf.mxu0 }
  0xa0   : > { %v573_v45 = vadd.f32 %v4442_v19, %v572_v44  ;;  %3859 = vmatmul.msk.bf16.vlgmr.msra.gmra.mxu3 %vm505_vm1, %v1608_v42 }
  0xa2   : > { %v649_v48 = vmax.f32 %v573_v45, 0.0  ;;  %3818 = vmatmul.msk.bf16.gmra.mxu0 %vm505_vm1, %v4022_v43 }
  0xa3   : > { %v1025_v51 = vld [vmem:[#allocation2 + $0x20] sm:$0xff] }
  0xa4   : > { %v752_v52 = vld [vmem:[#allocation2 + $0x1f] sm:$0xff]  ;;  %719 = vst.msk [vmem:[#allocation2 + $0x28] sm:$0xff] %vm505_vm1, %v649_v48  ;;  %v1055_v53 = vpack.c.bf16 %v1025_v51, %v1024_v50  ;;  %v4564_v48 = vpop.permute.xlu2 %1443 }
  0xa5   : > { %1558 = vperm.xlu1 %4040, %v1412_v46   ;;  %960 = vperm.xlu0 %4039, %v810_v47   ;;  %v976_v55 = vmul.f32 %v4489_v49, %v752_v52  ;;  %v4498_v57 = vmul.f32 %v4426_v13, %v752_v52  ;;  %v1354_v1 = vld [vmem:[#allocation2 + $0x19] sm:$0xff]  ;;  %6140 = vst [vmem:[#allocation4_spill] sm:$0xff] %v4564_v48 }
  0xa6   : > { %3827 = vmatmul.msk.bf16.gmra.mxu1 %vm505_vm1, %v1055_v53  ;;  %v2274_v3 = vld [vmem:[#allocation2 + $0x19] sm:$0xff]  ;;  %v1578_v7 = vmul.f32 %v4511_v0, %v1354_v1 }
  0xa7   : > { %1563 = vperm.xlu2 %4041, %v1413_v56   ;;  %v1006_v58 = vpack.c.bf16 %v976_v55, %v975_v54  ;;  %v574_v60 = vpop.f32.mrf.mxu0  ;;  %v4522_v11 = vmul.f32 %v2274_v3, %v4452_v25 }
  0xa8   : > { %v575_v61 = vadd.f32 %v4442_v19, %v574_v60 }
  0xa9   : > { %3843 = vmatmul.msk.bf16.gmra.mxu2 %vm505_vm1, %v1006_v58 }
  0xaa   : > { %v650_v2 = vmax.f32 %v575_v61, 0.0  ;;  %v4024_v61 = vld [vmem:[%s4173_s30 + $0x58] sm:$0xff] }
  0xab   : > { %v1355_v6 = vld [vmem:[#allocation2 + $0x21] sm:$0xff] }
  0xac   : > { %720 = vst.msk [vmem:[#allocation2 + $0x30] sm:$0xff] %vm505_vm1, %v650_v2  ;;  %v1579_v8 = vmul.f32 %v4513_v5, %v1355_v6  ;;  %v2275_v10 = vld [vmem:[#allocation2 + $0x21] sm:$0xff] }
  0xad   : > { %970 = vperm.xlu1 %4040, %v812_v62   ;;  %965 = vperm.xlu0 %4039, %v811_v63   ;;  %v4525_v12 = vmul.f32 %v2275_v10, %v4469_v36  ;;  %v753_v21 = vld [vmem:[#allocation2 + $0x27] sm:$0xff] }
  0xae   : > { %v1609_v14 = vpack.c.bf16 %v1579_v8, %v1578_v7  ;;  %v2528_v24 = vld [vmem:[#allocation2 + $0x27] sm:$0xff]  ;;  %v977_v30 = vmul.f32 %v4535_v22, %v753_v21  ;;  %v4544_v34 = vmul.f32 %v4466_v33, %v753_v21  ;;  %v4588_v8 = vpop.permute.xlu0 %845 }
  0xaf   : > { %1568 = vperm.xlu2 %4041, %v1414_v9   ;;  %v577_v16 = vpop.f32.mrf.mxu0  ;;  %v1026_v27 = vld [vmem:[#allocation2 + $0x28] sm:$0xff]  ;;  %v4550_v38 = vmul.f32 %v2528_v24, %v4399_v4  ;;  %v4562_v4 = vpop.permute.xlu1 %1438 }
  0xb0   : > { %v578_v18 = vadd.f32 %v4442_v19, %v577_v16  ;;  %3860 = vmatmul.msk.bf16.gmra.mxu3 %vm505_vm1, %v1609_v14  ;;  %6139 = vst [vmem:[#allocation3_spill] sm:$0xff] %v4562_v4 }
  0xb2   : > { %v651_v23 = vmax.f32 %v578_v18, 0.0  ;;  %3819 = vmatmul.msk.bf16.gmra.mxu0 %vm505_vm1, %v4023_v15 }
  0xb3   : > { %v1027_v28 = vld [vmem:[#allocation2 + $0x30] sm:$0xff] }
  0xb4   : > { %v754_v29 = vld [vmem:[#allocation2 + $0x2f] sm:$0xff]  ;;  %721 = vst.msk [vmem:[#allocation2 + $0x38] sm:$0xff] %vm505_vm1, %v651_v23  ;;  %v1056_v31 = vpack.c.bf16 %v1027_v28, %v1026_v27 }
  0xb5   : > { %1573 = vperm.xlu0 %4039, %v1415_v20   ;;  %v978_v32 = vmul.f32 %v4538_v26, %v754_v29  ;;  %v4547_v35 = vmul.f32 %v4489_v49, %v754_v29  ;;  %v2529_v37 = vld [vmem:[#allocation2 + $0x2f] sm:$0xff]  ;;  %v4607_v29 = vpop.permute.xlu2 %1448 }
  0xb6   : > { %v4553_v39 = vmul.f32 %v2529_v37, %v4426_v13  ;;  %3828 = vmatmul.msk.bf16.gmra.mxu1 %vm505_vm1, %v1056_v31  ;;  %v1356_v46 = vld [vmem:[#allocation2 + $0x29] sm:$0xff] }
  0xb7   : > { %v1007_v40 = vpack.c.bf16 %v978_v32, %v977_v30  ;;  %v579_v43 = vpop.f32.mrf.mxu0  ;;  %v2276_v47 = vld [vmem:[#allocation2 + $0x29] sm:$0xff]  ;;  %v1580_v52 = vmul.f32 %v4562_v4, %v1356_v46  ;;  %v4609_v32 = vpop.permute.xlu0 %1453 }
  0xb8   : > { %v580_v45 = vadd.f32 %v4442_v19, %v579_v43  ;;  %v3004_v51 = vld [vmem:[#allocation2 + $0x29] sm:$0xff]  ;;  %v4570_v55 = vmul.f32 %v2276_v47, %v4511_v0 }
  0xb9   : > { %3844 = vmatmul.msk.bf16.gmra.mxu2 %vm505_vm1, %v1007_v40  ;;  %v4577_v62 = vmul.f32 %v3004_v51, %v4452_v25  ;;  %v4591_v25 = vpop.permute.xlu1 %850  ;;  %v4025_v51 = vld [vmem:[%s4173_s30 + $0x60] sm:$0xff] }
  0xba   : > { %v652_v13 = vmax.f32 %v580_v45, 0.0 }
  0xbb   : > { %v1357_v50 = vld [vmem:[#allocation2 + $0x31] sm:$0xff]  ;;  %6141 = vst [vmem:[#allocation5_spill] sm:$0xff] %v4577_v62 }
  0xbc   : > { %722 = vst.msk [vmem:[#allocation2 + $0x40] sm:$0xff] %vm505_vm1, %v652_v13  ;;  %v1581_v53 = vmul.f32 %v4564_v48, %v1357_v50  ;;  %v2277_v54 = vld [vmem:[#allocation2 + $0x31] sm:$0xff] }
  0xbd   : > { %v4573_v56 = vmul.f32 %v2277_v54, %v4513_v5  ;;  %v3005_v58 = vld [vmem:[#allocation2 + $0x31] sm:$0xff] }
  0xbe   : > { %v1610_v60 = vpack.c.bf16 %v1581_v53, %v1580_v52  ;;  %v4580_v63 = vmul.f32 %v3005_v58, %v4469_v36  ;;  %v755_v6 = vld [vmem:[#allocation2 + $0x37] sm:$0xff] }
  0xbf   : > { %v582_v1 = vpop.f32.mrf.mxu0  ;;  %v1028_v36 = vld [vmem:[#allocation2 + $0x38] sm:$0xff]  ;;  %v979_v15 = vmul.f32 %v4588_v8, %v755_v6  ;;  %v4597_v20 = vmul.f32 %v4535_v22, %v755_v6 }
  0xc0   : > { %6142 = vst [vmem:[#allocation6_spill] sm:$0xff] %v4580_v63  ;;  %v583_v3 = vadd.f32 %v4442_v19, %v582_v1  ;;  %3861 = vmatmul.msk.bf16.gmra.mxu3 %vm505_vm1, %v1610_v60 }
  0xc2   : > { %v653_v9 = vmax.f32 %v583_v3, 0.0  ;;  %3820 = vmatmul.msk.bf16.gmra.mxu0 %vm505_vm1, %v4024_v61  ;;  %v4628_v61 = vpop.permute.xlu1 %855  ;;  %v4631_v3 = vpop.permute.xlu2 %860 }
  0xc3   : > { %v1029_v10 = vld [vmem:[#allocation2 + $0x40] sm:$0xff]  ;;  %6145 = vst [vmem:[#allocation9_spill] sm:$0xff] %v4628_v61 }
  0xc4   : > { %v756_v14 = vld [vmem:[#allocation2 + $0x3f] sm:$0xff]  ;;  %723 = vst.msk [vmem:[#allocation2 + $0x48] sm:$0xff] %vm505_vm1, %v653_v9  ;;  %v1057_v16 = vpack.c.bf16 %v1029_v10, %v1028_v36 }
  0xc5   : > { %v980_v18 = vmul.f32 %v4591_v25, %v756_v14  ;;  %v4600_v21 = vmul.f32 %v4538_v26, %v756_v14  ;;  %v1358_v30 = vld [vmem:[#allocation2 + $0x39] sm:$0xff]  ;;  %6146 = vst [vmem:[#allocation10_spill] sm:$0xff] %v4631_v3 }
  0xc6   : > { %3829 = vmatmul.msk.bf16.gmra.mxu1 %vm505_vm1, %v1057_v16  ;;  %v3006_v43 = vld [vmem:[#allocation2 + $0x39] sm:$0xff]  ;;  %v1582_v45 = vmul.f32 %v4607_v29, %v1358_v30 }
  0xc7   : > { %v1008_v23 = vpack.c.bf16 %v980_v18, %v979_v15  ;;  %v584_v27 = vpop.f32.mrf.mxu0  ;;  %v4619_v52 = vmul.f32 %v3006_v43, %v4511_v0 }
  0xc8   : > { %v585_v28 = vadd.f32 %v4442_v19, %v584_v27  ;;  %v4644_v27 = vpop.permute.xlu0 %1458 }
  0xc9   : > { %3845 = vmatmul.msk.bf16.gmra.mxu2 %vm505_vm1, %v1008_v23  ;;  %6143 = vst [vmem:[#allocation7_spill] sm:$0xff] %v4619_v52 }
  0xca   : > { %v654_v31 = vmax.f32 %v585_v28, 0.0  ;;  %6147 = vst [vmem:[#allocation11_spill] sm:$0xff] %v4644_v27 }
  0xcb   : > { %v1359_v37 = vld [vmem:[#allocation2 + $0x41] sm:$0xff] }
  0xcc   : > { %v757_v40 = vld [vmem:[#allocation2 + $0x47] sm:$0xff]  ;;  %724 = vst.msk [vmem:[#allocation2 + $0x50] sm:$0xff] %vm505_vm1, %v654_v31  ;;  %v1583_v46 = vmul.f32 %v4609_v32, %v1359_v37  ;;  %v4646_v31 = vpop.permute.xlu1 %1463 }
  0xcd   : > { %v4615_v13 = vmul.f32 %v4588_v8, %v757_v40  ;;  %v3007_v47 = vld [vmem:[#allocation2 + $0x41] sm:$0xff]  ;;  %v981_v36 = vmul.f32 %v4628_v61, %v757_v40  ;;  %6148 = vst [vmem:[#allocation12_spill] sm:$0xff] %v4646_v31 }
  0xce   : > { %v1611_v50 = vpack.c.bf16 %v1583_v46, %v1582_v45  ;;  %v4622_v53 = vmul.f32 %v3007_v47, %v4513_v5  ;;  %v1030_v0 = vld [vmem:[#allocation2 + $0x48] sm:$0xff] }
  0xcf   : > { %v587_v54 = vpop.f32.mrf.mxu0 }
  0xd0   : > { %6144 = vst [vmem:[#allocation8_spill] sm:$0xff] %v4622_v53  ;;  %v588_v58 = vadd.f32 %v4442_v19, %v587_v54  ;;  %3862 = vmatmul.msk.bf16.gmra.mxu3 %vm505_vm1, %v1611_v50  ;;  %v4026_v50 = vld [vmem:[%s4173_s30 + $0x68] sm:$0xff] }
  0xd2   : > { %v655_v1 = vmax.f32 %v588_v58, 0.0  ;;  %3821 = vmatmul.msk.bf16.gmra.mxu0 %vm505_vm1, %v4025_v51  ;;  %v4657_v58 = vpop.permute.xlu2 %865 }
  0xd3   : > { %v1031_v6 = vld [vmem:[#allocation2 + $0x50] sm:$0xff]  ;;  %6149 = vst [vmem:[#allocation13_spill] sm:$0xff] %v4657_v58 }
  0xd4   : > { %v758_v9 = vld [vmem:[#allocation2 + $0x4f] sm:$0xff]  ;;  %725 = vst.msk [vmem:[#allocation2 + $0x58] sm:$0xff] %vm505_vm1, %v655_v1  ;;  %v1058_v5 = vpack.c.bf16 %v1031_v6, %v1030_v0  ;;  %v4660_v6 = vpop.permute.xlu0 %870 }
  0xd5   : > { %v982_v10 = vmul.f32 %v4631_v3, %v758_v9  ;;  %v4637_v14 = vmul.f32 %v4591_v25, %v758_v9  ;;  %v1360_v28 = vld [vmem:[#allocation2 + $0x49] sm:$0xff]  ;;  %6150 = vst [vmem:[#allocation14_spill] sm:$0xff] %v4660_v6 }
  0xd6   : > { %3830 = vmatmul.msk.bf16.gmra.mxu1 %vm505_vm1, %v1058_v5  ;;  %v1584_v43 = vmul.f32 %v4644_v27, %v1360_v28 }
  0xd7   : > { %v1009_v15 = vpack.c.bf16 %v982_v10, %v981_v36  ;;  %v589_v18 = vpop.f32.mrf.mxu0 }
  0xd8   : > { %v590_v23 = vadd.f32 %v4442_v19, %v589_v18 }
  0xd9   : > { %3846 = vmatmul.msk.bf16.gmra.mxu2 %vm505_vm1, %v1009_v15 }
  0xda   : > { %v656_v30 = vmax.f32 %v590_v23, 0.0 }
  0xdb   : > { %v1361_v37 = vld [vmem:[#allocation2 + $0x51] sm:$0xff] }
  0xdc   : > { %v759_v40 = vld [vmem:[#allocation2 + $0x57] sm:$0xff]  ;;  %726 = vst.msk [vmem:[#allocation2 + $0x60] sm:$0xff] %vm505_vm1, %v656_v30  ;;  %v1585_v45 = vmul.f32 %v4646_v31, %v1361_v37 }
  0xdd   : > { %v4652_v46 = vmul.f32 %v4628_v61, %v759_v40  ;;  %v2534_v0 = vld [vmem:[#allocation2 + $0x57] sm:$0xff]  ;;  %v983_v15 = vmul.f32 %v4657_v58, %v759_v40 }
  0xde   : > { %v1612_v47 = vpack.c.bf16 %v1585_v45, %v1584_v43  ;;  %v1032_v9 = vld [vmem:[#allocation2 + $0x58] sm:$0xff]  ;;  %v4669_v30 = vmul.f32 %v2534_v0, %v4588_v8  ;;  %v4681_v8 = vpop.permute.xlu1 %1468 }
  0xdf   : > { %v592_v51 = vpop.f32.mrf.mxu0  ;;  %6151 = vst [vmem:[#allocation15_spill] sm:$0xff] %v4681_v8 }
  0xe0   : > { %v593_v54 = vadd.f32 %v4442_v19, %v592_v51  ;;  %3863 = vmatmul.msk.bf16.gmra.mxu3 %vm505_vm1, %v1612_v47 }
  0xe2   : > { %v657_v1 = vmax.f32 %v593_v54, 0.0  ;;  %3822 = vmatmul.msk.bf16.gmra.mxu0 %vm505_vm1, %v4026_v50 }
  0xe3   : > { %v1033_v5 = vld [vmem:[#allocation2 + $0x60] sm:$0xff] }
  0xe4   : > { %v760_v36 = vld [vmem:[#allocation2 + $0x5f] sm:$0xff]  ;;  %727 = vst.msk [vmem:[#allocation2 + $0x68] sm:$0xff] %vm505_vm1, %v657_v1  ;;  %v1059_v10 = vpack.c.bf16 %v1033_v5, %v1032_v9  ;;  %v4683_v1 = vpop.permute.xlu2 %1473 }
  0xe5   : > { %v984_v18 = vmul.f32 %v4660_v6, %v760_v36  ;;  %v4666_v23 = vmul.f32 %v4631_v3, %v760_v36  ;;  %v2535_v28 = vld [vmem:[#allocation2 + $0x5f] sm:$0xff]  ;;  %6152 = vst [vmem:[#allocation16_spill] sm:$0xff] %v4683_v1 }
  0xe6   : > { %v4672_v37 = vmul.f32 %v2535_v28, %v4591_v25  ;;  %3831 = vmatmul.msk.bf16.gmra.mxu1 %vm505_vm1, %v1059_v10  ;;  %v1362_v51 = vld [vmem:[#allocation2 + $0x59] sm:$0xff]  ;;  %v4027_v28 = vld [vmem:[%s4173_s30 + $0x70] sm:$0xff] }
  0xe7   : > { %v1010_v43 = vpack.c.bf16 %v984_v18, %v983_v15  ;;  %v594_v47 = vpop.f32.mrf.mxu0  ;;  %v2282_v54 = vld [vmem:[#allocation2 + $0x59] sm:$0xff]  ;;  %v1586_v9 = vmul.f32 %v4681_v8, %v1362_v51 }
  0xe8   : > { %v595_v50 = vadd.f32 %v4442_v19, %v594_v47  ;;  %v4689_v10 = vmul.f32 %v2282_v54, %v4607_v29  ;;  %v4702_v54 = vpop.permute.xlu1 %880 }
  0xe9   : > { %3847 = vmatmul.msk.bf16.gmra.mxu2 %vm505_vm1, %v1010_v43  ;;  %6156 = vst [vmem:[#allocation20_spill] sm:$0xff] %v4702_v54 }
  0xea   : > { %v658_v25 = vmax.f32 %v595_v50, 0.0  ;;  %6153 = vst [vmem:[#allocation17_spill] sm:$0xff] %v4689_v10 }
  0xeb   : > { %v1363_v0 = vld [vmem:[#allocation2 + $0x61] sm:$0xff] }
  0xec   : > { %728 = vst.msk [vmem:[#allocation2 + $0x70] sm:$0xff] %vm505_vm1, %v658_v25  ;;  %v1587_v5 = vmul.f32 %v4683_v1, %v1363_v0  ;;  %v2283_v36 = vld [vmem:[#allocation2 + $0x61] sm:$0xff]  ;;  %v4699_v25 = vpop.permute.xlu0 %875 }
  0xed   : > { %v4692_v15 = vmul.f32 %v2283_v36, %v4609_v32  ;;  %v761_v51 = vld [vmem:[#allocation2 + $0x67] sm:$0xff]  ;;  %6155 = vst [vmem:[#allocation19_spill] sm:$0xff] %v4699_v25 }
  0xee   : > { %v1613_v18 = vpack.c.bf16 %v1587_v5, %v1586_v9  ;;  %v1034_v36 = vld [vmem:[#allocation2 + $0x68] sm:$0xff]  ;;  %v985_v5 = vmul.f32 %v4699_v25, %v761_v51 }
  0xef   : > { %6154 = vst [vmem:[#allocation18_spill] sm:$0xff] %v4692_v15  ;;  %v597_v43 = vpop.f32.mrf.mxu0 }
  0xf0   : > { %v598_v50 = vadd.f32 %v4442_v19, %v597_v43  ;;  %3864 = vmatmul.msk.bf16.gmra.mxu3 %vm505_vm1, %v1613_v18  ;;  %v4708_v18 = vmul.f32 %v4657_v58, %v761_v51  ;;  %v4721_v51 = vpop.permute.xlu2 %1478 }
  0xf1   : > { %6158 = vst [vmem:[#allocation22_spill] sm:$0xff] %v4721_v51 }
  0xf2   : > { %v659_v0 = vmax.f32 %v598_v50, 0.0  ;;  %3823 = vmatmul.msk.bf16.gmra.mxu0 %vm505_vm1, %v4027_v28 }
  0xf3   : > { %v1035_v60 = vld [vmem:[#allocation2 + $0x70] sm:$0xff] }
  0xf4   : > { %v762_v9 = vld [vmem:[#allocation2 + $0x6f] sm:$0xff]  ;;  %729 = vst.msk [vmem:[#allocation2 + $0x78] sm:$0xff] %vm505_vm1, %v659_v0  ;;  %v1060_v47 = vpack.c.bf16 %v1035_v60, %v1034_v36  ;;  %v4723_v44 = vpop.permute.xlu0 %1483  ;;  %v4028_v0 = vld [vmem:[%s4173_s30 + $0x78] sm:$0xff] }
  0xf5   : > { %v986_v43 = vmul.f32 %v4702_v54, %v762_v9  ;;  %v4711_v7 = vmul.f32 %v4660_v6, %v762_v9  ;;  %v2284_v50 = vld [vmem:[#allocation2 + $0x69] sm:$0xff]  ;;  %6159 = vst [vmem:[#allocation23_spill] sm:$0xff] %v4723_v44 }
  0xf6   : > { %v4714_v28 = vmul.f32 %v2284_v50, %v4644_v27  ;;  %3832 = vmatmul.msk.bf16.gmra.mxu1 %vm505_vm1, %v1060_v47  ;;  %v1364_v9 = vld [vmem:[#allocation2 + $0x69] sm:$0xff] }
  0xf7   : > { %v1011_v40 = vpack.c.bf16 %v986_v43, %v985_v5  ;;  %v599_v60 = vpop.f32.mrf.mxu0  ;;  %v1588_v47 = vmul.f32 %v4721_v51, %v1364_v9 }
  0xf8   : > { %6157 = vst [vmem:[#allocation21_spill] sm:$0xff] %v4714_v28  ;;  %v600_v36 = vadd.f32 %v4442_v19, %v599_v60 }
  0xf9   : > { %3848 = vmatmul.msk.bf16.gmra.mxu2 %vm505_vm1, %v1011_v40 }
  0xfa   : > { %v660_v2 = vmax.f32 %v600_v36, 0.0 }
  0xfb   : > { %v1365_v50 = vld [vmem:[#allocation2 + $0x71] sm:$0xff] }
  0xfc   : > { %730 = vst.msk [vmem:[#allocation2 + $0x80] sm:$0xff] %vm505_vm1, %v660_v2  ;;  %v1589_v5 = vmul.f32 %v4723_v44, %v1365_v50  ;;  %v2285_v43 = vld [vmem:[#allocation2 + $0x71] sm:$0xff]  ;;  %v4736_v2 = vpop.permute.xlu1 %885  ;;  %v4739_v50 = vpop.permute.xlu2 %890 }
  0xfd   : > { %v4729_v17 = vmul.f32 %v2285_v43, %v4646_v31  ;;  %v763_v16 = vld [vmem:[#allocation2 + $0x77] sm:$0xff]  ;;  %6161 = vst [vmem:[#allocation25_spill] sm:$0xff] %v4736_v2 }
  0xfe   : > { %v1614_v60 = vpack.c.bf16 %v1589_v5, %v1588_v47  ;;  %6162 = vst [vmem:[#allocation26_spill] sm:$0xff] %v4739_v50  ;;  %v1036_v43 = vld [vmem:[#allocation2 + $0x78] sm:$0xff]  ;;  %v987_v5 = vmul.f32 %v4736_v2, %v763_v16 }
  0xff   : > { %6160 = vst [vmem:[#allocation24_spill] sm:$0xff] %v4729_v17  ;;  %v602_v40 = vpop.f32.mrf.mxu0 }
 0x100   : > { %v603_v36 = vadd.f32 %v4442_v19, %v602_v40  ;;  %3865 = vmatmul.msk.bf16.gmra.mxu3 %vm505_vm1, %v1614_v60  ;;  %v3909_v60 = vld [vmem:[%s6043_s3 + $0x14] sm:$0xf] }
 0x101   : > { %v2405_v59 = vsel %vm554_vm0, %v3909_v60, 0 }
 0x102   : > { %v661_v9 = vmax.f32 %v603_v36, 0.0  ;;  %3824 = vmatmul.msk.bf16.gmra.mxu0 %vm505_vm1, %v4028_v0  ;;  %v3926_v0 = vld [vmem:[%s6043_s3 + $0x18] sm:$0xf]  ;;  %v4751_v36 = vmul.f32 %v4699_v25, %v763_v16  ;;  %2414 = vmatpush.bf16.msrb.mxu2 %v2405_v59  ;;  %v4763_v16 = vpop.permute.xlu0 %1488 }
 0x103   : > { %v1037_v24 = vld [vmem:[#allocation2 + $0x80] sm:$0xff]  ;;  %6163 = vst [vmem:[#allocation27_spill] sm:$0xff] %v4763_v16 }
 0x104   : > { %v764_v47 = vld [vmem:[#allocation2 + $0x7f] sm:$0xff]  ;;  %731 = vst.msk [vmem:[#allocation2 + $0x88] sm:$0xff] %vm505_vm1, %v661_v9  ;;  %v1061_v45 = vpack.c.bf16 %v1037_v24, %v1036_v43  ;;  %v2659_v24 = vsel %vm554_vm0, %v3926_v0, 0  ;;  %v4765_v15 = vpop.permute.xlu1 %1493 }
 0x105   : > { %v988_v40 = vmul.f32 %v4739_v50, %v764_v47  ;;  %v4754_v42 = vmul.f32 %v4702_v54, %v764_v47  ;;  %2668 = vmatpush.bf16.msrb.mxu3 %v2659_v24  ;;  %v1366_v47 = vld [vmem:[#allocation2 + $0x79] sm:$0xff]  ;;  %6164 = vst [vmem:[#allocation28_spill] sm:$0xff] %v4765_v15  ;;  %v1132_v24 = vpop.f32.mrf.mxu1 }
 0x106   : > { %3833 = vmatmul.msk.bf16.gmra.mxu1 %vm505_vm1, %v1061_v45  ;;  %v2286_v60 = vld [vmem:[#allocation2 + $0x79] sm:$0xff]  ;;  %v1590_v59 = vmul.f32 %v4763_v16, %v1366_v47 }
 0x107   : > { %v1012_v9 = vpack.c.bf16 %v988_v40, %v987_v5  ;;  %v604_v28 = vpop.f32.mrf.mxu0  ;;  %v4771_v40 = vmul.f32 %v2286_v60, %v4681_v8 }
 0x108   : > { %v605_v17 = vadd.f32 %v4442_v19, %v604_v28 }
 0x109   : > { %3849 = vmatmul.msk.bf16.gmra.mxu2 %vm505_vm1, %v1012_v9  ;;  %6165 = vst [vmem:[#allocation29_spill] sm:$0xff] %v4771_v40 }
 0x10a   : > { %v662_v10 = vmax.f32 %v605_v17, 0.0  ;;  %v4786_v62 = vpop.permute.xlu0 %900 }
 0x10b   : > { %v1367_v0 = vld [vmem:[#allocation2 + $0x81] sm:$0xff]  ;;  %6169 = vst [vmem:[#allocation32_spill] sm:$0xff] %v4786_v62 }
 0x10c   : > { %732 = vst.msk [vmem:[#allocation2 + $0x90] sm:$0xff] %vm505_vm1, %v662_v10  ;;  %v1591_v45 = vmul.f32 %v4765_v15, %v1367_v0  ;;  %v2287_v5 = vld [vmem:[#allocation2 + $0x81] sm:$0xff]  ;;  %v4780_v0 = vpop.permute.xlu2 %895  ;;  %v4800_v40 = vpop.permute.xlu1 %1498 }
 0x10d   : > { %v4774_v28 = vmul.f32 %v2287_v5, %v4683_v1  ;;  %v765_v47 = vld [vmem:[#allocation2 + $0x87] sm:$0xff]  ;;  %6167 = vst [vmem:[#allocation31_spill] sm:$0xff] %v4780_v0  ;;  %v6168_v5 = vpack.c.bf16 %v4498_v57, %v4477_v41 }
 0x10e   : > { %v1615_v17 = vpack.c.bf16 %v1591_v45, %v1590_v59  ;;  %v1038_v59 = vld [vmem:[#allocation2 + $0x88] sm:$0xff]  ;;  %v4792_v53 = vmul.f32 %v4736_v2, %v765_v47  ;;  %6170 = vst [vmem:[#allocation33_spill] sm:$0xff] %v4800_v40 }
 0x10f   : > { %6166 = vst [vmem:[#allocation30_spill] sm:$0xff] %v4774_v28  ;;  %v1272_v9 = vpop.f32.mrf.mxu2  ;;  %v607_v52 = vpop.f32.mrf.mxu0 }
 0x110   : > { %v1273_v43 = vadd.f32 %v1272_v9, %v1132_v24  ;;  %v608_v10 = vadd.f32 %v4442_v19, %v607_v52  ;;  %3866 = vmatmul.msk.bf16.gmra.mxu3 %vm505_vm1, %v1615_v17  ;;  %v989_v9 = vmul.f32 %v4780_v0, %v765_v47 }
 0x112   : > { %v663_v60 = vmax.f32 %v608_v10, 0.0  ;;  %3876 = vmatmul.msk.bf16.vlgmr.msrb.gmra.mxu0 %vm505_vm1, %v6168_v5 }
 0x113   : > { %v1039_v45 = vld [vmem:[#allocation2 + $0x90] sm:$0xff] }
 0x114   : > { %v766_v24 = vld [vmem:[#allocation2 + $0x8f] sm:$0xff]  ;;  %733 = vst.msk [vmem:[#allocation2 + $0x98] sm:$0xff] %vm505_vm1, %v663_v60  ;;  %v1062_v52 = vpack.c.bf16 %v1039_v45, %v1038_v59  ;;  %v4804_v28 = vpop.permute.xlu2 %1503 }
 0x115   : > { %v990_v17 = vmul.f32 %v4786_v62, %v766_v24  ;;  %v4795_v10 = vmul.f32 %v4739_v50, %v766_v24  ;;  %v1368_v59 = vld [vmem:[#allocation2 + $0x89] sm:$0xff]  ;;  %6171 = vst [vmem:[#allocation34_spill] sm:$0xff] %v4804_v28  ;;  %v1134_v24 = vpop.f32.mrf.mxu1  ;;  %v4817_v50 = vpop.permute.xlu0 %905 }
 0x116   : > { %3834 = vmatmul.msk.bf16.gmra.mxu1 %vm505_vm1, %v1062_v52  ;;  %v2288_v47 = vld [vmem:[#allocation2 + $0x89] sm:$0xff]  ;;  %6174 = vst [vmem:[#allocation37_spill] sm:$0xff] %v4817_v50 }
 0x117   : > { %v1013_v41 = vpack.c.bf16 %v990_v17, %v989_v9  ;;  %v609_v5 = vpop.f32.mrf.mxu0  ;;  %v1592_v9 = vmul.f32 %v4800_v40, %v1368_v59  ;;  %v4810_v57 = vmul.f32 %v2288_v47, %v4721_v51  ;;  %v1274_v25 = vpop.f32.mrf.mxu2 }
 0x118   : > { %v610_v60 = vadd.f32 %v4442_v19, %v609_v5 }
 0x119   : > { %3850 = vmatmul.msk.bf16.gmra.mxu2 %vm505_vm1, %v1013_v41  ;;  %6172 = vst [vmem:[#allocation35_spill] sm:$0xff] %v4810_v57 }
 0x11a   : > { %v664_v45 = vmax.f32 %v610_v60, 0.0 }
 0x11b   : > { %v1369_v63 = vld [vmem:[#allocation2 + $0x91] sm:$0xff] }
 0x11c   : > { %734 = vst.msk [vmem:[#allocation2 + $0xa0] sm:$0xff] %vm505_vm1, %v664_v45  ;;  %v1593_v52 = vmul.f32 %v4804_v28, %v1369_v63  ;;  %v2289_v17 = vld [vmem:[#allocation2 + $0x91] sm:$0xff]  ;;  %v4821_v63 = vpop.permute.xlu1 %910 }
 0x11d   : > { %v4813_v5 = vmul.f32 %v2289_v17, %v4723_v44  ;;  %v767_v59 = vld [vmem:[#allocation2 + $0x97] sm:$0xff]  ;;  %6175 = vst [vmem:[#allocation38_spill] sm:$0xff] %v4821_v63  ;;  %v6176_v17 = vpack.c.bf16 %v4547_v35, %v4544_v34 }
 0x11e   : > { %v1616_v41 = vpack.c.bf16 %v1593_v52, %v1592_v9  ;;  %v1040_v54 = vld [vmem:[#allocation2 + $0x98] sm:$0xff] }
 0x11f   : > { %6173 = vst [vmem:[#allocation36_spill] sm:$0xff] %v4813_v5  ;;  %v612_v60 = vpop.f32.mrf.mxu0  ;;  %v991_v5 = vmul.f32 %v4817_v50, %v767_v59 }
 0x120   : > { %v613_v45 = vadd.f32 %v4442_v19, %v612_v60  ;;  %3867 = vmatmul.msk.bf16.gmra.mxu3 %vm505_vm1, %v1616_v41 }
 0x122   : > { %v665_v47 = vmax.f32 %v613_v45, 0.0  ;;  %3877 = vmatmul.msk.bf16.gmra.mxu0 %vm505_vm1, %v6176_v17  ;;  %v4833_v45 = vmul.f32 %v4780_v0, %v767_v59 }
 0x123   : > { %v1137_v9 = vpop.f32.mrf.mxu1  ;;  %v1686_v52 = vpop.f32.mrf.mxu3  ;;  %v1041_v2 = vld [vmem:[#allocation2 + $0xa0] sm:$0xff] }
 0x124   : > { %v768_v57 = vld [vmem:[#allocation2 + $0x9f] sm:$0xff]  ;;  %735 = vst.msk [vmem:[#allocation2 + $0xa8] sm:$0xff] %vm505_vm1, %v665_v47  ;;  %v4828_v60 = vadd.f32 %v1686_v52, %v1273_v43  ;;  %v1063_v41 = vpack.c.bf16 %v1041_v2, %v1040_v54  ;;  %v4841_v43 = vpop.permute.xlu2 %1508  ;;  %v4845_v52 = vpop.permute.xlu0 %1513 }
 0x125   : > { %v992_v51 = vmul.f32 %v4821_v63, %v768_v57  ;;  %v4836_v34 = vmul.f32 %v4786_v62, %v768_v57  ;;  %6177 = vst [vmem:[#allocation39_spill] sm:$0xff] %v4841_v43  ;;  %v1370_v2 = vld [vmem:[#allocation2 + $0x99] sm:$0xff]  ;;  %v1275_v57 = vadd.f32 %v1274_v25, %v1134_v24 }
 0x126   : > { %3835 = vmatmul.msk.bf16.gmra.mxu1 %vm505_vm1, %v1063_v41  ;;  %6178 = vst [vmem:[#allocation40_spill] sm:$0xff] %v4845_v52  ;;  %v2290_v0 = vld [vmem:[#allocation2 + $0x99] sm:$0xff]  ;;  %v1594_v47 = vmul.f32 %v4841_v43, %v1370_v2 }
 0x127   : > { %v1014_v35 = vpack.c.bf16 %v992_v51, %v991_v5  ;;  %v614_v17 = vpop.f32.mrf.mxu0 }
 0x128   : > { %v615_v54 = vadd.f32 %v4442_v19, %v614_v17 }
 0x129   : > { %3851 = vmatmul.msk.bf16.gmra.mxu2 %vm505_vm1, %v1014_v35  ;;  %v4853_v35 = vmul.f32 %v2290_v0, %v4763_v16  ;;  %v6183_v0 = vpack.c.bf16 %v4600_v21, %v4597_v20 }
 0x12a   : > { %v666_v59 = vmax.f32 %v615_v54, 0.0 }
 0x12b   : > { %v1139_v62 = vpop.f32.mrf.mxu1  ;;  %v1371_v41 = vld [vmem:[#allocation2 + $0xa1] sm:$0xff]  ;;  %v1688_v5 = vpop.f32.mrf.mxu3  ;;  %6179 = vst [vmem:[#allocation41_spill] sm:$0xff] %v4853_v35 }
 0x12c   : > { %v1277_v44 = vpop.f32.mrf.mxu2  ;;  %736 = vst.msk [vmem:[#allocation2 + $0xb0] sm:$0xff] %vm505_vm1, %v666_v59  ;;  %v1595_v58 = vmul.f32 %v4845_v52, %v1371_v41  ;;  %v2291_v17 = vld [vmem:[#allocation2 + $0xa1] sm:$0xff]  ;;  %v4850_v6 = vadd.f32 %v1688_v5, %v1275_v57  ;;  %v4864_v57 = vpop.permute.xlu2 %920 }
 0x12d   : > { %v1278_v51 = vadd.f32 %v1277_v44, %v1137_v9  ;;  %v4856_v54 = vmul.f32 %v2291_v17, %v4765_v15  ;;  %v4860_v44 = vpop.permute.xlu1 %915  ;;  %v769_v2 = vld [vmem:[#allocation2 + $0xa7] sm:$0xff]  ;;  %6182 = vst [vmem:[#allocation44_spill] sm:$0xff] %v4864_v57 }
 0x12e   : > { %v1617_v25 = vpack.c.bf16 %v1595_v58, %v1594_v47  ;;  %6181 = vst [vmem:[#allocation43_spill] sm:$0xff] %v4860_v44  ;;  %v1042_v5 = vld [vmem:[#allocation2 + $0xa8] sm:$0xff]  ;;  %v4876_v20 = vmul.f32 %v4817_v50, %v769_v2 }
 0x12f   : > { %6180 = vst [vmem:[#allocation42_spill] sm:$0xff] %v4856_v54  ;;  %v617_v24 = vpop.f32.mrf.mxu0 }
 0x130   : > { %v618_v9 = vadd.f32 %v4442_v19, %v617_v24  ;;  %3868 = vmatmul.msk.bf16.gmra.mxu3 %vm505_vm1, %v1617_v25  ;;  %v993_v25 = vmul.f32 %v4860_v44, %v769_v2 }
 0x132   : > { %v667_v41 = vmax.f32 %v618_v9, 0.0  ;;  %3878 = vmatmul.msk.bf16.gmra.mxu0 %vm505_vm1, %v6183_v0 }
 0x133   : > { %v1142_v58 = vpop.f32.mrf.mxu1  ;;  %v1043_v17 = vld [vmem:[#allocation2 + $0xb0] sm:$0xff]  ;;  %v1691_v24 = vpop.f32.mrf.mxu3 }
 0x134   : > { %v1279_v47 = vpop.f32.mrf.mxu2  ;;  %v770_v59 = vld [vmem:[#allocation2 + $0xaf] sm:$0xff]  ;;  %737 = vst.msk [vmem:[#allocation2 + $0xb8] sm:$0xff] %vm505_vm1, %v667_v41  ;;  %v1064_v54 = vpack.c.bf16 %v1043_v17, %v1042_v5  ;;  %v4873_v9 = vadd.f32 %v1691_v24, %v1278_v51  ;;  %v4884_v41 = vpop.permute.xlu0 %1518 }
 0x135   : > { %v1280_v35 = vadd.f32 %v1279_v47, %v1139_v62  ;;  %v994_v16 = vmul.f32 %v4864_v57, %v770_v59  ;;  %v4879_v21 = vmul.f32 %v4821_v63, %v770_v59  ;;  %6184 = vst [vmem:[#allocation45_spill] sm:$0xff] %v4884_v41  ;;  %v1372_v51 = vld [vmem:[#allocation2 + $0xa9] sm:$0xff]  ;;  %v4888_v5 = vpop.permute.xlu1 %1523 }
 0x136   : > { %3836 = vmatmul.msk.bf16.gmra.mxu1 %vm505_vm1, %v1064_v54  ;;  %6185 = vst [vmem:[#allocation46_spill] sm:$0xff] %v4888_v5  ;;  %v2292_v17 = vld [vmem:[#allocation2 + $0xa9] sm:$0xff] }
 0x137   : > { %v1015_v0 = vpack.c.bf16 %v994_v16, %v993_v25  ;;  %v619_v15 = vpop.f32.mrf.mxu0  ;;  %v1596_v25 = vmul.f32 %v4884_v41, %v1372_v51 }
 0x138   : > { %v620_v47 = vadd.f32 %v4442_v19, %v619_v15 }
 0x139   : > { %3852 = vmatmul.msk.bf16.gmra.mxu2 %vm505_vm1, %v1015_v0  ;;  %v4896_v0 = vmul.f32 %v2292_v17, %v4800_v40  ;;  %v6190_v17 = vpack.c.bf16 %v4637_v14, %v4615_v13 }
 0x13a   : > { %v668_v2 = vmax.f32 %v620_v47, 0.0 }
 0x13b   : > { %v1144_v59 = vpop.f32.mrf.mxu1  ;;  %v1373_v50 = vld [vmem:[#allocation2 + $0xb1] sm:$0xff]  ;;  %v1693_v54 = vpop.f32.mrf.mxu3  ;;  %6186 = vst [vmem:[#allocation47_spill] sm:$0xff] %v4896_v0 }
 0x13c   : > { %v1282_v24 = vpop.f32.mrf.mxu2  ;;  %738 = vst.msk [vmem:[#allocation2 + $0xc0] sm:$0xff] %vm505_vm1, %v668_v2  ;;  %v1597_v62 = vmul.f32 %v4888_v5, %v1373_v50  ;;  %v2293_v63 = vld [vmem:[#allocation2 + $0xb1] sm:$0xff]  ;;  %v4893_v15 = vadd.f32 %v1693_v54, %v1280_v35  ;;  %v4907_v35 = vpop.permute.xlu0 %930 }
 0x13d   : > { %v1283_v16 = vadd.f32 %v1282_v24, %v1142_v58  ;;  %v4899_v47 = vmul.f32 %v2293_v63, %v4804_v28  ;;  %v4903_v58 = vpop.permute.xlu2 %925  ;;  %v771_v50 = vld [vmem:[#allocation2 + $0xb7] sm:$0xff]  ;;  %6189 = vst [vmem:[#allocation50_spill] sm:$0xff] %v4907_v35 }
 0x13e   : > { %v1618_v8 = vpack.c.bf16 %v1597_v62, %v1596_v25  ;;  %6188 = vst [vmem:[#allocation49_spill] sm:$0xff] %v4903_v58  ;;  %v1044_v54 = vld [vmem:[#allocation2 + $0xb8] sm:$0xff]  ;;  %v4919_v13 = vmul.f32 %v4860_v44, %v771_v50 }
 0x13f   : > { %6187 = vst [vmem:[#allocation48_spill] sm:$0xff] %v4899_v47  ;;  %v622_v1 = vpop.f32.mrf.mxu0 }
 0x140   : > { %v623_v51 = vadd.f32 %v4442_v19, %v622_v1  ;;  %3869 = vmatmul.msk.bf16.gmra.mxu3 %vm505_vm1, %v1618_v8  ;;  %v995_v8 = vmul.f32 %v4903_v58, %v771_v50 }
 0x142   : > { %v669_v24 = vmax.f32 %v623_v51, 0.0  ;;  %3879 = vmatmul.msk.bf16.gmra.mxu0 %vm505_vm1, %v6190_v17 }
 0x143   : > { %v1147_v63 = vpop.f32.mrf.mxu1  ;;  %v1045_v25 = vld [vmem:[#allocation2 + $0xc0] sm:$0xff]  ;;  %v1696_v1 = vpop.f32.mrf.mxu3 }
 0x144   : > { %v1284_v62 = vpop.f32.mrf.mxu2  ;;  %v772_v2 = vld [vmem:[#allocation2 + $0xbf] sm:$0xff]  ;;  %739 = vst.msk [vmem:[#allocation2 + $0xc8] sm:$0xff] %vm505_vm1, %v669_v24  ;;  %v1065_v47 = vpack.c.bf16 %v1045_v25, %v1044_v54  ;;  %v4916_v51 = vadd.f32 %v1696_v1, %v1283_v16  ;;  %v4927_v24 = vpop.permute.xlu1 %1528 }
 0x145   : > { %v1285_v0 = vadd.f32 %v1284_v62, %v1144_v59  ;;  %v996_v40 = vmul.f32 %v4907_v35, %v772_v2  ;;  %v4922_v14 = vmul.f32 %v4864_v57, %v772_v2  ;;  %6191 = vst [vmem:[#allocation51_spill] sm:$0xff] %v4927_v24  ;;  %v1374_v16 = vld [vmem:[#allocation2 + $0xb9] sm:$0xff]  ;;  %v4931_v54 = vpop.permute.xlu2 %1533 }
 0x146   : > { %3837 = vmatmul.msk.bf16.gmra.mxu1 %vm505_vm1, %v1065_v47  ;;  %6192 = vst [vmem:[#allocation52_spill] sm:$0xff] %v4931_v54  ;;  %v2294_v25 = vld [vmem:[#allocation2 + $0xb9] sm:$0xff] }
 0x147   : > { %v1016_v17 = vpack.c.bf16 %v996_v40, %v995_v8  ;;  %v624_v28 = vpop.f32.mrf.mxu0  ;;  %v1598_v8 = vmul.f32 %v4927_v24, %v1374_v16 }
 0x148   : > { %v625_v62 = vadd.f32 %v4442_v19, %v624_v28 }
 0x149   : > { %3853 = vmatmul.msk.bf16.gmra.mxu2 %vm505_vm1, %v1016_v17  ;;  %v4941_v17 = vmul.f32 %v2294_v25, %v4841_v43 }
 0x14a   : > { %v670_v50 = vmax.f32 %v625_v62, 0.0 }
 0x14b   : > { %v1149_v2 = vpop.f32.mrf.mxu1  ;;  %v1375_v44 = vld [vmem:[#allocation2 + $0xc1] sm:$0xff]  ;;  %v1698_v47 = vpop.f32.mrf.mxu3  ;;  %6194 = vst [vmem:[#allocation54_spill] sm:$0xff] %v4941_v17 }
 0x14c   : > { %v1287_v1 = vpop.f32.mrf.mxu2  ;;  %740 = vst.msk [vmem:[#allocation2 + $0xd0] sm:$0xff] %vm505_vm1, %v670_v50  ;;  %v1599_v59 = vmul.f32 %v4931_v54, %v1375_v44  ;;  %v4936_v57 = vld [vmem:[#allocation2 + $0xc1] sm:$0xff]  ;;  %v4938_v28 = vadd.f32 %v1698_v47, %v1285_v0  ;;  %v4949_v50 = vpop.permute.xlu0 %935 }
 0x14d   : > { %v1288_v40 = vadd.f32 %v1287_v1, %v1147_v63  ;;  %6193 = vst [vmem:[#allocation53_spill] sm:$0xff] %v4936_v57  ;;  %v4945_v62 = vmul.f32 %v4936_v57, %v4845_v52  ;;  %v773_v0 = vld [vmem:[#allocation2 + $0xc7] sm:$0xff]  ;;  %v4953_v16 = vpop.permute.xlu1 %940  ;;  %v6198_v1 = vpack.c.bf16 %v4666_v23, %v4652_v46 }
 0x14e   : > { %v1619_v61 = vpack.c.bf16 %v1599_v59, %v1598_v8  ;;  %6196 = vst [vmem:[#allocation56_spill] sm:$0xff] %v4949_v50  ;;  %v1046_v8 = vld [vmem:[#allocation2 + $0xc8] sm:$0xff]  ;;  %v4965_v46 = vmul.f32 %v4903_v58, %v773_v0 }
 0x14f   : > { %6195 = vst [vmem:[#allocation55_spill] sm:$0xff] %v4945_v62  ;;  %v627_v3 = vpop.f32.mrf.mxu0 }
 0x150   : > { %v628_v44 = vadd.f32 %v4442_v19, %v627_v3  ;;  %3870 = vmatmul.msk.bf16.gmra.mxu3 %vm505_vm1, %v1619_v61  ;;  %6197 = vst [vmem:[#allocation57_spill] sm:$0xff] %v4953_v16  ;;  %v997_v61 = vmul.f32 %v4949_v50, %v773_v0 }
 0x152   : > { %v671_v25 = vmax.f32 %v628_v44, 0.0  ;;  %3880 = vmatmul.msk.bf16.gmra.mxu0 %vm505_vm1, %v6198_v1 }
 0x153   : > { %v1152_v59 = vpop.f32.mrf.mxu1  ;;  %v1047_v57 = vld [vmem:[#allocation2 + $0xd0] sm:$0xff]  ;;  %v1701_v19 = vpop.f32.mrf.mxu3 }
 0x154   : > { %v1289_v47 = vpop.f32.mrf.mxu2  ;;  %v774_v63 = vld [vmem:[#allocation2 + $0xcf] sm:$0xff]  ;;  %741 = vst.msk [vmem:[#allocation2 + $0xd8] sm:$0xff] %vm505_vm1, %v671_v25  ;;  %v1066_v3 = vpack.c.bf16 %v1047_v57, %v1046_v8  ;;  %v4962_v44 = vadd.f32 %v1701_v19, %v1288_v40  ;;  %v4973_v57 = vpop.permute.xlu2 %1538  ;;  %v4978_v40 = vld [vmem:[%s6042_s2] ss:$0 sm:$0xff] }
 0x155   : > { %v1290_v17 = vadd.f32 %v1289_v47, %v1149_v2  ;;  %v998_v62 = vmul.f32 %v4953_v16, %v774_v63  ;;  %v4968_v23 = vmul.f32 %v4907_v35, %v774_v63  ;;  %6199 = vst [vmem:[#allocation58_spill] sm:$0xff] %v4973_v57  ;;  %v1376_v63 = vld [vmem:[#allocation2 + $0xc9] sm:$0xff]  ;;  %v4982_v25 = vpop.permute.xlu0 %1543 }
 0x156   : > { %3838 = vmatmul.msk.bf16.gmra.mxu1 %vm505_vm1, %v1066_v3  ;;  %6200 = vst [vmem:[#allocation59_spill] sm:$0xff] %v4982_v25  ;;  %v1600_v58 = vmul.f32 %v4973_v57, %v1376_v63  ;;  %v5003_v63 = vpop.permute.xlu1 %945 }
 0x157   : > { %v1017_v1 = vpack.c.bf16 %v998_v62, %v997_v61  ;;  %v629_v43 = vpop.f32.mrf.mxu0  ;;  %v4984_v62 = vld [vmem:[#allocation2 + $0xc9] sm:$0xff]  ;;  %6205 = vst [vmem:[#allocation64_spill] sm:$0xff] %v5003_v63 }
 0x158   : > { %v630_v0 = vadd.f32 %v4978_v40, %v629_v43  ;;  %6201 = vst [vmem:[#allocation60_spill] sm:$0xff] %v4984_v62 }
 0x159   : > { %3854 = vmatmul.msk.bf16.gmra.mxu2 %vm505_vm1, %v1017_v1 }
 0x15a   : > { %v672_v47 = vmax.f32 %v630_v0, 0.0  ;;  %v4995_v0 = vmul.f32 %v4984_v62, %v4884_v41  ;;  %v6207_v62 = vpack.c.bf16 %v4711_v7, %v4708_v18 }
 0x15b   : > { %v1154_v8 = vpop.f32.mrf.mxu1  ;;  %v1377_v3 = vld [vmem:[#allocation2 + $0xd1] sm:$0xff]  ;;  %v1703_v2 = vpop.f32.mrf.mxu3 }
 0x15c   : > { %v1292_v19 = vpop.f32.mrf.mxu2  ;;  %742 = vst.msk [vmem:[#allocation2 + $0xe0] sm:$0xff] %vm505_vm1, %v672_v47  ;;  %v1601_v35 = vmul.f32 %v4982_v25, %v1377_v3  ;;  %v4989_v43 = vld [vmem:[#allocation2 + $0xd1] sm:$0xff]  ;;  %v4991_v1 = vadd.f32 %v1703_v2, %v1290_v17  ;;  %v5007_v2 = vpop.permute.xlu2 %950 }
 0x15d   : > { %v1293_v61 = vadd.f32 %v1292_v19, %v1152_v59  ;;  %6202 = vst [vmem:[#allocation61_spill] sm:$0xff] %v4989_v43  ;;  %v4999_v52 = vmul.f32 %v4989_v43, %v4888_v5  ;;  %v775_v17 = vld [vmem:[#allocation2 + $0xd7] sm:$0xff] }
 0x15e   : > { %6203 = vst [vmem:[#allocation62_spill] sm:$0xff] %v4995_v0  ;;  %v1620_v27 = vpack.c.bf16 %v1601_v35, %v1600_v58  ;;  %v1048_v43 = vld [vmem:[#allocation2 + $0xd8] sm:$0xff]  ;;  %v5019_v7 = vmul.f32 %v4949_v50, %v775_v17 }
 0x15f   : > { %6204 = vst [vmem:[#allocation63_spill] sm:$0xff] %v4999_v52  ;;  %v632_v47 = vpop.f32.mrf.mxu0 }
 0x160   : > { %v633_v19 = vadd.f32 %v4978_v40, %v632_v47  ;;  %3871 = vmatmul.msk.bf16.gmra.mxu3 %vm505_vm1, %v1620_v27  ;;  %6206 = vst [vmem:[#allocation65_spill] sm:$0xff] %v5007_v2  ;;  %v999_v27 = vmul.f32 %v5003_v63, %v775_v17 }
 0x161   : > { %6208 = vst [vmem:[#allocation66_spill] sm:$0xff] %v5019_v7 }
 0x162   : > { %v673_v3 = vmax.f32 %v633_v19, 0.0  ;;  %3881 = vmatmul.msk.bf16.gmra.mxu0 %vm505_vm1, %v6207_v62 }
 0x163   : > { %v1157_v58 = vpop.f32.mrf.mxu1  ;;  %v1049_v41 = vld [vmem:[#allocation2 + $0xe0] sm:$0xff]  ;;  %v1706_v47 = vpop.f32.mrf.mxu3 }
 0x164   : > { %v1294_v35 = vpop.f32.mrf.mxu2  ;;  %v776_v59 = vld [vmem:[#allocation2 + $0xdf] sm:$0xff]  ;;  %743 = vst.msk [vmem:[#allocation2 + $0xe8] sm:$0xff] %vm505_vm1, %v673_v3  ;;  %v1067_v52 = vpack.c.bf16 %v1049_v41, %v1048_v43  ;;  %v5016_v19 = vadd.f32 %v1706_v47, %v1293_v61  ;;  %v5027_v41 = vpop.permute.xlu0 %1548 }
 0x165   : > { %v1295_v0 = vadd.f32 %v1294_v35, %v1154_v8  ;;  %v1000_v5 = vmul.f32 %v5007_v2, %v776_v59  ;;  %v5022_v18 = vmul.f32 %v4953_v16, %v776_v59  ;;  %v1378_v61 = vld [vmem:[#allocation2 + $0xd9] sm:$0xff]  ;;  %v5031_v3 = vpop.permute.xlu1 %1553 }
 0x166   : > { %3839 = vmatmul.msk.bf16.gmra.mxu1 %vm505_vm1, %v1067_v52  ;;  %v5033_v35 = vld [vmem:[#allocation2 + $0xd9] sm:$0xff]  ;;  %v1602_v8 = vmul.f32 %v5027_v41, %v1378_v61  ;;  %v5052_v61 = vpop.permute.xlu2 %955 }
 0x167   : > { %v1018_v62 = vpack.c.bf16 %v1000_v5, %v999_v27  ;;  %v634_v31 = vpop.f32.mrf.mxu0  ;;  %6209 = vst [vmem:[#allocation67_spill] sm:$0xff] %v5033_v35 }
 0x168   : > { %v635_v43 = vadd.f32 %v4978_v40, %v634_v31 }
 0x169   : > { %3855 = vmatmul.msk.bf16.gmra.mxu2 %vm505_vm1, %v1018_v62 }
 0x16a   : > { %v674_v17 = vmax.f32 %v635_v43, 0.0  ;;  %v5044_v43 = vmul.f32 %v5033_v35, %v4927_v24  ;;  %v6213_v35 = vpack.c.bf16 %v4754_v42, %v4751_v36  ;;  %v3943_v42 = vld [vmem:[%s6043_s3 + $0x1c] sm:$0xf] }
 0x16b   : > { %v1159_v59 = vpop.f32.mrf.mxu1  ;;  %v1379_v52 = vld [vmem:[#allocation2 + $0xe1] sm:$0xff]  ;;  %v1708_v27 = vpop.f32.mrf.mxu3 }
 0x16c   : > { %v1297_v47 = vpop.f32.mrf.mxu2  ;;  %744 = vst.msk [vmem:[#allocation2 + $0xf0] sm:$0xff] %vm505_vm1, %v674_v17  ;;  %v1603_v50 = vmul.f32 %v5031_v3, %v1379_v52  ;;  %v5038_v31 = vld [vmem:[#allocation2 + $0xe1] sm:$0xff]  ;;  %v5040_v62 = vadd.f32 %v1708_v27, %v1295_v0  ;;  %v5056_v52 = vpop.permute.xlu0 %960 }
 0x16d   : > { %v1298_v5 = vadd.f32 %v1297_v47, %v1157_v58  ;;  %6210 = vst [vmem:[#allocation68_spill] sm:$0xff] %v5038_v31  ;;  %v5048_v16 = vmul.f32 %v5038_v31, %v4931_v54  ;;  %v777_v0 = vld [vmem:[#allocation2 + $0xe7] sm:$0xff] }
 0x16e   : > { %6211 = vst [vmem:[#allocation69_spill] sm:$0xff] %v5044_v43  ;;  %v1621_v7 = vpack.c.bf16 %v1603_v50, %v1602_v8  ;;  %v1050_v31 = vld [vmem:[#allocation2 + $0xe8] sm:$0xff]  ;;  %v5071_v36 = vmul.f32 %v5003_v63, %v777_v0 }
 0x16f   : > { %6212 = vst [vmem:[#allocation70_spill] sm:$0xff] %v5048_v16  ;;  %v637_v17 = vpop.f32.mrf.mxu0 }
 0x170   : > { %v638_v47 = vadd.f32 %v4978_v40, %v637_v17  ;;  %3872 = vmatmul.msk.bf16.gmra.mxu3 %vm505_vm1, %v1621_v7  ;;  %v1001_v7 = vmul.f32 %v5052_v61, %v777_v0  ;;  %6214 = vst [vmem:[#allocation71_spill] sm:$0xff] %v5071_v36 }
 0x172   : > { %v675_v27 = vmax.f32 %v638_v47, 0.0  ;;  %3882 = vmatmul.msk.bf16.gmra.mxu0 %vm505_vm1, %v6213_v35 }
 0x173   : > { %v1162_v50 = vpop.f32.mrf.mxu1  ;;  %v1051_v24 = vld [vmem:[#allocation2 + $0xf0] sm:$0xff]  ;;  %v1711_v17 = vpop.f32.mrf.mxu3 }
 0x174   : > { %v1299_v8 = vpop.f32.mrf.mxu2  ;;  %v778_v58 = vld [vmem:[#allocation2 + $0xef] sm:$0xff]  ;;  %745 = vst.msk [vmem:[#allocation2 + $0xf8] sm:$0xff] %vm505_vm1, %v675_v27  ;;  %v1068_v16 = vpack.c.bf16 %v1051_v24, %v1050_v31  ;;  %v5065_v47 = vadd.f32 %v1711_v17, %v1298_v5  ;;  %v2881_v24 = vsel %vm554_vm0, %v3943_v42, 0  ;;  %v3960_v5 = vld [vmem:[%s6043_s3 + $0x20] sm:$0xf] }
 0x175   : > { %v1300_v43 = vadd.f32 %v1299_v8, %v1159_v59  ;;  %v1002_v54 = vmul.f32 %v5056_v52, %v778_v58  ;;  %v5074_v35 = vmul.f32 %v5007_v2, %v778_v58  ;;  %2890 = vmatpush.bf16.msra.mxu0 %v2881_v24  ;;  %v3135_v27 = vsel %vm554_vm0, %v3960_v5, 0  ;;  %v5084_v8 = vpop.permute.xlu1 %1558 }
 0x176   : > { %3840 = vmatmul.msk.bf16.gmra.mxu1 %vm505_vm1, %v1068_v16  ;;  %v5088_v16 = vpop.permute.xlu2 %1563 }
 0x177   : > { %6215 = vst [vmem:[#allocation72_spill] sm:$0xff] %v5074_v35  ;;  %v1019_v59 = vpack.c.bf16 %v1002_v54, %v1001_v7  ;;  %v639_v31 = vpop.f32.mrf.mxu0  ;;  %3144 = vmatpush.bf16.msra.mxu1 %v3135_v27  ;;  %v1380_v54 = vld [vmem:[#allocation2 + $0xe9] sm:$0xff] }
 0x178   : > { %v640_v58 = vadd.f32 %v4978_v40, %v639_v31  ;;  %v5090_v7 = vld [vmem:[#allocation2 + $0xe9] sm:$0xff]  ;;  %v1604_v2 = vmul.f32 %v5084_v8, %v1380_v54  ;;  %v5109_v54 = vpop.permute.xlu0 %965 }
 0x179   : > { %3856 = vmatmul.msk.bf16.gmra.mxu2 %vm505_vm1, %v1019_v59  ;;  %6216 = vst [vmem:[#allocation73_spill] sm:$0xff] %v5090_v7  ;;  %v5101_v27 = vmul.f32 %v5090_v7, %v4973_v57  ;;  %v6223_v7 = vpack.c.bf16 %v4795_v10, %v4792_v53 }
 0x17a   : > { %v676_v17 = vmax.f32 %v640_v58, 0.0  ;;  %6221 = vst [vmem:[#allocation78_spill] sm:$0xff] %v5109_v54 }
 0x17b   : > { %v1164_v42 = vpop.f32.mrf.mxu1  ;;  %v1381_v63 = vld [vmem:[#allocation2 + $0xf1] sm:$0xff]  ;;  %v1713_v0 = vpop.f32.mrf.mxu3  ;;  %6219 = vst [vmem:[#allocation76_spill] sm:$0xff] %v5101_v27 }
 0x17c   : > { %v1302_v24 = vpop.f32.mrf.mxu2  ;;  %746 = vst.msk [vmem:[#allocation2 + $0x100] sm:$0xff] %vm505_vm1, %v676_v17  ;;  %v1605_v31 = vmul.f32 %v5088_v16, %v1381_v63  ;;  %v5095_v36 = vld [vmem:[#allocation2 + $0xf1] sm:$0xff]  ;;  %v5097_v59 = vadd.f32 %v1713_v0, %v1300_v43 }
 0x17d   : > { %v1303_v5 = vadd.f32 %v1302_v24, %v1162_v50  ;;  %6217 = vst [vmem:[#allocation74_spill] sm:$0xff] %v5095_v36  ;;  %v5105_v58 = vmul.f32 %v5095_v36, %v4982_v25  ;;  %v779_v43 = vld [vmem:[#allocation2 + $0xf7] sm:$0xff]  ;;  %v5113_v0 = vpop.permute.xlu1 %970 }
 0x17e   : > { %6218 = vst [vmem:[#allocation75_spill] sm:$0xff] %v5097_v59  ;;  %v1622_v35 = vpack.c.bf16 %v1605_v31, %v1604_v2  ;;  %v1052_v36 = vld [vmem:[#allocation2 + $0xf8] sm:$0xff]  ;;  %v5125_v53 = vmul.f32 %v5052_v61, %v779_v43 }
 0x17f   : > { %6220 = vst [vmem:[#allocation77_spill] sm:$0xff] %v5105_v58  ;;  %v642_v17 = vpop.f32.mrf.mxu0 }
 0x180   : > { %v643_v63 = vadd.f32 %v4978_v40, %v642_v17  ;;  %3873 = vmatmul.msk.bf16.gmra.mxu3 %vm505_vm1, %v1622_v35  ;;  %6222 = vst [vmem:[#allocation79_spill] sm:$0xff] %v5113_v0  ;;  %v1003_v35 = vmul.f32 %v5109_v54, %v779_v43 }
 0x181   : > { %6224 = vst [vmem:[#allocation80_spill] sm:$0xff] %v5125_v53 }
 0x182   : > { %v677_v24 = vmax.f32 %v643_v63, 0.0  ;;  %3883 = vmatmul.msk.bf16.gmra.mxu0 %vm505_vm1, %v6223_v7 }
 0x183   : > { %v1167_v2 = vpop.f32.mrf.mxu1  ;;  %v1053_v57 = vld [vmem:[#allocation2 + $0x100] sm:$0xff]  ;;  %v1716_v17 = vpop.f32.mrf.mxu3 }
 0x184   : > { %v1304_v31 = vpop.f32.mrf.mxu2  ;;  %v780_v50 = vld [vmem:[#allocation2 + $0xff] sm:$0xff]  ;;  %747 = vst.msk [vmem:[#allocation2 + $0x108] sm:$0xff] %vm505_vm1, %v677_v24  ;;  %v1069_v58 = vpack.c.bf16 %v1053_v57, %v1052_v36  ;;  %v5122_v63 = vadd.f32 %v1716_v17, %v1303_v5  ;;  %v5135_v5 = vpop.permute.xlu2 %1568 }
 0x185   : > { %v1305_v27 = vadd.f32 %v1304_v31, %v1164_v42  ;;  %v1004_v25 = vmul.f32 %v5113_v0, %v780_v50  ;;  %v5128_v10 = vmul.f32 %v5056_v52, %v780_v50  ;;  %v1382_v36 = vld [vmem:[#allocation2 + $0xf9] sm:$0xff]  ;;  %v5137_v24 = vpop.permute.xlu0 %1573 }
 0x186   : > { %3841 = vmatmul.msk.bf16.gmra.mxu1 %vm505_vm1, %v1069_v58  ;;  %6225 = vst [vmem:[#allocation81_spill] sm:$0xff] %v5137_v24  ;;  %v5139_v31 = vld [vmem:[#allocation2 + $0xf9] sm:$0xff] }
 0x187   : > { %v1020_v7 = vpack.c.bf16 %v1004_v25, %v1003_v35  ;;  %v644_v59 = vpop.f32.mrf.mxu0 }
 0x188   : > { %v645_v57 = vadd.f32 %v4978_v40, %v644_v59  ;;  %v1606_v40 = vmul.f32 %v5135_v5, %v1382_v36  ;;  %v6228_v36 = vpack.c.bf16 %v4836_v34, %v4833_v45 }
 0x189   : > { %3857 = vmatmul.msk.bf16.gmra.mxu2 %vm505_vm1, %v1020_v7 }
 0x18a   : > { %v678_v43 = vmax.f32 %v645_v57, 0.0  ;;  %v5150_v57 = vmul.f32 %v5139_v31, %v5027_v41 }
 0x18b   : > { %v1169_v50 = vpop.f32.mrf.mxu1  ;;  %v1383_v58 = vld [vmem:[#allocation2 + $0x101] sm:$0xff]  ;;  %v1718_v42 = vpop.f32.mrf.mxu3 }
 0x18c   : > { %v1307_v17 = vpop.f32.mrf.mxu2  ;;  %v5141_v25 = vld [vmem:[#allocation2 + $0x101] sm:$0xff]  ;;  %748 = vst.msk [vmem:[#allocation2 + $0x110] sm:$0xff] %vm505_vm1, %v678_v43  ;;  %v1607_v59 = vmul.f32 %v5137_v24, %v1383_v58  ;;  %v5146_v7 = vadd.f32 %v1718_v42, %v1305_v27 }
 0x18d   : > { %v1308_v35 = vadd.f32 %v1307_v17, %v1167_v2  ;;  %6226 = vst [vmem:[#allocation82_spill] sm:$0xff] %v5150_v57  ;;  %v5154_v54 = vmul.f32 %v5141_v25, %v5031_v3  ;;  %v2053_v27 = vld [vmem:[#allocation2 + $0x20] sm:$0xff]  ;;  %v2052_v17 = vld [vmem:[#allocation2 + $0x18] sm:$0xff] }
 0x18e   : > { %v1623_v0 = vpack.c.bf16 %v1607_v59, %v1606_v40  ;;  %v5162_v42 = vld [vmem:[#allocation2 + $0x107] sm:$0xff] }
 0x18f   : > { %6227 = vst [vmem:[#allocation83_spill] sm:$0xff] %v5154_v54  ;;  %v1940_v53 = vpop.f32.mrf.mxu0  ;;  %v5176_v57 = vmul.f32 %v5162_v42, %v5052_v61 }
 0x190   : > { %v5159_v43 = vadd.f32 %v1940_v53, %v4828_v60  ;;  %3874 = vmatmul.msk.bf16.gmra.mxu3 %vm505_vm1, %v1623_v0  ;;  %v2084_v0 = vpack.c.bf16 %v2053_v27, %v2052_v17 }
 0x192   : > { %3884 = vmatmul.msk.bf16.gmra.mxu0 %vm505_vm1, %v6228_v36 }
 0x193   : > { %v1172_v58 = vpop.f32.mrf.mxu1  ;;  %v5168_v59 = vld [vmem:[#allocation2 + $0x10f] sm:$0xff]  ;;  %v1721_v53 = vpop.f32.mrf.mxu3 }
 0x194   : > { %v1309_v40 = vpop.f32.mrf.mxu2  ;;  %v5170_v24 = vld [vmem:[#allocation2 + $0x109] sm:$0xff]  ;;  %v5172_v2 = vld [vmem:[#allocation2 + $0x111] sm:$0xff]  ;;  %v5180_v45 = vmul.f32 %v5168_v59, %v5056_v52  ;;  %v5182_v34 = vadd.f32 %v1721_v53, %v1308_v35  ;;  %v6233_v52 = vpack.c.bf16 %v4525_v12, %v4522_v11  ;;  %v6235_v12 = vpack.c.bf16 %v4879_v21, %v4876_v20 }
 0x195   : > { %6229 = vst [vmem:[#allocation84_spill] sm:$0xff] %v5170_v24  ;;  %v1310_v60 = vadd.f32 %v1309_v40, %v1169_v50  ;;  %v5186_v36 = vmul.f32 %v5170_v24, %v5084_v8  ;;  %v5193_v27 = vmul.f32 %v5172_v2, %v5088_v16  ;;  %v2055_v11 = vld [vmem:[#allocation2 + $0x30] sm:$0xff]  ;;  %v6236_v20 = vpack.c.bf16 %v4573_v56, %v4570_v55  ;;  %v2057_v55 = vld [vmem:[#allocation2 + $0x40] sm:$0xff] }
 0x196   : > { %6230 = vst [vmem:[#allocation85_spill] sm:$0xff] %v5172_v2  ;;  %3893 = vmatmul.msk.bf16.vlgmr.msrb.gmra.mxu1 %vm505_vm1, %v2084_v0  ;;  %v2530_v21 = vld [vmem:[#allocation2 + $0x37] sm:$0xff] }
 0x197   : > { %6231 = vst [vmem:[#allocation86_spill] sm:$0xff] %v5186_v36  ;;  %v1942_v61 = vpop.f32.mrf.mxu0  ;;  %v2278_v56 = vld [vmem:[#allocation2 + $0x39] sm:$0xff] }
 0x198   : > { %6232 = vst [vmem:[#allocation87_spill] sm:$0xff] %v5193_v27  ;;  %v5196_v17 = vadd.f32 %v1942_v61, %v4850_v6  ;;  %v6234_v6 = vpack.c.bf16 %v4553_v39, %v4550_v38  ;;  %v2531_v39 = vld [vmem:[#allocation2 + $0x3f] sm:$0xff] }
 0x199   : > { %3910 = vmatmul.msk.bf16.vlgmr.msrb.gmra.mxu2 %vm505_vm1, %v6233_v52  ;;  %v2054_v52 = vld [vmem:[#allocation2 + $0x28] sm:$0xff] }
 0x19b   : > { %v1174_v40 = vpop.f32.mrf.mxu1  ;;  %v1723_v50 = vpop.f32.mrf.mxu3 }
 0x19c   : > { %v1312_v53 = vpop.f32.mrf.mxu2  ;;  %v5204_v54 = vadd.f32 %v1723_v50, %v1310_v60 }
 0x19d   : > { %v1313_v0 = vadd.f32 %v1312_v53, %v1172_v58  ;;  %v5217_v53 = vpack.c.bf16 %v2055_v11, %v2054_v52 }
 0x19f   : > { %v1945_v2 = vpop.f32.mrf.mxu0 }
 0x1a0   : > { %v5207_v24 = vadd.f32 %v1945_v2, %v4873_v9  ;;  %3927 = vmatmul.msk.bf16.vlgmr.msrb.gmra.mxu3 %vm505_vm1, %v6234_v6 }
 0x1a2   : > { %3885 = vmatmul.msk.bf16.gmra.mxu0 %vm505_vm1, %v6235_v12 }
 0x1a3   : > { %v1177_v61 = vpop.f32.mrf.mxu1  ;;  %v1726_v50 = vpop.f32.mrf.mxu3 }
 0x1a4   : > { %v1314_v58 = vpop.f32.mrf.mxu2  ;;  %v5219_v9 = vadd.f32 %v1726_v50, %v1313_v0 }
 0x1a5   : > { %v1315_v60 = vadd.f32 %v1314_v58, %v1174_v40  ;;  %v2563_v40 = vmul.f32 %v2531_v39, %v4489_v49  ;;  %v2562_v58 = vmul.f32 %v2530_v21, %v4466_v33  ;;  %v6237_v49 = vpack.c.bf16 %v4922_v14, %v4919_v13  ;;  %v2056_v39 = vld [vmem:[#allocation2 + $0x38] sm:$0xff]  ;;  %v2533_v14 = vld [vmem:[#allocation2 + $0x4f] sm:$0xff] }
 0x1a6   : > { %3894 = vmatmul.msk.bf16.gmra.mxu1 %vm505_vm1, %v5217_v53 }
 0x1a7   : > { %v1947_v38 = vpop.f32.mrf.mxu0  ;;  %v2593_v50 = vpack.c.bf16 %v2563_v40, %v2562_v58  ;;  %v5243_v40 = vpack.c.bf16 %v2057_v55, %v2056_v39  ;;  %v2532_v58 = vld [vmem:[#allocation2 + $0x47] sm:$0xff]  ;;  %v2281_v39 = vld [vmem:[#allocation2 + $0x51] sm:$0xff] }
 0x1a8   : > { %v5224_v2 = vadd.f32 %v1947_v38, %v4893_v15  ;;  %v2279_v15 = vld [vmem:[#allocation2 + $0x41] sm:$0xff] }
 0x1a9   : > { %3911 = vmatmul.msk.bf16.gmra.mxu2 %vm505_vm1, %v6236_v20 }
 0x1ab   : > { %v1179_v6 = vpop.f32.mrf.mxu1  ;;  %v1728_v12 = vpop.f32.mrf.mxu3 }
 0x1ac   : > { %v1317_v11 = vpop.f32.mrf.mxu2  ;;  %v5232_v52 = vadd.f32 %v1728_v12, %v1315_v60 }
 0x1ad   : > { %v1318_v0 = vadd.f32 %v1317_v11, %v1177_v61  ;;  %v2311_v61 = vmul.f32 %v2279_v15, %v4564_v48  ;;  %v6261_v48 = vld [vmem:[#allocation78_spill] sm:$0xff] }
 0x1af   : > { %v1950_v35 = vpop.f32.mrf.mxu0 }
 0x1b0   : > { %v5235_v38 = vadd.f32 %v1950_v35, %v4916_v51  ;;  %3928 = vmatmul.msk.bf16.gmra.mxu3 %vm505_vm1, %v2593_v50  ;;  %v2310_v51 = vmul.f32 %v2278_v56, %v4562_v4 }
 0x1b2   : > { %3886 = vmatmul.msk.bf16.gmra.mxu0 %vm505_vm1, %v6237_v49  ;;  %v2340_v11 = vpack.c.bf16 %v2311_v61, %v2310_v51  ;;  %v2280_v51 = vld [vmem:[#allocation2 + $0x49] sm:$0xff] }
 0x1b3   : > { %v1182_v33 = vpop.f32.mrf.mxu1  ;;  %v1731_v21 = vpop.f32.mrf.mxu3 }
 0x1b4   : > { %v1319_v60 = vpop.f32.mrf.mxu2  ;;  %v5246_v35 = vadd.f32 %v1731_v21, %v1318_v0  ;;  %v2564_v0 = vmul.f32 %v2532_v58, %v4535_v22 }
 0x1b5   : > { %v1320_v20 = vadd.f32 %v1319_v60, %v1179_v6  ;;  %v2565_v6 = vmul.f32 %v2533_v14, %v4538_v26  ;;  %v6238_v26 = vpack.c.bf16 %v4968_v23, %v4965_v46 }
 0x1b6   : > { %3895 = vmatmul.msk.bf16.gmra.mxu1 %vm505_vm1, %v5243_v40 }
 0x1b7   : > { %v1952_v13 = vpop.f32.mrf.mxu0  ;;  %v2594_v60 = vpack.c.bf16 %v2565_v6, %v2564_v0 }
 0x1b8   : > { %v5251_v12 = vadd.f32 %v1952_v13, %v4938_v28  ;;  %v2059_v28 = vld [vmem:[#allocation2 + $0x50] sm:$0xff] }
 0x1b9   : > { %3912 = vmatmul.msk.bf16.gmra.mxu2 %vm505_vm1, %v2340_v11  ;;  %v2058_v11 = vld [vmem:[#allocation2 + $0x48] sm:$0xff] }
 0x1ba   : > { %v5267_v58 = vpack.c.bf16 %v2059_v28, %v2058_v11  ;;  %v2060_v11 = vld [vmem:[#allocation2 + $0x58] sm:$0xff] }
 0x1bb   : > { %v1184_v50 = vpop.f32.mrf.mxu1  ;;  %v1733_v56 = vpop.f32.mrf.mxu3 }
 0x1bc   : > { %v1322_v15 = vpop.f32.mrf.mxu2  ;;  %v5256_v49 = vadd.f32 %v1733_v56, %v1320_v20 }
 0x1bd   : > { %v1323_v55 = vadd.f32 %v1322_v15, %v1182_v33  ;;  %v2313_v33 = vmul.f32 %v2281_v39, %v4609_v32  ;;  %v2061_v39 = vld [vmem:[#allocation2 + $0x60] sm:$0xff] }
 0x1bf   : > { %v1955_v61 = vpop.f32.mrf.mxu0 }
 0x1c0   : > { %v5259_v21 = vadd.f32 %v1955_v61, %v4962_v44  ;;  %3929 = vmatmul.msk.bf16.gmra.mxu3 %vm505_vm1, %v2594_v60  ;;  %v2312_v44 = vmul.f32 %v2280_v51, %v4607_v29  ;;  %v4047_v51 = vld [vmem:[#allocation2 + $0x61] sm:$0xff] }
 0x1c2   : > { %3887 = vmatmul.msk.bf16.gmra.mxu0 %vm505_vm1, %v6238_v26  ;;  %v2341_v15 = vpack.c.bf16 %v2313_v33, %v2312_v44  ;;  %v6242_v26 = vld [vmem:[#allocation12_spill] sm:$0xff] }
 0x1c3   : > { %v1187_v22 = vpop.f32.mrf.mxu1  ;;  %v1736_v14 = vpop.f32.mrf.mxu3  ;;  %v2315_v33 = vmul.f32 %v4047_v51, %v6242_v26  ;;  %v4048_v44 = vld [vmem:[#allocation2 + $0x59] sm:$0xff] }
 0x1c4   : > { %v1324_v20 = vpop.f32.mrf.mxu2  ;;  %v5270_v6 = vadd.f32 %v1736_v14, %v1323_v55  ;;  %v6239_v55 = vpack.c.bf16 %v4672_v37, %v4669_v30  ;;  %v5292_v14 = vpack.c.bf16 %v2061_v39, %v2060_v11  ;;  %v6243_v30 = vld [vmem:[#allocation11_spill] sm:$0xff] }
 0x1c5   : > { %v1325_v13 = vadd.f32 %v1324_v20, %v1184_v50  ;;  %v2314_v37 = vmul.f32 %v4048_v44, %v6243_v30  ;;  %v6246_v44 = vld [vmem:[#allocation72_spill] sm:$0xff]  ;;  %v6247_v30 = vld [vmem:[#allocation71_spill] sm:$0xff] }
 0x1c6   : > { %3896 = vmatmul.msk.bf16.gmra.mxu1 %vm505_vm1, %v5267_v58 }
 0x1c7   : > { %v1957_v46 = vpop.f32.mrf.mxu0 }
 0x1c8   : > { %v5275_v23 = vadd.f32 %v1957_v46, %v4991_v1  ;;  %v6240_v1 = vld [vmem:[#allocation66_spill] sm:$0xff] }
 0x1c9   : > { %3913 = vmatmul.msk.bf16.gmra.mxu2 %vm505_vm1, %v2341_v15  ;;  %v6241_v28 = vpack.c.bf16 %v5022_v18, %v6240_v1  ;;  %v2342_v18 = vpack.c.bf16 %v2315_v33, %v2314_v37  ;;  %v6248_v37 = vpack.c.bf16 %v6246_v44, %v6247_v30  ;;  %v2539_v44 = vld [vmem:[#allocation2 + $0x7f] sm:$0xff]  ;;  %v6251_v30 = vld [vmem:[#allocation75_spill] sm:$0xff] }
 0x1cb   : > { %v1189_v32 = vpop.f32.mrf.mxu1  ;;  %v1738_v0 = vpop.f32.mrf.mxu3 }
 0x1cc   : > { %v1327_v56 = vpop.f32.mrf.mxu2  ;;  %v5278_v60 = vadd.f32 %v1738_v0, %v1325_v13 }
 0x1cd   : > { %v1328_v50 = vadd.f32 %v1327_v56, %v1187_v22  ;;  %v2537_v56 = vld [vmem:[#allocation2 + $0x6f] sm:$0xff] }
 0x1cf   : > { %v1960_v61 = vpop.f32.mrf.mxu0 }
 0x1d0   : > { %v5281_v29 = vadd.f32 %v1960_v61, %v5016_v19  ;;  %3930 = vmatmul.msk.bf16.gmra.mxu3 %vm505_vm1, %v6239_v55  ;;  %v6244_v61 = vld [vmem:[#allocation10_spill] sm:$0xff] }
 0x1d1   : > { %v2569_v55 = vmul.f32 %v2537_v56, %v6244_v61 }
 0x1d2   : > { %3888 = vmatmul.msk.bf16.gmra.mxu0 %vm505_vm1, %v6241_v28 }
 0x1d3   : > { %v1192_v22 = vpop.f32.mrf.mxu1  ;;  %v1741_v19 = vpop.f32.mrf.mxu3 }
 0x1d4   : > { %v1329_v20 = vpop.f32.mrf.mxu2  ;;  %v5295_v15 = vadd.f32 %v1741_v19, %v1328_v50  ;;  %v6245_v50 = vld [vmem:[#allocation9_spill] sm:$0xff] }
 0x1d5   : > { %v1330_v13 = vadd.f32 %v1329_v20, %v1189_v32  ;;  %v2536_v32 = vld [vmem:[#allocation2 + $0x67] sm:$0xff] }
 0x1d6   : > { %3897 = vmatmul.msk.bf16.gmra.mxu1 %vm505_vm1, %v5292_v14  ;;  %v2568_v26 = vmul.f32 %v2536_v32, %v6245_v50 }
 0x1d7   : > { %v1962_v46 = vpop.f32.mrf.mxu0 }
 0x1d8   : > { %v5300_v0 = vadd.f32 %v1962_v46, %v5040_v62  ;;  %v2596_v11 = vpack.c.bf16 %v2569_v55, %v2568_v26  ;;  %v2063_v62 = vld [vmem:[#allocation2 + $0x70] sm:$0xff] }
 0x1d9   : > { %3914 = vmatmul.msk.bf16.gmra.mxu2 %vm505_vm1, %v2342_v18  ;;  %v4049_v18 = vld [vmem:[#allocation2 + $0x71] sm:$0xff] }
 0x1db   : > { %v1194_v39 = vpop.f32.mrf.mxu1  ;;  %v1743_v51 = vpop.f32.mrf.mxu3 }
 0x1dc   : > { %v1332_v1 = vpop.f32.mrf.mxu2  ;;  %v5305_v20 = vadd.f32 %v1743_v51, %v1330_v13  ;;  %v2062_v13 = vld [vmem:[#allocation2 + $0x68] sm:$0xff]  ;;  %v6250_v51 = vld [vmem:[#allocation15_spill] sm:$0xff] }
 0x1dd   : > { %v1333_v28 = vadd.f32 %v1332_v1, %v1192_v22  ;;  %v6249_v22 = vld [vmem:[#allocation16_spill] sm:$0xff]  ;;  %v5316_v1 = vpack.c.bf16 %v2063_v62, %v2062_v13 }
 0x1de   : > { %v2317_v46 = vmul.f32 %v4049_v18, %v6249_v22  ;;  %v6252_v18 = vld [vmem:[#allocation14_spill] sm:$0xff] }
 0x1df   : > { %v1965_v33 = vpop.f32.mrf.mxu0  ;;  %v2571_v62 = vmul.f32 %v2539_v44, %v6252_v18  ;;  %v4051_v44 = vld [vmem:[#allocation2 + $0x81] sm:$0xff] }
 0x1e0   : > { %v5308_v19 = vadd.f32 %v1965_v33, %v5065_v47  ;;  %3931 = vmatmul.msk.bf16.gmra.mxu3 %vm505_vm1, %v2596_v11  ;;  %v4050_v47 = vld [vmem:[#allocation2 + $0x69] sm:$0xff] }
 0x1e1   : > { %v2316_v50 = vmul.f32 %v4050_v47, %v6250_v51 }
 0x1e2   : > { %3889 = vmatmul.msk.bf16.gmra.mxu0 %vm505_vm1, %v6248_v37 }
 0x1e3   : > { %v1197_v56 = vpop.f32.mrf.mxu1  ;;  %v1746_v55 = vpop.f32.mrf.mxu3  ;;  %v2343_v11 = vpack.c.bf16 %v2317_v46, %v2316_v50 }
 0x1e4   : > { %v1334_v32 = vpop.f32.mrf.mxu2  ;;  %v5319_v26 = vadd.f32 %v1746_v55, %v1333_v28  ;;  %v6253_v28 = vld [vmem:[#allocation13_spill] sm:$0xff] }
 0x1e5   : > { %v1335_v61 = vadd.f32 %v1334_v32, %v1194_v39  ;;  %v2538_v39 = vld [vmem:[#allocation2 + $0x77] sm:$0xff] }
 0x1e6   : > { %3898 = vmatmul.msk.bf16.gmra.mxu1 %vm505_vm1, %v5316_v1  ;;  %v2570_v55 = vmul.f32 %v2538_v39, %v6253_v28 }
 0x1e7   : > { %v1967_v33 = vpop.f32.mrf.mxu0 }
 0x1e8   : > { %v5324_v37 = vadd.f32 %v1967_v33, %v6251_v30  ;;  %v2597_v36 = vpack.c.bf16 %v2571_v62, %v2570_v55  ;;  %v2065_v33 = vld [vmem:[#allocation2 + $0x80] sm:$0xff]  ;;  %v6257_v55 = vld [vmem:[#allocation22_spill] sm:$0xff] }
 0x1e9   : > { %3915 = vmatmul.msk.bf16.gmra.mxu2 %vm505_vm1, %v2343_v11  ;;  %v6254_v11 = vld [vmem:[#allocation80_spill] sm:$0xff] }
 0x1ea   : > { %v6255_v30 = vpack.c.bf16 %v5128_v10, %v6254_v11 }
 0x1eb   : > { %v1199_v22 = vpop.f32.mrf.mxu1  ;;  %v1748_v47 = vpop.f32.mrf.mxu3 }
 0x1ec   : > { %v1337_v32 = vpop.f32.mrf.mxu2  ;;  %v5329_v51 = vadd.f32 %v1748_v47, %v1335_v61  ;;  %v2064_v61 = vld [vmem:[#allocation2 + $0x78] sm:$0xff] }
 0x1ed   : > { %v1338_v13 = vadd.f32 %v1337_v32, %v1197_v56  ;;  %v6256_v56 = vld [vmem:[#allocation23_spill] sm:$0xff]  ;;  %v5340_v28 = vpack.c.bf16 %v2065_v33, %v2064_v61 }
 0x1ee   : > { %v2319_v18 = vmul.f32 %v4051_v44, %v6256_v56  ;;  %v6258_v56 = vld [vmem:[#allocation20_spill] sm:$0xff] }
 0x1ef   : > { %v1970_v46 = vpop.f32.mrf.mxu0 }
 0x1f0   : > { %v5332_v50 = vadd.f32 %v1970_v46, %v5122_v63  ;;  %3932 = vmatmul.msk.bf16.gmra.mxu3 %vm505_vm1, %v2597_v36  ;;  %v4052_v63 = vld [vmem:[#allocation2 + $0x79] sm:$0xff] }
 0x1f1   : > { %v2318_v46 = vmul.f32 %v4052_v63, %v6257_v55  ;;  %v6260_v55 = vld [vmem:[#allocation79_spill] sm:$0xff] }
 0x1f2   : > { %3890 = vmatmul.msk.bf16.gmra.mxu0 %vm505_vm1, %v6255_v30  ;;  %v2541_v30 = vld [vmem:[#allocation2 + $0x8f] sm:$0xff]  ;;  %v1861_v4 = vmul.f32 %v5168_v59, %v6260_v55 }
 0x1f3   : > { %v1202_v32 = vpop.f32.mrf.mxu1  ;;  %v1751_v62 = vpop.f32.mrf.mxu3  ;;  %v2344_v10 = vpack.c.bf16 %v2319_v18, %v2318_v46  ;;  %v2573_v33 = vmul.f32 %v2541_v30, %v6258_v56  ;;  %v6263_v56 = vld [vmem:[#allocation28_spill] sm:$0xff]  ;;  %v6264_v55 = vld [vmem:[#allocation27_spill] sm:$0xff] }
 0x1f4   : > { %v1339_v39 = vpop.f32.mrf.mxu2  ;;  %v5343_v36 = vadd.f32 %v1751_v62, %v1338_v13  ;;  %v6259_v13 = vld [vmem:[#allocation19_spill] sm:$0xff] }
 0x1f5   : > { %v1340_v47 = vadd.f32 %v1339_v39, %v1199_v22  ;;  %v2540_v22 = vld [vmem:[#allocation2 + $0x87] sm:$0xff] }
 0x1f6   : > { %3899 = vmatmul.msk.bf16.gmra.mxu1 %vm505_vm1, %v5340_v28  ;;  %v2572_v62 = vmul.f32 %v2540_v22, %v6259_v13  ;;  %v4053_v22 = vld [vmem:[#allocation2 + $0x91] sm:$0xff] }
 0x1f7   : > { %v1972_v11 = vpop.f32.mrf.mxu0 }
 0x1f8   : > { %v5348_v44 = vadd.f32 %v1972_v11, %v5146_v7  ;;  %v2598_v46 = vpack.c.bf16 %v2573_v33, %v2572_v62  ;;  %v1860_v7 = vmul.f32 %v5162_v42, %v6261_v48  ;;  %v4054_v42 = vld [vmem:[#allocation2 + $0x89] sm:$0xff] }
 0x1f9   : > { %3916 = vmatmul.msk.bf16.gmra.mxu2 %vm505_vm1, %v2344_v10 }
 0x1fa   : > { %v1877_v30 = vpack.c.bf16 %v1861_v4, %v1860_v7  ;;  %v3342_v4 = vld [vmem:[%s6045_s5] sm:$0xf] }
 0x1fb   : > { %v1204_v39 = vpop.f32.mrf.mxu1  ;;  %v1753_v63 = vpop.f32.mrf.mxu3  ;;  %v3396_v7 = vsel %vm554_vm0, %v3342_v4, 0 }
 0x1fc   : > { %v1342_v61 = vpop.f32.mrf.mxu2  ;;  %v5355_v18 = vadd.f32 %v1753_v63, %v1340_v47  ;;  %v2066_v63 = vld [vmem:[#allocation2 + $0x88] sm:$0xff]  ;;  %3405 = vmatpush.bf16.msra.mxu2 %v3396_v7 }
 0x1fd   : > { %v1343_v27 = vadd.f32 %v1342_v61, %v1202_v32  ;;  %v2067_v32 = vld [vmem:[#allocation2 + $0x90] sm:$0xff]  ;;  %v2321_v61 = vmul.f32 %v4053_v22, %v6263_v56  ;;  %v6265_v56 = vld [vmem:[#allocation26_spill] sm:$0xff] }
 0x1fe   : > { %v5365_v62 = vpack.c.bf16 %v2067_v32, %v2066_v63  ;;  %v2542_v22 = vld [vmem:[#allocation2 + $0x97] sm:$0xff] }
 0x1ff   : > { %v1975_v11 = vpop.f32.mrf.mxu0 }
 0x200   : > { %v5360_v10 = vadd.f32 %v1975_v11, %v5182_v34  ;;  %3933 = vmatmul.msk.bf16.gmra.mxu3 %vm505_vm1, %v2598_v46  ;;  %v2320_v34 = vmul.f32 %v4054_v42, %v6264_v55  ;;  %v3487_v46 = vld [vmem:[%s6047_s7] sm:$0xf] }
 0x201   : > { %v2543_v55 = vld [vmem:[#allocation2 + $0x9f] sm:$0xff] }
 0x202   : > { %6262 = vst [vmem:[#allocation66_spill] sm:$0xff] %v5360_v10  ;;  %3891 = vmatmul.msk.bf16.gmra.mxu0 %vm505_vm1, %v1877_v30  ;;  %v3493_v30 = vsel %vm554_vm0, %v3487_v46, 0 }
 0x203   : > { %v1207_v59 = vpop.f32.mrf.mxu1  ;;  %v1756_v13 = vpop.f32.mrf.mxu3  ;;  %3502 = vmatpush.bf16.msra.mxu3 %v3493_v30  ;;  %v6267_v30 = vld [vmem:[#allocation34_spill] sm:$0xff] }
 0x204   : > { %v1344_v47 = vpop.f32.mrf.mxu2  ;;  %v5368_v11 = vadd.f32 %v1756_v13, %v1343_v27 }
 0x205   : > { %v1345_v33 = vadd.f32 %v1344_v47, %v1204_v39  ;;  %v2345_v39 = vpack.c.bf16 %v2321_v61, %v2320_v34  ;;  %v2575_v47 = vmul.f32 %v2543_v55, %v6265_v56  ;;  %v6266_v34 = vld [vmem:[#allocation25_spill] sm:$0xff]  ;;  %v2068_v56 = vld [vmem:[#allocation2 + $0x98] sm:$0xff] }
 0x206   : > { %3900 = vmatmul.msk.bf16.gmra.mxu1 %vm505_vm1, %v5365_v62  ;;  %v2574_v4 = vmul.f32 %v2542_v22, %v6266_v34 }
 0x207   : > { %v1977_v32 = vpop.f32.mrf.mxu0 }
 0x208   : > { %v5381_v27 = vadd.f32 %v1977_v32, %v5204_v54  ;;  %v2599_v46 = vpack.c.bf16 %v2575_v47, %v2574_v4  ;;  %v2069_v54 = vld [vmem:[#allocation2 + $0xa0] sm:$0xff] }
 0x209   : > { %3917 = vmatmul.msk.bf16.gmra.mxu2 %vm505_vm1, %v2345_v39  ;;  %v4055_v39 = vld [vmem:[#allocation2 + $0xa1] sm:$0xff] }
 0x20a   : > { %v2323_v32 = vmul.f32 %v4055_v39, %v6267_v30 }
 0x20b   : > { %v1209_v63 = vpop.f32.mrf.mxu1  ;;  %v1758_v61 = vpop.f32.mrf.mxu3 }
 0x20c   : > { %v1347_v13 = vpop.f32.mrf.mxu2  ;;  %v5386_v48 = vadd.f32 %v1758_v61, %v1345_v33 }
 0x20d   : > { %v1348_v42 = vadd.f32 %v1347_v13, %v1207_v59  ;;  %v5396_v13 = vpack.c.bf16 %v2069_v54, %v2068_v56 }
 0x20f   : > { %v1980_v10 = vpop.f32.mrf.mxu0 }
 0x210   : > { %v5389_v7 = vadd.f32 %v1980_v10, %v5219_v9  ;;  %3934 = vmatmul.msk.bf16.gmra.mxu3 %vm505_vm1, %v2599_v46  ;;  %v4056_v9 = vld [vmem:[#allocation2 + $0x99] sm:$0xff]  ;;  %v2545_v46 = vld [vmem:[#allocation2 + $0xaf] sm:$0xff] }
 0x211   : > { %v6268_v10 = vld [vmem:[#allocation33_spill] sm:$0xff] }
 0x212   : > { %3944 = vmatmul.msk.bf16.vlgmr.msra.gmra.mxu0 %vm505_vm1, %v5217_v53  ;;  %v2322_v61 = vmul.f32 %v4056_v9, %v6268_v10 }
 0x213   : > { %v2162_v55 = vpop.f32.mrf.mxu1  ;;  %v1761_v33 = vpop.f32.mrf.mxu3 }
 0x214   : > { %v1349_v59 = vpop.f32.mrf.mxu2  ;;  %v2242_v47 = vadd.f32 %v2162_v55, %v5159_v43  ;;  %v5399_v34 = vadd.f32 %v1761_v33, %v1348_v42  ;;  %v2346_v53 = vpack.c.bf16 %v2323_v32, %v2322_v61  ;;  %v6269_v43 = vld [vmem:[#allocation32_spill] sm:$0xff]  ;;  %v6270_v33 = vld [vmem:[#allocation31_spill] sm:$0xff] }
 0x215   : > { %v1350_v22 = vadd.f32 %v1349_v59, %v1209_v63  ;;  %v2544_v63 = vld [vmem:[#allocation2 + $0xa7] sm:$0xff]  ;;  %v2577_v54 = vmul.f32 %v2545_v46, %v6269_v43  ;;  %v6271_v46 = vld [vmem:[#allocation40_spill] sm:$0xff] }
 0x216   : > { %3901 = vmatmul.msk.bf16.gmra.mxu1 %vm505_vm1, %v5396_v13  ;;  %v2576_v9 = vmul.f32 %v2544_v63, %v6270_v33 }
 0x217   : > { %v1982_v4 = vpop.f32.mrf.mxu0 }
 0x218   : > { %v5404_v39 = vadd.f32 %v1982_v4, %v5232_v52  ;;  %v2600_v32 = vpack.c.bf16 %v2577_v54, %v2576_v9  ;;  %v4057_v4 = vld [vmem:[#allocation2 + $0xb1] sm:$0xff] }
 0x219   : > { %3918 = vmatmul.msk.bf16.gmra.mxu2 %vm505_vm1, %v2346_v53  ;;  %v2071_v53 = vld [vmem:[#allocation2 + $0xb0] sm:$0xff]  ;;  %v2325_v43 = vmul.f32 %v4057_v4, %v6271_v46 }
 0x21b   : > { %v2164_v30 = vpop.f32.mrf.mxu1  ;;  %v1763_v55 = vpop.f32.mrf.mxu3 }
 0x21c   : > { %v2416_v59 = vpop.f32.mrf.mxu2  ;;  %v2243_v42 = vadd.f32 %v2164_v30, %v5196_v17  ;;  %v5410_v10 = vadd.f32 %v1763_v55, %v1350_v22  ;;  %v2070_v30 = vld [vmem:[#allocation2 + $0xa8] sm:$0xff]  ;;  %v6272_v55 = vld [vmem:[#allocation39_spill] sm:$0xff] }
 0x21d   : > { %v2496_v56 = vadd.f32 %v2416_v59, %v2242_v47  ;;  %v5420_v59 = vpack.c.bf16 %v2071_v53, %v2070_v30 }
 0x21f   : > { %v1985_v61 = vpop.f32.mrf.mxu0 }
 0x220   : > { %v5413_v52 = vadd.f32 %v1985_v61, %v5246_v35  ;;  %3935 = vmatmul.msk.bf16.gmra.mxu3 %vm505_vm1, %v2600_v32  ;;  %v4058_v35 = vld [vmem:[#allocation2 + $0xa9] sm:$0xff]  ;;  %v2547_v61 = vld [vmem:[#allocation2 + $0xbf] sm:$0xff] }
 0x221   : > { %v2324_v33 = vmul.f32 %v4058_v35, %v6272_v55 }
 0x222   : > { %3945 = vmatmul.msk.bf16.gmra.mxu0 %vm505_vm1, %v5243_v40 }
 0x223   : > { %v2167_v17 = vpop.f32.mrf.mxu1  ;;  %v2670_v54 = vpop.f32.mrf.mxu3  ;;  %v2347_v40 = vpack.c.bf16 %v2325_v43, %v2324_v33 }
 0x224   : > { %v2418_v47 = vpop.f32.mrf.mxu2  ;;  %v2244_v22 = vadd.f32 %v2167_v17, %v5207_v24  ;;  %v5423_v9 = vadd.f32 %v2670_v54, %v2496_v56  ;;  %v2546_v24 = vld [vmem:[#allocation2 + $0xb7] sm:$0xff]  ;;  %v6274_v54 = vld [vmem:[#allocation37_spill] sm:$0xff] }
 0x225   : > { %v2497_v63 = vadd.f32 %v2418_v47, %v2243_v42  ;;  %v6273_v42 = vld [vmem:[#allocation38_spill] sm:$0xff]  ;;  %v2578_v35 = vmul.f32 %v2546_v24, %v6274_v54 }
 0x226   : > { %3902 = vmatmul.msk.bf16.gmra.mxu1 %vm505_vm1, %v5420_v59  ;;  %v2579_v53 = vmul.f32 %v2547_v61, %v6273_v42  ;;  %v6276_v61 = vld [vmem:[#allocation53_spill] sm:$0xff] }
 0x227   : > { %v1987_v32 = vpop.f32.mrf.mxu0 }
 0x228   : > { %v5428_v4 = vadd.f32 %v1987_v32, %v5256_v49  ;;  %v2601_v43 = vpack.c.bf16 %v2579_v53, %v2578_v35  ;;  %v6275_v32 = vld [vmem:[#allocation46_spill] sm:$0xff] }
 0x229   : > { %3919 = vmatmul.msk.bf16.gmra.mxu2 %vm505_vm1, %v2347_v40  ;;  %v2073_v40 = vld [vmem:[#allocation2 + $0xc0] sm:$0xff] }
 0x22b   : > { %v2169_v46 = vpop.f32.mrf.mxu1  ;;  %v2672_v30 = vpop.f32.mrf.mxu3 }
 0x22c   : > { %v2421_v17 = vpop.f32.mrf.mxu2  ;;  %v2245_v47 = vadd.f32 %v2169_v46, %v5224_v2  ;;  %v5434_v55 = vadd.f32 %v2672_v30, %v2497_v63  ;;  %v2327_v2 = vmul.f32 %v6276_v61, %v6275_v32  ;;  %v2072_v46 = vld [vmem:[#allocation2 + $0xb8] sm:$0xff]  ;;  %v6277_v30 = vld [vmem:[#allocation45_spill] sm:$0xff] }
 0x22d   : > { %v2498_v56 = vadd.f32 %v2421_v17, %v2244_v22  ;;  %v5445_v17 = vpack.c.bf16 %v2073_v40, %v2072_v46 }
 0x22f   : > { %v1990_v33 = vpop.f32.mrf.mxu0 }
 0x230   : > { %v5437_v49 = vadd.f32 %v1990_v33, %v5270_v6  ;;  %3936 = vmatmul.msk.bf16.gmra.mxu3 %vm505_vm1, %v2601_v43  ;;  %v4059_v6 = vld [vmem:[#allocation2 + $0xb9] sm:$0xff]  ;;  %v2549_v33 = vld [vmem:[#allocation2 + $0xcf] sm:$0xff] }
 0x231   : > { %v2326_v54 = vmul.f32 %v4059_v6, %v6277_v30 }
 0x232   : > { %3946 = vmatmul.msk.bf16.gmra.mxu0 %vm505_vm1, %v5267_v58 }
 0x233   : > { %v2172_v22 = vpop.f32.mrf.mxu1  ;;  %v2675_v53 = vpop.f32.mrf.mxu3  ;;  %v2348_v58 = vpack.c.bf16 %v2327_v2, %v2326_v54 }
 0x234   : > { %v2423_v42 = vpop.f32.mrf.mxu2  ;;  %v2246_v63 = vadd.f32 %v2172_v22, %v5235_v38  ;;  %v5448_v35 = vadd.f32 %v2675_v53, %v2498_v56  ;;  %v2548_v38 = vld [vmem:[#allocation2 + $0xc7] sm:$0xff]  ;;  %v6279_v53 = vld [vmem:[#allocation43_spill] sm:$0xff] }
 0x235   : > { %v2499_v24 = vadd.f32 %v2423_v42, %v2245_v47  ;;  %v6278_v47 = vld [vmem:[#allocation44_spill] sm:$0xff]  ;;  %v2580_v6 = vmul.f32 %v2548_v38, %v6279_v53 }
 0x236   : > { %3903 = vmatmul.msk.bf16.gmra.mxu1 %vm505_vm1, %v5445_v17  ;;  %v2581_v40 = vmul.f32 %v2549_v33, %v6278_v47  ;;  %v6281_v33 = vld [vmem:[#allocation61_spill] sm:$0xff] }
 0x237   : > { %v1992_v43 = vpop.f32.mrf.mxu0 }
 0x238   : > { %v5453_v32 = vadd.f32 %v1992_v43, %v5278_v60  ;;  %v2602_v2 = vpack.c.bf16 %v2581_v40, %v2580_v6  ;;  %v6280_v43 = vld [vmem:[#allocation52_spill] sm:$0xff] }
 0x239   : > { %3920 = vmatmul.msk.bf16.gmra.mxu2 %vm505_vm1, %v2348_v58  ;;  %v2075_v58 = vld [vmem:[#allocation2 + $0xd0] sm:$0xff] }
 0x23b   : > { %v2174_v61 = vpop.f32.mrf.mxu1  ;;  %v2677_v46 = vpop.f32.mrf.mxu3 }
 0x23c   : > { %v2426_v22 = vpop.f32.mrf.mxu2  ;;  %v2247_v42 = vadd.f32 %v2174_v61, %v5251_v12  ;;  %v5459_v30 = vadd.f32 %v2677_v46, %v2499_v24  ;;  %v2329_v12 = vmul.f32 %v6281_v33, %v6280_v43  ;;  %v2074_v61 = vld [vmem:[#allocation2 + $0xc8] sm:$0xff]  ;;  %v6283_v46 = vld [vmem:[#allocation60_spill] sm:$0xff] }
 0x23d   : > { %v2500_v56 = vadd.f32 %v2426_v22, %v2246_v63  ;;  %v5470_v22 = vpack.c.bf16 %v2075_v58, %v2074_v61 }
 0x23f   : > { %v1995_v54 = vpop.f32.mrf.mxu0 }
 0x240   : > { %v5462_v60 = vadd.f32 %v1995_v54, %v5295_v15  ;;  %3937 = vmatmul.msk.bf16.gmra.mxu3 %vm505_vm1, %v2602_v2  ;;  %v6282_v15 = vld [vmem:[#allocation51_spill] sm:$0xff]  ;;  %v2551_v54 = vld [vmem:[#allocation2 + $0xdf] sm:$0xff] }
 0x241   : > { %v2328_v53 = vmul.f32 %v6283_v46, %v6282_v15 }
 0x242   : > { %3947 = vmatmul.msk.bf16.gmra.mxu0 %vm505_vm1, %v5292_v14 }
 0x243   : > { %v2177_v63 = vpop.f32.mrf.mxu1  ;;  %v2680_v40 = vpop.f32.mrf.mxu3  ;;  %v2349_v14 = vpack.c.bf16 %v2329_v12, %v2328_v53 }
 0x244   : > { %v2428_v47 = vpop.f32.mrf.mxu2  ;;  %v2248_v24 = vadd.f32 %v2177_v63, %v5259_v21  ;;  %v5474_v6 = vadd.f32 %v2680_v40, %v2500_v56  ;;  %v2550_v21 = vld [vmem:[#allocation2 + $0xd7] sm:$0xff]  ;;  %v6285_v40 = vld [vmem:[#allocation49_spill] sm:$0xff] }
 0x245   : > { %v2501_v38 = vadd.f32 %v2428_v47, %v2247_v42  ;;  %v6284_v42 = vld [vmem:[#allocation50_spill] sm:$0xff]  ;;  %v2582_v15 = vmul.f32 %v2550_v21, %v6285_v40 }
 0x246   : > { %3904 = vmatmul.msk.bf16.gmra.mxu1 %vm505_vm1, %v5470_v22  ;;  %v2583_v58 = vmul.f32 %v2551_v54, %v6284_v42  ;;  %v6287_v54 = vld [vmem:[#allocation68_spill] sm:$0xff] }
 0x247   : > { %v1997_v2 = vpop.f32.mrf.mxu0 }
 0x248   : > { %v5479_v43 = vadd.f32 %v1997_v2, %v5305_v20  ;;  %v2603_v12 = vpack.c.bf16 %v2583_v58, %v2582_v15  ;;  %v6286_v2 = vld [vmem:[#allocation59_spill] sm:$0xff] }
 0x249   : > { %3921 = vmatmul.msk.bf16.gmra.mxu2 %vm505_vm1, %v2349_v14  ;;  %v2077_v14 = vld [vmem:[#allocation2 + $0xe0] sm:$0xff] }
 0x24b   : > { %v2179_v33 = vpop.f32.mrf.mxu1  ;;  %v2682_v61 = vpop.f32.mrf.mxu3 }
 0x24c   : > { %v2431_v63 = vpop.f32.mrf.mxu2  ;;  %v2249_v47 = vadd.f32 %v2179_v33, %v5275_v23  ;;  %v5485_v46 = vadd.f32 %v2682_v61, %v2501_v38  ;;  %v2331_v23 = vmul.f32 %v6287_v54, %v6286_v2  ;;  %v2076_v33 = vld [vmem:[#allocation2 + $0xd8] sm:$0xff]  ;;  %v6289_v61 = vld [vmem:[#allocation67_spill] sm:$0xff] }
 0x24d   : > { %v2502_v56 = vadd.f32 %v2431_v63, %v2248_v24  ;;  %v5496_v63 = vpack.c.bf16 %v2077_v14, %v2076_v33 }
 0x24f   : > { %v2000_v53 = vpop.f32.mrf.mxu0 }
 0x250   : > { %v5488_v20 = vadd.f32 %v2000_v53, %v5319_v26  ;;  %3938 = vmatmul.msk.bf16.gmra.mxu3 %vm505_vm1, %v2603_v12  ;;  %v6288_v26 = vld [vmem:[#allocation58_spill] sm:$0xff] }
 0x251   : > { %v2330_v40 = vmul.f32 %v6289_v61, %v6288_v26  ;;  %v2553_v53 = vld [vmem:[#allocation2 + $0xef] sm:$0xff] }
 0x252   : > { %3948 = vmatmul.msk.bf16.gmra.mxu0 %vm505_vm1, %v5316_v1 }
 0x253   : > { %v2182_v24 = vpop.f32.mrf.mxu1  ;;  %v2685_v58 = vpop.f32.mrf.mxu3  ;;  %v2350_v1 = vpack.c.bf16 %v2331_v23, %v2330_v40 }
 0x254   : > { %v2433_v42 = vpop.f32.mrf.mxu2  ;;  %v2250_v38 = vadd.f32 %v2182_v24, %v5281_v29  ;;  %v5500_v15 = vadd.f32 %v2685_v58, %v2502_v56  ;;  %v2552_v29 = vld [vmem:[#allocation2 + $0xe7] sm:$0xff]  ;;  %v6291_v58 = vld [vmem:[#allocation56_spill] sm:$0xff] }
 0x255   : > { %v2503_v21 = vadd.f32 %v2433_v42, %v2249_v47  ;;  %v6290_v47 = vld [vmem:[#allocation57_spill] sm:$0xff]  ;;  %v2584_v26 = vmul.f32 %v2552_v29, %v6291_v58 }
 0x256   : > { %3905 = vmatmul.msk.bf16.gmra.mxu1 %vm505_vm1, %v5496_v63  ;;  %v2585_v14 = vmul.f32 %v2553_v53, %v6290_v47  ;;  %v2078_v47 = vld [vmem:[#allocation2 + $0xe8] sm:$0xff]  ;;  %v2555_v58 = vld [vmem:[#allocation2 + $0xff] sm:$0xff] }
 0x257   : > { %v2002_v12 = vpop.f32.mrf.mxu0 }
 0x258   : > { %v5505_v2 = vadd.f32 %v2002_v12, %v5329_v51  ;;  %v2604_v23 = vpack.c.bf16 %v2585_v14, %v2584_v26  ;;  %v6292_v12 = vld [vmem:[#allocation74_spill] sm:$0xff]  ;;  %v6294_v26 = vld [vmem:[#allocation65_spill] sm:$0xff] }
 0x259   : > { %3922 = vmatmul.msk.bf16.gmra.mxu2 %vm505_vm1, %v2350_v1  ;;  %v2079_v1 = vld [vmem:[#allocation2 + $0xf0] sm:$0xff] }
 0x25a   : > { %v5522_v14 = vpack.c.bf16 %v2079_v1, %v2078_v47  ;;  %v6295_v47 = vld [vmem:[#allocation64_spill] sm:$0xff] }
 0x25b   : > { %v2184_v54 = vpop.f32.mrf.mxu1  ;;  %v2687_v33 = vpop.f32.mrf.mxu3 }
 0x25c   : > { %v2436_v24 = vpop.f32.mrf.mxu2  ;;  %v2251_v42 = vadd.f32 %v2184_v54, %v5300_v0  ;;  %v5511_v61 = vadd.f32 %v2687_v33, %v2503_v21  ;;  %v2333_v0 = vmul.f32 %v6292_v12, %v5031_v3 }
 0x25d   : > { %v2504_v56 = vadd.f32 %v2436_v24, %v2250_v38 }
 0x25f   : > { %v2005_v40 = vpop.f32.mrf.mxu0 }
 0x260   : > { %v5514_v51 = vadd.f32 %v2005_v40, %v5343_v36  ;;  %3939 = vmatmul.msk.bf16.gmra.mxu3 %vm505_vm1, %v2604_v23  ;;  %v6293_v36 = vld [vmem:[#allocation73_spill] sm:$0xff]  ;;  %v2587_v23 = vmul.f32 %v2555_v58, %v6294_v26 }
 0x261   : > { %v2332_v54 = vmul.f32 %v6293_v36, %v5027_v41 }
 0x262   : > { %3949 = vmatmul.msk.bf16.gmra.mxu0 %vm505_vm1, %v5340_v28 }
 0x263   : > { %v2187_v38 = vpop.f32.mrf.mxu1  ;;  %v2690_v29 = vpop.f32.mrf.mxu3  ;;  %v2351_v28 = vpack.c.bf16 %v2333_v0, %v2332_v54 }
 0x264   : > { %v2438_v53 = vpop.f32.mrf.mxu2  ;;  %v2252_v21 = vadd.f32 %v2187_v38, %v5308_v19  ;;  %v5526_v24 = vadd.f32 %v2690_v29, %v2504_v56  ;;  %v2554_v19 = vld [vmem:[#allocation2 + $0xf7] sm:$0xff] }
 0x265   : > { %v2505_v40 = vadd.f32 %v2438_v53, %v2251_v42  ;;  %v2586_v29 = vmul.f32 %v2554_v19, %v6295_v47  ;;  %v6296_v47 = vpack.c.bf16 %v5180_v45, %v5176_v57 }
 0x266   : > { %3906 = vmatmul.msk.bf16.gmra.mxu1 %vm505_vm1, %v5522_v14 }
 0x267   : > { %v2007_v33 = vpop.f32.mrf.mxu0  ;;  %v2605_v36 = vpack.c.bf16 %v2587_v23, %v2586_v29  ;;  %v2083_v29 = vld [vmem:[#allocation2 + $0x110] sm:$0xff] }
 0x268   : > { %v5531_v3 = vadd.f32 %v2007_v33, %v5355_v18 }
 0x269   : > { %3923 = vmatmul.msk.bf16.gmra.mxu2 %vm505_vm1, %v2351_v28  ;;  %v2081_v28 = vld [vmem:[#allocation2 + $0x100] sm:$0xff] }
 0x26b   : > { %v2189_v1 = vpop.f32.mrf.mxu1  ;;  %v2692_v38 = vpop.f32.mrf.mxu3 }
 0x26c   : > { %v2441_v12 = vpop.f32.mrf.mxu2  ;;  %v2253_v41 = vadd.f32 %v2189_v1, %v5324_v37  ;;  %v5537_v0 = vadd.f32 %v2692_v38, %v2505_v40  ;;  %v2335_v37 = vmul.f32 %v5141_v25, %v5088_v16 }
 0x26d   : > { %v2506_v56 = vadd.f32 %v2441_v12, %v2252_v21  ;;  %v2080_v21 = vld [vmem:[#allocation2 + $0xf8] sm:$0xff] }
 0x26e   : > { %v5548_v19 = vpack.c.bf16 %v2081_v28, %v2080_v21 }
 0x26f   : > { %v2010_v54 = vpop.f32.mrf.mxu0 }
 0x270   : > { %v5540_v18 = vadd.f32 %v2010_v54, %v5368_v11  ;;  %3940 = vmatmul.msk.bf16.gmra.mxu3 %vm505_vm1, %v2605_v36  ;;  %v2334_v11 = vmul.f32 %v5139_v31, %v5084_v8  ;;  %v6298_v36 = vld [vmem:[#allocation81_spill] sm:$0xff] }
 0x271   : > { %v6299_v54 = vld [vmem:[#allocation85_spill] sm:$0xff] }
 0x272   : > { %3950 = vmatmul.msk.bf16.gmra.mxu0 %vm505_vm1, %v5365_v62  ;;  %v2352_v62 = vpack.c.bf16 %v2335_v37, %v2334_v11  ;;  %v2337_v28 = vmul.f32 %v6299_v54, %v6298_v36 }
 0x273   : > { %v2192_v42 = vpop.f32.mrf.mxu1  ;;  %v2695_v58 = vpop.f32.mrf.mxu3 }
 0x274   : > { %v2443_v53 = vpop.f32.mrf.mxu2  ;;  %v2254_v33 = vadd.f32 %v2192_v42, %v5332_v50  ;;  %v5552_v26 = vadd.f32 %v2695_v58, %v2506_v56  ;;  %v2558_v58 = vld [vmem:[#allocation2 + $0x117] sm:$0xff] }
 0x275   : > { %v2507_v25 = vadd.f32 %v2443_v53, %v2253_v41 }
 0x276   : > { %3907 = vmatmul.msk.bf16.gmra.mxu1 %vm505_vm1, %v5548_v19 }
 0x277   : > { %v2012_v23 = vpop.f32.mrf.mxu0 }
 0x278   : > { %v5557_v16 = vadd.f32 %v2012_v23, %v5386_v48  ;;  %v2082_v48 = vld [vmem:[#allocation2 + $0x108] sm:$0xff] }
 0x279   : > { %3924 = vmatmul.msk.bf16.gmra.mxu2 %vm505_vm1, %v2352_v62  ;;  %v2559_v62 = vld [vmem:[#allocation2 + $0x11f] sm:$0xff]  ;;  %v6301_v23 = vld [vmem:[#allocation78_spill] sm:$0xff] }
 0x27b   : > { %v2194_v50 = vpop.f32.mrf.mxu1  ;;  %v2697_v38 = vpop.f32.mrf.mxu3 }
 0x27c   : > { %v2446_v40 = vpop.f32.mrf.mxu2  ;;  %v2255_v1 = vadd.f32 %v2194_v50, %v5348_v44  ;;  %v5561_v8 = vadd.f32 %v2697_v38, %v2507_v25  ;;  %v6297_v44 = vld [vmem:[#allocation84_spill] sm:$0xff]  ;;  %v2590_v25 = vmul.f32 %v2558_v58, %v6301_v23 }
 0x27d   : > { %v2508_v12 = vadd.f32 %v2446_v40, %v2254_v33  ;;  %v2336_v41 = vmul.f32 %v6297_v44, %v5135_v5  ;;  %v5577_v33 = vpack.c.bf16 %v2083_v29, %v2082_v48 }
 0x27f   : > { %v2015_v31 = vpop.f32.mrf.mxu0  ;;  %v2353_v45 = vpack.c.bf16 %v2337_v28, %v2336_v41 }
 0x280   : > { %v5564_v56 = vadd.f32 %v2015_v31, %v5399_v34  ;;  %3941 = vmatmul.msk.bf16.gmra.mxu3 %vm505_vm1, %v6296_v47  ;;  %v6300_v34 = vld [vmem:[#allocation66_spill] sm:$0xff]  ;;  %v6302_v31 = vld [vmem:[#allocation79_spill] sm:$0xff] }
 0x282   : > { %3951 = vmatmul.msk.bf16.gmra.mxu0 %vm505_vm1, %v5396_v13 }
 0x283   : > { %v2197_v37 = vpop.f32.mrf.mxu1  ;;  %v2700_v21 = vpop.f32.mrf.mxu3 }
 0x284   : > { %v2448_v42 = vpop.f32.mrf.mxu2  ;;  %v2256_v53 = vadd.f32 %v2197_v37, %v6300_v34  ;;  %v5579_v57 = vadd.f32 %v2700_v21, %v2508_v12  ;;  %v2591_v12 = vmul.f32 %v2559_v62, %v6302_v31  ;;  %v6303_v34 = vld [vmem:[#allocation6_spill] sm:$0xff] }
 0x285   : > { %v2509_v50 = vadd.f32 %v2448_v42, %v2255_v1 }
 0x286   : > { %3908 = vmatmul.msk.bf16.gmra.mxu1 %vm505_vm1, %v5577_v33  ;;  %v2607_v41 = vpack.c.bf16 %v2591_v12, %v2590_v25 }
 0x287   : > { %v2017_v13 = vpop.f32.mrf.mxu0 }
 0x288   : > { %v5584_v11 = vadd.f32 %v2017_v13, %v5410_v10 }
 0x289   : > { %3925 = vmatmul.msk.bf16.gmra.mxu2 %vm505_vm1, %v2353_v45 }
 0x28b   : > { %v2199_v40 = vpop.f32.mrf.mxu1  ;;  %v2702_v29 = vpop.f32.mrf.mxu3 }
 0x28c   : > { %v2451_v38 = vpop.f32.mrf.mxu2  ;;  %v2257_v47 = vadd.f32 %v2199_v40, %v5381_v27  ;;  %v5590_v44 = vadd.f32 %v2702_v29, %v2509_v50  ;;  %v6307_v29 = vld [vmem:[#allocation7_spill] sm:$0xff] }
 0x28d   : > { %v2510_v48 = vadd.f32 %v2451_v38, %v2256_v53  ;;  %v6304_v53 = vld [vmem:[#allocation5_spill] sm:$0xff] }
 0x28e   : > { %v6305_v21 = vpack.c.bf16 %v6303_v34, %v6304_v53  ;;  %v4060_v38 = vld [vmem:[%s4173_s30] sm:$0xff]  ;;  %v3009_v53 = vld [vmem:[#allocation2 + $0x51] sm:$0xff] }
 0x28f   : > { %v2892_v54 = vpop.f32.mrf.mxu0 }
 0x290   : > { %v5593_v10 = vadd.f32 %v2892_v54, %v5423_v9  ;;  %3942 = vmatmul.msk.bf16.gmra.mxu3 %vm505_vm1, %v2607_v41 }
 0x292   : > { %3952 = vmatmul.msk.bf16.gmra.mxu0 %vm505_vm1, %v5420_v59 }
 0x293   : > { %v2202_v1 = vpop.f32.mrf.mxu1  ;;  %v2705_v27 = vpop.f32.mrf.mxu3 }
 0x294   : > { %v2453_v28 = vpop.f32.mrf.mxu2  ;;  %v2258_v37 = vadd.f32 %v2202_v1, %v5389_v7  ;;  %v5599_v42 = vadd.f32 %v2705_v27, %v2510_v48  ;;  %v6306_v48 = vld [vmem:[#allocation8_spill] sm:$0xff] }
 0x295   : > { %v2511_v13 = vadd.f32 %v2453_v28, %v2257_v47  ;;  %v6308_v41 = vpack.c.bf16 %v6306_v48, %v6307_v29 }
 0x296   : > { %3961 = vmatmul.msk.bf16.vlgmr.msra.gmra.mxu1 %vm505_vm1, %v6305_v21 }
 0x297   : > { %v2894_v9 = vpop.f32.mrf.mxu0 }
 0x298   : > { %v5606_v45 = vadd.f32 %v2894_v9, %v5434_v55  ;;  %v3008_v9 = vld [vmem:[#allocation2 + $0x49] sm:$0xff] }
 0x29b   : > { %v2204_v58 = vpop.f32.mrf.mxu1  ;;  %v2707_v25 = vpop.f32.mrf.mxu3 }
 0x29c   : > { %v2456_v59 = vpop.f32.mrf.mxu2  ;;  %v2259_v62 = vadd.f32 %v2204_v58, %v5404_v39  ;;  %v5609_v7 = vadd.f32 %v2707_v25, %v2511_v13  ;;  %v6309_v58 = vld [vmem:[#allocation4_spill] sm:$0xff] }
 0x29d   : > { %v2512_v23 = vadd.f32 %v2456_v59, %v2258_v37  ;;  %v3041_v59 = vmul.f32 %v3009_v53, %v6309_v58  ;;  %v6311_v53 = vld [vmem:[#allocation18_spill] sm:$0xff] }
 0x29f   : > { %v2897_v50 = vpop.f32.mrf.mxu0 }
 0x2a0   : > { %v5612_v40 = vadd.f32 %v2897_v50, %v5448_v35  ;;  %3993 = vmatmul.msk.bf16.vlgmr.msra.gmra.mxu3 %vm505_vm1, %v4060_v38 }
 0x2a2   : > { %3953 = vmatmul.msk.bf16.gmra.mxu0 %vm505_vm1, %v5445_v17 }
 0x2a3   : > { %v2207_v55 = vpop.f32.mrf.mxu1  ;;  %v2710_v47 = vpop.f32.mrf.mxu3 }
 0x2a4   : > { %v2458_v31 = vpop.f32.mrf.mxu2  ;;  %v2260_v12 = vadd.f32 %v2207_v55, %v5413_v52  ;;  %v5619_v39 = vadd.f32 %v2710_v47, %v2512_v23  ;;  %v4061_v23 = vld [vmem:[%s4173_s30 + $0x8] sm:$0xff] }
 0x2a5   : > { %v2513_v1 = vadd.f32 %v2458_v31, %v2259_v62 }
 0x2a6   : > { %3962 = vmatmul.msk.bf16.gmra.mxu1 %vm505_vm1, %v6308_v41 }
 0x2a7   : > { %v2899_v35 = vpop.f32.mrf.mxu0 }
 0x2a8   : > { %v5626_v54 = vadd.f32 %v2899_v35, %v5459_v30  ;;  %v6310_v30 = vld [vmem:[#allocation3_spill] sm:$0xff] }
 0x2ab   : > { %v2209_v28 = vpop.f32.mrf.mxu1  ;;  %v2712_v52 = vpop.f32.mrf.mxu3 }
 0x2ac   : > { %v2461_v17 = vpop.f32.mrf.mxu2  ;;  %v2261_v37 = vadd.f32 %v2209_v28, %v5428_v4  ;;  %v5629_v34 = vadd.f32 %v2712_v52, %v2513_v1  ;;  %v3040_v4 = vmul.f32 %v3008_v9, %v6310_v30 }
 0x2ad   : > { %v2514_v27 = vadd.f32 %v2461_v17, %v2260_v12  ;;  %v4062_v17 = vld [vmem:[%s4173_s30 + $0x10] sm:$0xff] }
 0x2ae   : > { %v3070_v55 = vpack.c.bf16 %v3041_v59, %v3040_v4 }
 0x2af   : > { %v2902_v21 = vpop.f32.mrf.mxu0 }
 0x2b0   : > { %v5632_v13 = vadd.f32 %v2902_v21, %v5474_v6  ;;  %3994 = vmatmul.msk.bf16.gmra.mxu3 %vm505_vm1, %v4061_v23  ;;  %v6312_v21 = vld [vmem:[#allocation17_spill] sm:$0xff] }
 0x2b1   : > { %v6313_v9 = vpack.c.bf16 %v6311_v53, %v6312_v21  ;;  %v6317_v21 = vld [vmem:[#allocation30_spill] sm:$0xff] }
 0x2b2   : > { %3954 = vmatmul.msk.bf16.gmra.mxu0 %vm505_vm1, %v5470_v22 }
 0x2b3   : > { %v2212_v62 = vpop.f32.mrf.mxu1  ;;  %v2715_v38 = vpop.f32.mrf.mxu3 }
 0x2b4   : > { %v2463_v25 = vpop.f32.mrf.mxu2  ;;  %v2262_v50 = vadd.f32 %v2212_v62, %v5437_v49  ;;  %v5641_v31 = vadd.f32 %v2715_v38, %v2514_v27 }
 0x2b5   : > { %v2515_v47 = vadd.f32 %v2463_v25, %v2261_v37  ;;  %v4063_v25 = vld [vmem:[%s4173_s30 + $0x18] sm:$0xff] }
 0x2b6   : > { %3963 = vmatmul.msk.bf16.gmra.mxu1 %vm505_vm1, %v3070_v55 }
 0x2b7   : > { %v2904_v6 = vpop.f32.mrf.mxu0 }
 0x2b8   : > { %v5645_v12 = vadd.f32 %v2904_v6, %v5485_v46 }
 0x2bb   : > { %v2214_v48 = vpop.f32.mrf.mxu1  ;;  %v2717_v35 = vpop.f32.mrf.mxu3 }
 0x2bc   : > { %v2466_v22 = vpop.f32.mrf.mxu2  ;;  %v2263_v29 = vadd.f32 %v2214_v48, %v5453_v32  ;;  %v5648_v1 = vadd.f32 %v2717_v35, %v2515_v47  ;;  %v6314_v47 = vld [vmem:[#allocation24_spill] sm:$0xff] }
 0x2bd   : > { %v2516_v41 = vadd.f32 %v2466_v22, %v2262_v50 }
 0x2bf   : > { %v2907_v49 = vpop.f32.mrf.mxu0 }
 0x2c0   : > { %v5651_v28 = vadd.f32 %v2907_v49, %v5500_v15  ;;  %3995 = vmatmul.msk.bf16.gmra.mxu3 %vm505_vm1, %v4062_v17 }
 0x2c2   : > { %3955 = vmatmul.msk.bf16.gmra.mxu0 %vm505_vm1, %v5496_v63 }
 0x2c3   : > { %v2217_v46 = vpop.f32.mrf.mxu1  ;;  %v2720_v32 = vpop.f32.mrf.mxu3 }
 0x2c4   : > { %v2468_v37 = vpop.f32.mrf.mxu2  ;;  %v2264_v27 = vadd.f32 %v2217_v46, %v5462_v60  ;;  %v5658_v52 = vadd.f32 %v2720_v32, %v2516_v41  ;;  %v4064_v46 = vld [vmem:[%s4173_s30 + $0x20] sm:$0xff] }
 0x2c5   : > { %v2517_v59 = vadd.f32 %v2468_v37, %v2263_v29 }
 0x2c6   : > { %3964 = vmatmul.msk.bf16.gmra.mxu1 %vm505_vm1, %v6313_v9 }
 0x2c7   : > { %v2909_v15 = vpop.f32.mrf.mxu0 }
 0x2c8   : > { %v5665_v58 = vadd.f32 %v2909_v15, %v5511_v61 }
 0x2cb   : > { %v2219_v23 = vpop.f32.mrf.mxu1  ;;  %v2722_v62 = vpop.f32.mrf.mxu3 }
 0x2cc   : > { %v2471_v63 = vpop.f32.mrf.mxu2  ;;  %v2265_v30 = vadd.f32 %v2219_v23, %v5479_v43  ;;  %v5668_v60 = vadd.f32 %v2722_v62, %v2517_v59  ;;  %v6315_v43 = vld [vmem:[#allocation21_spill] sm:$0xff]  ;;  %v4065_v62 = vld [vmem:[%s4173_s30 + $0x28] sm:$0xff] }
 0x2cd   : > { %v2518_v4 = vadd.f32 %v2471_v63, %v2264_v27  ;;  %v6316_v48 = vpack.c.bf16 %v6314_v47, %v6315_v43 }
 0x2d0   : > { %3996 = vmatmul.msk.bf16.gmra.mxu3 %vm505_vm1, %v4063_v25 }
 0x2d2   : > { %3956 = vmatmul.msk.bf16.gmra.mxu0 %vm505_vm1, %v5522_v14 }
 0x2d3   : > { %v2222_v50 = vpop.f32.mrf.mxu1  ;;  %v2725_v55 = vpop.f32.mrf.mxu3 }
 0x2d4   : > { %v2473_v38 = vpop.f32.mrf.mxu2  ;;  %v2266_v61 = vadd.f32 %v2222_v50, %v5488_v20  ;;  %v5675_v6 = vadd.f32 %v2725_v55, %v2518_v4  ;;  %v6320_v55 = vld [vmem:[#allocation36_spill] sm:$0xff] }
 0x2d5   : > { %v2519_v22 = vadd.f32 %v2473_v38, %v2265_v30 }
 0x2d6   : > { %3965 = vmatmul.msk.bf16.gmra.mxu1 %vm505_vm1, %v6316_v48 }
 0x2db   : > { %v2224_v29 = vpop.f32.mrf.mxu1  ;;  %v2727_v17 = vpop.f32.mrf.mxu3 }
 0x2dc   : > { %v2476_v41 = vpop.f32.mrf.mxu2  ;;  %v2267_v35 = vadd.f32 %v2224_v29, %v5505_v2  ;;  %v5682_v14 = vadd.f32 %v2727_v17, %v2519_v22  ;;  %v6318_v2 = vld [vmem:[#allocation29_spill] sm:$0xff]  ;;  %v2812_v29 = vld [vmem:[#allocation2 + $0x118] sm:$0xff] }
 0x2dd   : > { %v2520_v49 = vadd.f32 %v2476_v41, %v2266_v61  ;;  %v6319_v9 = vpack.c.bf16 %v6317_v21, %v6318_v2  ;;  %v2813_v41 = vld [vmem:[#allocation2 + $0x120] sm:$0xff]  ;;  %v6323_v2 = vld [vmem:[#allocation42_spill] sm:$0xff] }
 0x2e0   : > { %3997 = vmatmul.msk.bf16.gmra.mxu3 %vm505_vm1, %v4064_v46  ;;  %v4066_v46 = vld [vmem:[%s4173_s30 + $0x30] sm:$0xff] }
 0x2e2   : > { %3957 = vmatmul.msk.bf16.gmra.mxu0 %vm505_vm1, %v5548_v19 }
 0x2e3   : > { %v2227_v20 = vpop.f32.mrf.mxu1  ;;  %v2730_v32 = vpop.f32.mrf.mxu3 }
 0x2e4   : > { %v2478_v37 = vpop.f32.mrf.mxu2  ;;  %v2268_v27 = vadd.f32 %v2227_v20, %v5514_v51  ;;  %v5689_v53 = vadd.f32 %v2730_v32, %v2520_v49 }
 0x2e5   : > { %v2521_v15 = vadd.f32 %v2478_v37, %v2267_v35 }
 0x2e6   : > { %3966 = vmatmul.msk.bf16.gmra.mxu1 %vm505_vm1, %v6319_v9 }
 0x2eb   : > { %v2229_v59 = vpop.f32.mrf.mxu1  ;;  %v2732_v4 = vpop.f32.mrf.mxu3 }
 0x2ec   : > { %v2481_v23 = vpop.f32.mrf.mxu2  ;;  %v2269_v63 = vadd.f32 %v2229_v59, %v5531_v3  ;;  %v5696_v19 = vadd.f32 %v2732_v4, %v2521_v15  ;;  %v6321_v3 = vld [vmem:[#allocation35_spill] sm:$0xff] }
 0x2ed   : > { %v2522_v30 = vadd.f32 %v2481_v23, %v2268_v27  ;;  %v6322_v47 = vpack.c.bf16 %v6320_v55, %v6321_v3  ;;  %v6327_v55 = vld [vmem:[#allocation47_spill] sm:$0xff] }
 0x2f0   : > { %3998 = vmatmul.msk.bf16.gmra.mxu3 %vm505_vm1, %v4065_v62 }
 0x2f2   : > { %3958 = vmatmul.msk.bf16.gmra.mxu0 %vm505_vm1, %v5577_v33 }
 0x2f3   : > { %v2232_v51 = vpop.f32.mrf.mxu1  ;;  %v2735_v38 = vpop.f32.mrf.mxu3 }
 0x2f4   : > { %v2483_v25 = vpop.f32.mrf.mxu2  ;;  %v2270_v50 = vadd.f32 %v2232_v51, %v5540_v18  ;;  %v5703_v61 = vadd.f32 %v2735_v38, %v2522_v30  ;;  %v2829_v18 = vpack.c.bf16 %v2813_v41, %v2812_v29  ;;  %v6326_v38 = vld [vmem:[#allocation48_spill] sm:$0xff]  ;;  %v2912_v41 = vpop.f32.mrf.mxu0 }
 0x2f5   : > { %v2523_v43 = vadd.f32 %v2483_v25, %v2269_v63  ;;  %v6328_v3 = vpack.c.bf16 %v6326_v38, %v6327_v55 }
 0x2f6   : > { %3967 = vmatmul.msk.bf16.gmra.mxu1 %vm505_vm1, %v6322_v47  ;;  %v5739_v47 = vld [vmem:[%s6044_s4] ss:$0 sm:$0xff] }
 0x2fb   : > { %v2234_v48 = vpop.f32.mrf.mxu1  ;;  %v2737_v49 = vpop.f32.mrf.mxu3 }
 0x2fc   : > { %v2486_v22 = vpop.f32.mrf.mxu2  ;;  %v2271_v33 = vadd.f32 %v2234_v48, %v5557_v16  ;;  %v5710_v17 = vadd.f32 %v2737_v49, %v2523_v43  ;;  %v6324_v16 = vld [vmem:[#allocation41_spill] sm:$0xff] }
 0x2fd   : > { %v2524_v35 = vadd.f32 %v2486_v22, %v2270_v50  ;;  %v6325_v9 = vpack.c.bf16 %v6323_v2, %v6324_v16  ;;  %v4068_v49 = vld [vmem:[%s4173_s30 + $0x40] sm:$0xff] }
 0x300   : > { %3999 = vmatmul.msk.bf16.gmra.mxu3 %vm505_vm1, %v4066_v46  ;;  %v6329_v46 = vld [vmem:[#allocation55_spill] sm:$0xff] }
 0x302   : > { %3959 = vmatmul.msk.bf16.gmra.mxu0 %vm505_vm1, %v2829_v18 }
 0x303   : > { %v2237_v20 = vpop.f32.mrf.mxu1  ;;  %v2740_v32 = vpop.f32.mrf.mxu3 }
 0x304   : > { %v2488_v37 = vpop.f32.mrf.mxu2  ;;  %v2272_v27 = vadd.f32 %v2237_v20, %v5564_v56  ;;  %v5716_v21 = vadd.f32 %v2740_v32, %v2524_v35  ;;  %v4067_v56 = vld [vmem:[%s4173_s30 + $0x38] sm:$0xff]  ;;  %v6330_v20 = vld [vmem:[#allocation54_spill] sm:$0xff] }
 0x305   : > { %v2525_v15 = vadd.f32 %v2488_v37, %v2271_v33  ;;  %v6331_v37 = vpack.c.bf16 %v6329_v46, %v6330_v20 }
 0x306   : > { %3968 = vmatmul.msk.bf16.gmra.mxu1 %vm505_vm1, %v6325_v9 }
 0x30b   : > { %v2239_v59 = vpop.f32.mrf.mxu1  ;;  %v2742_v4 = vpop.f32.mrf.mxu3 }
 0x30c   : > { %v2491_v23 = vpop.f32.mrf.mxu2  ;;  %v5723_v63 = vadd.f32 %v2239_v59, %v5584_v11  ;;  %v5725_v62 = vadd.f32 %v2742_v4, %v2525_v15 }
 0x30d   : > { %v2526_v30 = vadd.f32 %v2491_v23, %v2272_v27  ;;  %v2914_v27 = vpop.f32.mrf.mxu0  ;;  %v4069_v23 = vld [vmem:[%s4173_s30 + $0x48] sm:$0xff] }
 0x310   : > { %4000 = vmatmul.msk.bf16.gmra.mxu3 %vm505_vm1, %v4067_v56 }
 0x313   : > { %v3146_v51 = vpop.f32.mrf.mxu1  ;;  %v2745_v25 = vpop.f32.mrf.mxu3 }
 0x314   : > { %v5729_v50 = vadd.f32 %v2745_v25, %v2526_v30  ;;  %v3226_v11 = vadd.f32 %v3146_v51, %v5593_v10  ;;  %v6333_v51 = vld [vmem:[#allocation62_spill] sm:$0xff] }
 0x315   : > { %v2917_v56 = vpop.f32.mrf.mxu0 }
 0x316   : > { %3969 = vmatmul.msk.bf16.gmra.mxu1 %vm505_vm1, %v6328_v3  ;;  %v3262_v48 = vadd.f32 %v5739_v47, %v3226_v11 }
 0x318   : > { %v3294_v33 = vmax.f32 %v3262_v48, 0.0 }
 0x31b   : > { %v3148_v43 = vpop.f32.mrf.mxu1 }
 0x31c   : > { %v3227_v22 = vadd.f32 %v3148_v43, %v5606_v45 }
 0x31d   : > { %v2919_v11 = vpop.f32.mrf.mxu0 }
 0x31e   : > { %v3263_v29 = vadd.f32 %v5739_v47, %v3227_v22 }
 0x320   : > { %v3295_v35 = vmax.f32 %v3263_v29, 0.0  ;;  %4001 = vmatmul.msk.bf16.gmra.mxu3 %vm505_vm1, %v4068_v49  ;;  %v4070_v29 = vld [vmem:[%s4173_s30 + $0x50] sm:$0xff]  ;;  %v6335_v49 = vld [vmem:[#allocation70_spill] sm:$0xff] }
 0x322   : > { %v3326_v10 = vpack.c.bf16 %v3295_v35, %v3294_v33 }
 0x323   : > { %v3151_v18 = vpop.f32.mrf.mxu1 }
 0x324   : > { %3977 = vmatmul.msk.bf16.vlgmr.msra.gmra.mxu2 %vm505_vm1, %v3326_v10  ;;  %v3228_v45 = vadd.f32 %v3151_v18, %v5612_v40  ;;  %v6332_v40 = vld [vmem:[#allocation63_spill] sm:$0xff] }
 0x325   : > { %v6334_v25 = vpack.c.bf16 %v6332_v40, %v6333_v51  ;;  %v2922_v18 = vpop.f32.mrf.mxu0  ;;  %v2981_v51 = vadd.f32 %v2914_v27, %v5537_v0  ;;  %v2983_v27 = vadd.f32 %v2919_v11, %v5561_v8 }
 0x326   : > { %3970 = vmatmul.msk.bf16.gmra.mxu1 %vm505_vm1, %v6331_v37  ;;  %v3264_v2 = vadd.f32 %v5739_v47, %v3228_v45 }
 0x328   : > { %v3296_v15 = vmax.f32 %v3264_v2, 0.0 }
 0x32b   : > { %v3153_v32 = vpop.f32.mrf.mxu1 }
 0x32c   : > { %v3229_v16 = vadd.f32 %v3153_v32, %v5626_v54  ;;  %v5777_v32 = vpop.f32.mrf.mxu3 }
 0x32e   : > { %v3265_v9 = vadd.f32 %v5739_v47, %v3229_v16 }
 0x330   : > { %v3297_v59 = vmax.f32 %v3265_v9, 0.0  ;;  %4002 = vmatmul.msk.bf16.gmra.mxu3 %vm505_vm1, %v4069_v23  ;;  %v4071_v9 = vld [vmem:[%s4173_s30 + $0x58] sm:$0xff] }
 0x332   : > { %v3327_v30 = vpack.c.bf16 %v3297_v59, %v3296_v15  ;;  %v2924_v15 = vpop.f32.mrf.mxu0 }
 0x333   : > { %v3156_v4 = vpop.f32.mrf.mxu1  ;;  %v2985_v11 = vadd.f32 %v2924_v15, %v5590_v44 }
 0x334   : > { %3978 = vmatmul.msk.bf16.gmra.mxu2 %vm505_vm1, %v3327_v30  ;;  %v3230_v54 = vadd.f32 %v3156_v4, %v5632_v13  ;;  %v6336_v13 = vld [vmem:[#allocation69_spill] sm:$0xff]  ;;  %v6339_v4 = vld [vmem:[#allocation76_spill] sm:$0xff] }
 0x335   : > { %v6337_v10 = vpack.c.bf16 %v6335_v49, %v6336_v13  ;;  %v6338_v30 = vld [vmem:[#allocation77_spill] sm:$0xff] }
 0x336   : > { %3971 = vmatmul.msk.bf16.gmra.mxu1 %vm505_vm1, %v6334_v25  ;;  %v3266_v55 = vadd.f32 %v5739_v47, %v3230_v54  ;;  %v6340_v40 = vpack.c.bf16 %v6338_v30, %v6339_v4 }
 0x338   : > { %v3298_v48 = vmax.f32 %v3266_v55, 0.0 }
 0x33a   : > { %v2927_v54 = vpop.f32.mrf.mxu0 }
 0x33b   : > { %v3158_v38 = vpop.f32.mrf.mxu1 }
 0x33c   : > { %v3231_v3 = vadd.f32 %v3158_v38, %v5645_v12 }
 0x33e   : > { %v3267_v43 = vadd.f32 %v5739_v47, %v3231_v3 }
 0x340   : > { %v3299_v22 = vmax.f32 %v3267_v43, 0.0  ;;  %4003 = vmatmul.msk.bf16.gmra.mxu3 %vm505_vm1, %v4070_v29 }
 0x342   : > { %v3328_v33 = vpack.c.bf16 %v3299_v22, %v3298_v48 }
 0x343   : > { %v3161_v35 = vpop.f32.mrf.mxu1 }
 0x344   : > { %3979 = vmatmul.msk.bf16.gmra.mxu2 %vm505_vm1, %v3328_v33  ;;  %v3232_v12 = vadd.f32 %v3161_v35, %v5651_v28  ;;  %v2980_v28 = vadd.f32 %v2912_v41, %v5526_v24  ;;  %v2982_v24 = vadd.f32 %v2917_v56, %v5552_v26  ;;  %v2929_v41 = vpop.f32.mrf.mxu0  ;;  %v6341_v33 = vld [vmem:[#allocation83_spill] sm:$0xff]  ;;  %v6342_v35 = vld [vmem:[#allocation82_spill] sm:$0xff]  ;;  %v2984_v56 = vadd.f32 %v2922_v18, %v5579_v57 }
 0x345   : > { %v6343_v49 = vpack.c.bf16 %v6341_v33, %v6342_v35 }
 0x346   : > { %3972 = vmatmul.msk.bf16.gmra.mxu1 %vm505_vm1, %v6337_v10  ;;  %v3268_v20 = vadd.f32 %v5739_v47, %v3232_v12 }
 0x348   : > { %v3300_v2 = vmax.f32 %v3268_v20, 0.0 }
 0x34b   : > { %v3163_v46 = vpop.f32.mrf.mxu1 }
 0x34c   : > { %v3233_v37 = vadd.f32 %v3163_v46, %v5665_v58  ;;  %v2932_v20 = vpop.f32.mrf.mxu0 }
 0x34e   : > { %v3269_v45 = vadd.f32 %v5739_v47, %v3233_v37 }
 0x350   : > { %v3301_v16 = vmax.f32 %v3269_v45, 0.0  ;;  %4004 = vmatmul.msk.bf16.gmra.mxu3 %vm505_vm1, %v4071_v9  ;;  %v6345_v9 = vld [vmem:[#allocation86_spill] sm:$0xff] }
 0x352   : > { %v3329_v59 = vpack.c.bf16 %v3301_v16, %v3300_v2  ;;  %v6344_v16 = vld [vmem:[#allocation87_spill] sm:$0xff] }
 0x353   : > { %v3166_v23 = vpop.f32.mrf.mxu1 }
 0x354   : > { %3980 = vmatmul.msk.bf16.gmra.mxu2 %vm505_vm1, %v3329_v59  ;;  %v3234_v58 = vadd.f32 %v3166_v23, %v2980_v28  ;;  %v6346_v59 = vpack.c.bf16 %v6344_v16, %v6345_v9  ;;  %v2934_v23 = vpop.f32.mrf.mxu0  ;;  %v5827_v9 = vpop.f32.mrf.mxu2 }
 0x356   : > { %3973 = vmatmul.msk.bf16.gmra.mxu1 %vm505_vm1, %v6340_v40  ;;  %v3270_v38 = vadd.f32 %v5739_v47, %v3234_v58  ;;  %v3034_v40 = vld [vmem:[#allocation2 + $0x119] sm:$0xff]  ;;  %v3035_v58 = vld [vmem:[#allocation2 + $0x121] sm:$0xff] }
 0x357   : > { %v3066_v57 = vmul.f32 %v3034_v40, %v5135_v5  ;;  %v3067_v18 = vmul.f32 %v3035_v58, %v6298_v36  ;;  %v4072_v5 = vld [vmem:[%s4173_s30 + $0x60] sm:$0xff] }
 0x358   : > { %v3302_v43 = vmax.f32 %v3270_v38, 0.0 }
 0x359   : > { %v3083_v44 = vpack.c.bf16 %v3067_v18, %v3066_v57 }
 0x35b   : > { %v3168_v25 = vpop.f32.mrf.mxu1 }
 0x35c   : > { %v3235_v55 = vadd.f32 %v3168_v25, %v2981_v51  ;;  %v2937_v15 = vpop.f32.mrf.mxu0 }
 0x35e   : > { %v3271_v3 = vadd.f32 %v5739_v47, %v3235_v55 }
 0x360   : > { %v3303_v48 = vmax.f32 %v3271_v3, 0.0  ;;  %v3504_v3 = vpop.f32.mrf.mxu3 }
 0x362   : > { %v3330_v22 = vpack.c.bf16 %v3303_v48, %v3302_v43  ;;  %v2986_v48 = vadd.f32 %v2927_v54, %v5599_v42 }
 0x363   : > { %v3171_v29 = vpop.f32.mrf.mxu1 }
 0x364   : > { %3981 = vmatmul.msk.bf16.gmra.mxu2 %vm505_vm1, %v3330_v22  ;;  %v3236_v0 = vadd.f32 %v3171_v29, %v2982_v24  ;;  %v2987_v29 = vadd.f32 %v2929_v41, %v5609_v7  ;;  %v2988_v7 = vadd.f32 %v2932_v20, %v5619_v39 }
 0x366   : > { %3974 = vmatmul.msk.bf16.gmra.mxu1 %vm505_vm1, %v6343_v49  ;;  %v3272_v10 = vadd.f32 %v5739_v47, %v3236_v0  ;;  %v2939_v49 = vpop.f32.mrf.mxu0 }
 0x367   : > { %v2991_v57 = vadd.f32 %v2939_v49, %v5648_v1 }
 0x368   : > { %v3304_v37 = vmax.f32 %v3272_v10, 0.0  ;;  %v3506_v24 = vpop.f32.mrf.mxu3  ;;  %4005 = vmatmul.msk.bf16.gmra.mxu3 %vm505_vm1, %v4072_v5 }
 0x36b   : > { %v3173_v13 = vpop.f32.mrf.mxu1 }
 0x36c   : > { %v3237_v12 = vadd.f32 %v3173_v13, %v2983_v27 }
 0x36e   : > { %v3273_v46 = vadd.f32 %v5739_v47, %v3237_v12  ;;  %v2942_v41 = vpop.f32.mrf.mxu0 }
 0x370   : > { %v3305_v45 = vmax.f32 %v3273_v46, 0.0  ;;  %v3509_v54 = vpop.f32.mrf.mxu3  ;;  %v2989_v46 = vadd.f32 %v2934_v23, %v5629_v34  ;;  %v5832_v34 = vld [vmem:[%s6048_s8] ss:$0 sm:$0xff] }
 0x372   : > { %v3331_v2 = vpack.c.bf16 %v3305_v45, %v3304_v37  ;;  %v4073_v45 = vld [vmem:[%s4173_s30 + $0x68] sm:$0xff] }
 0x373   : > { %v3176_v26 = vpop.f32.mrf.mxu1 }
 0x374   : > { %3982 = vmatmul.msk.bf16.gmra.mxu2 %vm505_vm1, %v3331_v2  ;;  %v3238_v8 = vadd.f32 %v3176_v26, %v2984_v56 }
 0x376   : > { %3975 = vmatmul.msk.bf16.gmra.mxu1 %vm505_vm1, %v6346_v59  ;;  %v3274_v30 = vadd.f32 %v5739_v47, %v3238_v8  ;;  %v2944_v20 = vpop.f32.mrf.mxu0 }
 0x378   : > { %v3306_v25 = vmax.f32 %v3274_v30, 0.0  ;;  %v5821_v37 = vpop.f32.mrf.mxu3  ;;  %4006 = vmatmul.msk.bf16.gmra.mxu3 %vm505_vm1, %v4073_v45  ;;  %v2990_v30 = vadd.f32 %v2937_v15, %v5641_v31 }
 0x37b   : > { %v3178_v28 = vpop.f32.mrf.mxu1 }
 0x37c   : > { %v3239_v4 = vadd.f32 %v3178_v28, %v2985_v11  ;;  %v5840_v28 = vld [vmem:[%s6046_s6] ss:$0 sm:$0xff] }
 0x37e   : > { %v3275_v51 = vadd.f32 %v5739_v47, %v3239_v4  ;;  %v3505_v4 = vadd.f32 %v5832_v34, %v3504_v3 }
 0x380   : > { %v3307_v38 = vmax.f32 %v3275_v51, 0.0  ;;  %v5834_v11 = vpop.f32.mrf.mxu3 }
 0x382   : > { %v3332_v55 = vpack.c.bf16 %v3307_v38, %v3306_v25  ;;  %v4074_v38 = vld [vmem:[%s4173_s30 + $0x70] sm:$0xff] }
 0x383   : > { %v3181_v43 = vpop.f32.mrf.mxu1 }
 0x384   : > { %3983 = vmatmul.msk.bf16.gmra.mxu2 %vm505_vm1, %v3332_v55  ;;  %v3240_v22 = vadd.f32 %v3181_v43, %v2986_v48  ;;  %v2947_v55 = vpop.f32.mrf.mxu0 }
 0x386   : > { %3976 = vmatmul.msk.bf16.gmra.mxu1 %vm505_vm1, %v3083_v44  ;;  %v3276_v33 = vadd.f32 %v5739_v47, %v3240_v22  ;;  %v3507_v22 = vadd.f32 %v5832_v34, %v3506_v24  ;;  %v3510_v24 = vadd.f32 %v5832_v34, %v3509_v54 }
 0x388   : > { %v3308_v27 = vmax.f32 %v3276_v33, 0.0  ;;  %v5847_v25 = vpop.f32.mrf.mxu3  ;;  %4007 = vmatmul.msk.bf16.gmra.mxu3 %vm505_vm1, %v4074_v38 }
 0x38b   : > { %v3183_v36 = vpop.f32.mrf.mxu1 }
 0x38c   : > { %v3241_v35 = vadd.f32 %v3183_v36, %v2987_v29 }
 0x38e   : > { %v3277_v0 = vadd.f32 %v5739_v47, %v3241_v35 }
 0x390   : > { %v3309_v13 = vmax.f32 %v3277_v0, 0.0  ;;  %v5862_v35 = vpop.f32.mrf.mxu3 }
 0x392   : > { %v3333_v42 = vpack.c.bf16 %v3309_v13, %v3308_v27  ;;  %v2992_v27 = vadd.f32 %v2942_v41, %v5658_v52  ;;  %v2949_v13 = vpop.f32.mrf.mxu0 }
 0x393   : > { %v3186_v10 = vpop.f32.mrf.mxu1 }
 0x394   : > { %3984 = vmatmul.msk.bf16.gmra.mxu2 %vm505_vm1, %v3333_v42  ;;  %v3242_v12 = vadd.f32 %v3186_v10, %v2988_v7 }
 0x396   : > { %v3278_v26 = vadd.f32 %v5739_v47, %v3242_v12  ;;  %v2993_v12 = vadd.f32 %v2944_v20, %v5668_v60  ;;  %v3512_v60 = vadd.f32 %v5832_v34, %v5821_v37 }
 0x398   : > { %v3310_v59 = vmax.f32 %v3278_v26, 0.0  ;;  %v5871_v45 = vpop.f32.mrf.mxu3 }
 0x39b   : > { %v3188_v2 = vpop.f32.mrf.mxu1 }
 0x39c   : > { %v3243_v56 = vadd.f32 %v3188_v2, %v2989_v46  ;;  %v4075_v2 = vld [vmem:[%s4173_s30 + $0x78] sm:$0xff] }
 0x39d   : > { %4008 = vmatmul.msk.bf16.gmra.mxu3 %vm505_vm1, %v4075_v2 }
 0x39e   : > { %v3279_v16 = vadd.f32 %v5739_v47, %v3243_v56 }
 0x3a0   : > { %v3311_v39 = vmax.f32 %v3279_v16, 0.0 }
 0x3a2   : > { %v3334_v8 = vpack.c.bf16 %v3311_v39, %v3310_v59  ;;  %v2952_v59 = vpop.f32.mrf.mxu0 }
 0x3a3   : > { %v3191_v23 = vpop.f32.mrf.mxu1 }
 0x3a4   : > { %3985 = vmatmul.msk.bf16.gmra.mxu2 %vm505_vm1, %v3334_v8  ;;  %v3244_v58 = vadd.f32 %v3191_v23, %v2990_v30 }
 0x3a6   : > { %v3280_v3 = vadd.f32 %v5739_v47, %v3244_v58 }
 0x3a7   : > { %v3407_v40 = vpop.f32.mrf.mxu2 }
 0x3a8   : > { %v3408_v51 = vadd.f32 %v5840_v28, %v3407_v40  ;;  %v3312_v48 = vmax.f32 %v3280_v3, 0.0 }
 0x3aa   : > { %v3584_v18 = vadd.f32 %v3505_v4, %v3408_v51  ;;  %v3524_v4 = vpop.f32.mrf.mxu3  ;;  %v2994_v51 = vadd.f32 %v2947_v55, %v5675_v6  ;;  %v2954_v3 = vpop.f32.mrf.mxu0 }
 0x3ab   : > { %v3193_v31 = vpop.f32.mrf.mxu1 }
 0x3ac   : > { %v3616_v43 = vmax.f32 %v3584_v18, 0.0  ;;  %v3245_v44 = vadd.f32 %v3193_v31, %v2991_v57  ;;  %v3515_v57 = vadd.f32 %v5832_v34, %v5834_v11  ;;  %v2995_v31 = vadd.f32 %v2949_v13, %v5682_v14 }
 0x3ae   : > { %3649 = vst.msk [vmem:[%s5854_s27] sm:$0xff] %vm3648_vm2, %v3616_v43  ;;  %v3281_v1 = vadd.f32 %v5739_v47, %v3245_v44 }
 0x3af   : > { %v3409_v15 = vpop.f32.mrf.mxu2 }
 0x3b0   : > { %v3313_v29 = vmax.f32 %v3281_v1, 0.0  ;;  %v3410_v5 = vadd.f32 %v5840_v28, %v3409_v15 }
 0x3b2   : > { %v3335_v36 = vpack.c.bf16 %v3313_v29, %v3312_v48  ;;  %v3585_v33 = vadd.f32 %v3507_v22, %v3410_v5  ;;  %v5890_v44 = vpop.f32.mrf.mxu3  ;;  %v3517_v29 = vadd.f32 %v5832_v34, %v5847_v25 }
 0x3b3   : > { %v3196_v49 = vpop.f32.mrf.mxu1 }
 0x3b4   : > { %v3617_v0 = vmax.f32 %v3585_v33, 0.0  ;;  %3986 = vmatmul.msk.bf16.gmra.mxu2 %vm505_vm1, %v3335_v36  ;;  %v3246_v10 = vadd.f32 %v3196_v49, %v2992_v27  ;;  %v2957_v27 = vpop.f32.mrf.mxu0 }
 0x3b6   : > { %3650 = vst.msk [vmem:[%s5854_s27 + $0x8] sm:$0xff] %vm3648_vm2, %v3617_v0  ;;  %v3282_v52 = vadd.f32 %v5739_v47, %v3246_v10 }
 0x3b7   : > { %v3412_v42 = vpop.f32.mrf.mxu2 }
 0x3b8   : > { %v3413_v7 = vadd.f32 %v5840_v28, %v3412_v42  ;;  %v3314_v39 = vmax.f32 %v3282_v52, 0.0  ;;  %v3520_v42 = vadd.f32 %v5832_v34, %v5862_v35 }
 0x3ba   : > { %v3586_v46 = vadd.f32 %v3510_v24, %v3413_v7  ;;  %v3529_v49 = vpop.f32.mrf.mxu3  ;;  %v2996_v24 = vadd.f32 %v2952_v59, %v5689_v53  ;;  %v3522_v59 = vadd.f32 %v5832_v34, %v5871_v45 }
 0x3bb   : > { %v3198_v26 = vpop.f32.mrf.mxu1 }
 0x3bc   : > { %v3618_v41 = vmax.f32 %v3586_v46, 0.0  ;;  %v3247_v56 = vadd.f32 %v3198_v26, %v2993_v12  ;;  %v2997_v12 = vadd.f32 %v2954_v3, %v5696_v19  ;;  %v2959_v53 = vpop.f32.mrf.mxu0 }
 0x3be   : > { %3651 = vst.msk [vmem:[%s5854_s27 + $0x10] sm:$0xff] %vm3648_vm2, %v3618_v41  ;;  %v3283_v54 = vadd.f32 %v5739_v47, %v3247_v56 }
 0x3bf   : > { %v3414_v16 = vpop.f32.mrf.mxu2 }
 0x3c0   : > { %v3315_v20 = vmax.f32 %v3283_v54, 0.0  ;;  %v3415_v8 = vadd.f32 %v5840_v28, %v3414_v16 }
 0x3c2   : > { %v3336_v23 = vpack.c.bf16 %v3315_v20, %v3314_v39  ;;  %v3587_v30 = vadd.f32 %v3512_v60, %v3415_v8  ;;  %v5907_v2 = vpop.f32.mrf.mxu3 }
 0x3c3   : > { %v3201_v40 = vpop.f32.mrf.mxu1 }
 0x3c4   : > { %v3619_v58 = vmax.f32 %v3587_v30, 0.0  ;;  %3987 = vmatmul.msk.bf16.gmra.mxu2 %vm505_vm1, %v3336_v23  ;;  %v3248_v37 = vadd.f32 %v3201_v40, %v2994_v51  ;;  %v2998_v40 = vadd.f32 %v2957_v27, %v5703_v61 }
 0x3c6   : > { %3652 = vst.msk [vmem:[%s5854_s27 + $0x18] sm:$0xff] %vm3648_vm2, %v3619_v58  ;;  %v3284_v15 = vadd.f32 %v5739_v47, %v3248_v37  ;;  %v3525_v58 = vadd.f32 %v5832_v34, %v3524_v4  ;;  %v2999_v37 = vadd.f32 %v2959_v53, %v5710_v17 }
 0x3c7   : > { %v3417_v18 = vpop.f32.mrf.mxu2 }
 0x3c8   : > { %v3418_v38 = vadd.f32 %v5840_v28, %v3417_v18  ;;  %v3316_v22 = vmax.f32 %v3284_v15, 0.0 }
 0x3ca   : > { %v3588_v43 = vadd.f32 %v3515_v57, %v3418_v38  ;;  %v3534_v8 = vpop.f32.mrf.mxu3  ;;  %v2962_v57 = vpop.f32.mrf.mxu0 }
 0x3cb   : > { %v3203_v1 = vpop.f32.mrf.mxu1 }
 0x3cc   : > { %v3620_v48 = vmax.f32 %v3588_v43, 0.0  ;;  %v3249_v6 = vadd.f32 %v3203_v1, %v2995_v31 }
 0x3ce   : > { %3653 = vst.msk [vmem:[%s5854_s27 + $0x20] sm:$0xff] %vm3648_vm2, %v3620_v48  ;;  %v3285_v11 = vadd.f32 %v5739_v47, %v3249_v6  ;;  %v3527_v6 = vadd.f32 %v5832_v34, %v5890_v44 }
 0x3cf   : > { %v3419_v55 = vpop.f32.mrf.mxu2 }
 0x3d0   : > { %v3317_v14 = vmax.f32 %v3285_v11, 0.0  ;;  %v3420_v5 = vadd.f32 %v5840_v28, %v3419_v55 }
 0x3d2   : > { %v3337_v36 = vpack.c.bf16 %v3317_v14, %v3316_v22  ;;  %v3589_v33 = vadd.f32 %v3517_v29, %v3420_v5  ;;  %v5923_v31 = vpop.f32.mrf.mxu3  ;;  %v2964_v55 = vpop.f32.mrf.mxu0 }
 0x3d3   : > { %v3206_v0 = vpop.f32.mrf.mxu1 }
 0x3d4   : > { %v3621_v13 = vmax.f32 %v3589_v33, 0.0  ;;  %3988 = vmatmul.msk.bf16.gmra.mxu2 %vm505_vm1, %v3337_v36  ;;  %v3250_v10 = vadd.f32 %v3206_v0, %v2996_v24  ;;  %v3000_v33 = vadd.f32 %v2962_v57, %v5716_v21  ;;  %v3530_v0 = vadd.f32 %v5832_v34, %v3529_v49 }
 0x3d5   : > { %v3001_v24 = vadd.f32 %v2964_v55, %v5725_v62 }
 0x3d6   : > { %3654 = vst.msk [vmem:[%s5854_s27 + $0x28] sm:$0xff] %vm3648_vm2, %v3621_v13  ;;  %v3286_v52 = vadd.f32 %v5739_v47, %v3250_v10 }
 0x3d7   : > { %v3422_v25 = vpop.f32.mrf.mxu2 }
 0x3d8   : > { %v3423_v7 = vadd.f32 %v5840_v28, %v3422_v25  ;;  %v3318_v16 = vmax.f32 %v3286_v52, 0.0 }
 0x3da   : > { %v3590_v46 = vadd.f32 %v3520_v42, %v3423_v7  ;;  %v3539_v5 = vpop.f32.mrf.mxu3  ;;  %v2967_v10 = vpop.f32.mrf.mxu0 }
 0x3db   : > { %v3208_v26 = vpop.f32.mrf.mxu1 }
 0x3dc   : > { %v3622_v41 = vmax.f32 %v3590_v46, 0.0  ;;  %v3251_v56 = vadd.f32 %v3208_v26, %v2997_v12 }
 0x3de   : > { %3655 = vst.msk [vmem:[%s5854_s27 + $0x30] sm:$0xff] %vm3648_vm2, %v3622_v41  ;;  %v3287_v35 = vadd.f32 %v5739_v47, %v3251_v56  ;;  %v3532_v41 = vadd.f32 %v5832_v34, %v5907_v2  ;;  %v3535_v2 = vadd.f32 %v5832_v34, %v3534_v8 }
 0x3df   : > { %v3424_v54 = vpop.f32.mrf.mxu2 }
 0x3e0   : > { %v3319_v19 = vmax.f32 %v3287_v35, 0.0  ;;  %v3425_v39 = vadd.f32 %v5840_v28, %v3424_v54 }
 0x3e2   : > { %v3338_v60 = vpack.c.bf16 %v3319_v19, %v3318_v16  ;;  %v3591_v20 = vadd.f32 %v3522_v59, %v3425_v39  ;;  %v3541_v26 = vpop.f32.mrf.mxu3  ;;  %v2527_v59 = vadd.f32 %v5827_v9, %v5723_v63  ;;  %v3002_v19 = vadd.f32 %v2967_v10, %v5729_v50  ;;  %v2969_v39 = vpop.f32.mrf.mxu0 }
 0x3e3   : > { %v3211_v23 = vpop.f32.mrf.mxu1 }
 0x3e4   : > { %v3623_v30 = vmax.f32 %v3591_v20, 0.0  ;;  %3989 = vmatmul.msk.bf16.gmra.mxu2 %vm505_vm1, %v3338_v60  ;;  %v3252_v45 = vadd.f32 %v3211_v23, %v2998_v40  ;;  %v2781_v23 = vadd.f32 %v5777_v32, %v2527_v59  ;;  %v3537_v32 = vadd.f32 %v5832_v34, %v5923_v31 }
 0x3e6   : > { %3656 = vst.msk [vmem:[%s5854_s27 + $0x38] sm:$0xff] %vm3648_vm2, %v3623_v30  ;;  %v3288_v43 = vadd.f32 %v5739_v47, %v3252_v45 }
 0x3e7   : > { %v3427_v51 = vpop.f32.mrf.mxu2 }
 0x3e8   : > { %v3428_v18 = vadd.f32 %v5840_v28, %v3427_v51  ;;  %v3320_v48 = vmax.f32 %v3288_v43, 0.0 }
 0x3ea   : > { %v3592_v38 = vadd.f32 %v3525_v58, %v3428_v18  ;;  %v3544_v20 = vpop.f32.mrf.mxu3  ;;  %v3003_v58 = vadd.f32 %v2969_v39, %v2781_v23 }
 0x3eb   : > { %v3213_v3 = vpop.f32.mrf.mxu1 }
 0x3ec   : > { %v3624_v1 = vmax.f32 %v3592_v38, 0.0  ;;  %v3253_v15 = vadd.f32 %v3213_v3, %v2999_v37 }
 0x3ee   : > { %3657 = vst.msk [vmem:[%s5854_s27 + $0x40] sm:$0xff] %vm3648_vm2, %v3624_v1  ;;  %v3289_v61 = vadd.f32 %v5739_v47, %v3253_v15 }
 0x3ef   : > { %v3429_v4 = vpop.f32.mrf.mxu2 }
 0x3f0   : > { %v3321_v11 = vmax.f32 %v3289_v61, 0.0  ;;  %v3430_v17 = vadd.f32 %v5840_v28, %v3429_v4 }
 0x3f2   : > { %v3339_v22 = vpack.c.bf16 %v3321_v11, %v3320_v48  ;;  %v3593_v29 = vadd.f32 %v3527_v6, %v3430_v17  ;;  %v3546_v3 = vpop.f32.mrf.mxu3  ;;  %v3542_v17 = vadd.f32 %v5832_v34, %v3541_v26 }
 0x3f3   : > { %v3216_v14 = vpop.f32.mrf.mxu1 }
 0x3f4   : > { %v3625_v36 = vmax.f32 %v3593_v29, 0.0  ;;  %3990 = vmatmul.msk.bf16.gmra.mxu2 %vm505_vm1, %v3339_v22  ;;  %v3254_v44 = vadd.f32 %v3216_v14, %v3000_v33 }
 0x3f6   : > { %3658 = vst.msk [vmem:[%s5854_s27 + $0x48] sm:$0xff] %vm3648_vm2, %v3625_v36  ;;  %v3290_v7 = vadd.f32 %v5739_v47, %v3254_v44 }
 0x3f7   : > { %v3432_v27 = vpop.f32.mrf.mxu2 }
 0x3f8   : > { %v3433_v13 = vadd.f32 %v5840_v28, %v3432_v27  ;;  %v3322_v52 = vmax.f32 %v3290_v7, 0.0 }
 0x3fa   : > { %v3594_v42 = vadd.f32 %v3530_v0, %v3433_v13  ;;  %v3549_v31 = vpop.f32.mrf.mxu3 }
 0x3fb   : > { %v3218_v25 = vpop.f32.mrf.mxu1  ;;  %v3550_v7 = vadd.f32 %v5832_v34, %v3549_v31 }
 0x3fc   : > { %v3626_v12 = vmax.f32 %v3594_v42, 0.0  ;;  %v3255_v46 = vadd.f32 %v3218_v25, %v3001_v24  ;;  %v3547_v24 = vadd.f32 %v5832_v34, %v3546_v3 }
 0x3fe   : > { %3659 = vst.msk [vmem:[%s5854_s27 + $0x50] sm:$0xff] %vm3648_vm2, %v3626_v12  ;;  %v3291_v21 = vadd.f32 %v5739_v47, %v3255_v46 }
 0x3ff   : > { %v3434_v49 = vpop.f32.mrf.mxu2 }
 0x400   : > { %v3323_v56 = vmax.f32 %v3291_v21, 0.0  ;;  %v3435_v62 = vadd.f32 %v5840_v28, %v3434_v49 }
 0x402   : > { %v3340_v53 = vpack.c.bf16 %v3323_v56, %v3322_v52  ;;  %v3595_v35 = vadd.f32 %v3532_v41, %v3435_v62  ;;  %v3551_v14 = vpop.f32.mrf.mxu3 }
 0x403   : > { %v3221_v54 = vpop.f32.mrf.mxu1  ;;  %v3552_v41 = vadd.f32 %v5832_v34, %v3551_v14 }
 0x404   : > { %v3627_v16 = vmax.f32 %v3595_v35, 0.0  ;;  %3991 = vmatmul.msk.bf16.gmra.mxu2 %vm505_vm1, %v3340_v53  ;;  %v3256_v30 = vadd.f32 %v3221_v54, %v3002_v19 }
 0x406   : > { %3660 = vst.msk [vmem:[%s5854_s27 + $0x58] sm:$0xff] %vm3648_vm2, %v3627_v16  ;;  %v3292_v63 = vadd.f32 %v5739_v47, %v3256_v30 }
 0x407   : > { %v3437_v60 = vpop.f32.mrf.mxu2 }
 0x408   : > { %v3438_v40 = vadd.f32 %v5840_v28, %v3437_v60  ;;  %v3324_v18 = vmax.f32 %v3292_v63, 0.0 }
 0x40a   : > { %v3596_v51 = vadd.f32 %v3535_v2, %v3438_v40  ;;  %v3554_v13 = vpop.f32.mrf.mxu3 }
 0x40b   : > { %v3223_v57 = vpop.f32.mrf.mxu1  ;;  %v3555_v54 = vadd.f32 %v5832_v34, %v3554_v13 }
 0x40c   : > { %v3628_v9 = vmax.f32 %v3596_v51, 0.0  ;;  %v3257_v50 = vadd.f32 %v3223_v57, %v3003_v58 }
 0x40e   : > { %3661 = vst.msk [vmem:[%s5854_s27 + $0x60] sm:$0xff] %vm3648_vm2, %v3628_v9  ;;  %v3293_v45 = vadd.f32 %v5739_v47, %v3257_v50  ;;  %v3540_v47 = vadd.f32 %v5832_v34, %v3539_v5  ;;  %v3545_v5 = vadd.f32 %v5832_v34, %v3544_v20 }
 0x40f   : > { %v3439_v8 = vpop.f32.mrf.mxu2 }
 0x410   : > { %v3325_v37 = vmax.f32 %v3293_v45, 0.0  ;;  %v3440_v38 = vadd.f32 %v5840_v28, %v3439_v8 }
 0x412   : > { %v3341_v43 = vpack.c.bf16 %v3325_v37, %v3324_v18  ;;  %v3597_v1 = vadd.f32 %v3537_v32, %v3440_v38  ;;  %v3556_v26 = vpop.f32.mrf.mxu3 }
 0x413   : > { %v3557_v20 = vadd.f32 %v5832_v34, %v3556_v26 }
 0x414   : > { %v3629_v15 = vmax.f32 %v3597_v1, 0.0  ;;  %3992 = vmatmul.msk.bf16.gmra.mxu2 %vm505_vm1, %v3341_v43 }
 0x416   : > { %3662 = vst.msk [vmem:[%s5854_s27 + $0x68] sm:$0xff] %vm3648_vm2, %v3629_v15 }
 0x417   : > { %v3442_v61 = vpop.f32.mrf.mxu2 }
 0x418   : > { %v3443_v4 = vadd.f32 %v5840_v28, %v3442_v61 }
 0x41a   : > { %v3598_v48 = vadd.f32 %v3540_v47, %v3443_v4  ;;  %v3559_v53 = vpop.f32.mrf.mxu3 }
 0x41b   : > { %v3560_v58 = vadd.f32 %v5832_v34, %v3559_v53 }
 0x41c   : > { %v3630_v6 = vmax.f32 %v3598_v48, 0.0 }
 0x41e   : > { %3663 = vst.msk [vmem:[%s5854_s27 + $0x70] sm:$0xff] %vm3648_vm2, %v3630_v6 }
 0x41f   : > { %v3444_v11 = vpop.f32.mrf.mxu2 }
 0x420   : > { %v3445_v55 = vadd.f32 %v5840_v28, %v3444_v11 }
 0x422   : > { %v3599_v22 = vadd.f32 %v3542_v17, %v3445_v55  ;;  %v3561_v2 = vpop.f32.mrf.mxu3 }
 0x423   : > { %v3562_v8 = vadd.f32 %v5832_v34, %v3561_v2 }
 0x424   : > { %v3631_v29 = vmax.f32 %v3599_v22, 0.0 }
 0x426   : > { %3664 = vst.msk [vmem:[%s5854_s27 + $0x78] sm:$0xff] %vm3648_vm2, %v3631_v29 }
 0x427   : > { %v3447_v36 = vpop.f32.mrf.mxu2 }
 0x428   : > { %v3448_v33 = vadd.f32 %v5840_v28, %v3447_v36 }
 0x42a   : > { %v3600_v0 = vadd.f32 %v3545_v5, %v3448_v33  ;;  %v3564_v57 = vpop.f32.mrf.mxu3 }
 0x42b   : > { %v3565_v3 = vadd.f32 %v5832_v34, %v3564_v57 }
 0x42c   : > { %v3632_v27 = vmax.f32 %v3600_v0, 0.0 }
 0x42e   : > { %3665 = vst.msk [vmem:[%s5854_s27 + $0x80] sm:$0xff] %vm3648_vm2, %v3632_v27 }
 0x42f   : > { %v3449_v44 = vpop.f32.mrf.mxu2 }
 0x430   : > { %v3450_v42 = vadd.f32 %v5840_v28, %v3449_v44 }
 0x432   : > { %v3601_v25 = vadd.f32 %v3547_v24, %v3450_v42  ;;  %v3566_v32 = vpop.f32.mrf.mxu3 }
 0x433   : > { %v3567_v48 = vadd.f32 %v5832_v34, %v3566_v32 }
 0x434   : > { %v3633_v10 = vmax.f32 %v3601_v25, 0.0 }
 0x436   : > { %3666 = vst.msk [vmem:[%s5854_s27 + $0x88] sm:$0xff] %vm3648_vm2, %v3633_v10 }
 0x437   : > { %v3452_v12 = vpop.f32.mrf.mxu2 }
 0x438   : > { %v3453_v46 = vadd.f32 %v5840_v28, %v3452_v12 }
 0x43a   : > { %v3602_v21 = vadd.f32 %v3550_v7, %v3453_v46  ;;  %v3569_v47 = vpop.f32.mrf.mxu3 }
 0x43b   : > { %v3570_v55 = vadd.f32 %v5832_v34, %v3569_v47 }
 0x43c   : > { %v3634_v49 = vmax.f32 %v3602_v21, 0.0 }
 0x43e   : > { %3667 = vst.msk [vmem:[%s5854_s27 + $0x90] sm:$0xff] %vm3648_vm2, %v3634_v49 }
 0x43f   : > { %v3454_v52 = vpop.f32.mrf.mxu2 }
 0x440   : > { %v3455_v56 = vadd.f32 %v5840_v28, %v3454_v52 }
 0x442   : > { %v3603_v62 = vadd.f32 %v3552_v41, %v3455_v56  ;;  %v3571_v17 = vpop.f32.mrf.mxu3 }
 0x443   : > { %v3572_v0 = vadd.f32 %v5832_v34, %v3571_v17 }
 0x444   : > { %v3635_v35 = vmax.f32 %v3603_v62, 0.0 }
 0x446   : > { %3668 = vst.msk [vmem:[%s5854_s27 + $0x98] sm:$0xff] %vm3648_vm2, %v3635_v35 }
 0x447   : > { %v3457_v16 = vpop.f32.mrf.mxu2 }
 0x448   : > { %v3458_v59 = vadd.f32 %v5840_v28, %v3457_v16 }
 0x44a   : > { %v3604_v19 = vadd.f32 %v3555_v54, %v3458_v59  ;;  %v3574_v33 = vpop.f32.mrf.mxu3 }
 0x44b   : > { %v3575_v24 = vadd.f32 %v5832_v34, %v3574_v33 }
 0x44c   : > { %v3636_v39 = vmax.f32 %v3604_v19, 0.0 }
 0x44e   : > { %3669 = vst.msk [vmem:[%s5854_s27 + $0xa0] sm:$0xff] %vm3648_vm2, %v3636_v39 }
 0x44f   : > { %v3459_v60 = vpop.f32.mrf.mxu2 }
 0x450   : > { %v3460_v23 = vadd.f32 %v5840_v28, %v3459_v60 }
 0x452   : > { %v3605_v30 = vadd.f32 %v3557_v20, %v3460_v23  ;;  %v3576_v10 = vpop.f32.mrf.mxu3 }
 0x453   : > { %v3577_v26 = vadd.f32 %v5832_v34, %v3576_v10 }
 0x454   : > { %v3637_v40 = vmax.f32 %v3605_v30, 0.0 }
 0x456   : > { %3670 = vst.msk [vmem:[%s5854_s27 + $0xa8] sm:$0xff] %vm3648_vm2, %v3637_v40 }
 0x457   : > { %v3462_v51 = vpop.f32.mrf.mxu2 }
 0x458   : > { %v3463_v63 = vadd.f32 %v5840_v28, %v3462_v51 }
 0x45a   : > { %v3606_v9 = vadd.f32 %v3560_v58, %v3463_v63  ;;  %v3579_v52 = vpop.f32.mrf.mxu3 }
 0x45b   : > { %v3580_v56 = vadd.f32 %v5832_v34, %v3579_v52 }
 0x45c   : > { %v3638_v50 = vmax.f32 %v3606_v9, 0.0 }
 0x45e   : > { %3671 = vst.msk [vmem:[%s5854_s27 + $0xb0] sm:$0xff] %vm3648_vm2, %v3638_v50 }
 0x45f   : > { %v3464_v45 = vpop.f32.mrf.mxu2 }
 0x460   : > { %v3465_v18 = vadd.f32 %v5840_v28, %v3464_v45 }
 0x462   : > { %v3607_v37 = vadd.f32 %v3562_v8, %v3465_v18  ;;  %v3581_v16 = vpop.f32.mrf.mxu3 }
 0x463   : > { %v3582_v19 = vadd.f32 %v5832_v34, %v3581_v16 }
 0x464   : > { %v3639_v38 = vmax.f32 %v3607_v37, 0.0 }
 0x466   : > { %3672 = vst.msk [vmem:[%s5854_s27 + $0xb8] sm:$0xff] %vm3648_vm2, %v3639_v38 }
 0x467   : > { %v3467_v43 = vpop.f32.mrf.mxu2 }
 0x468   : > { %v3468_v1 = vadd.f32 %v5840_v28, %v3467_v43 }
 0x46a   : > { %v3608_v15 = vadd.f32 %v3565_v3, %v3468_v1 }
 0x46c   : > { %v3640_v61 = vmax.f32 %v3608_v15, 0.0 }
 0x46e   : > { %3673 = vst.msk [vmem:[%s5854_s27 + $0xc0] sm:$0xff] %vm3648_vm2, %v3640_v61 }
 0x46f   : > { %v3469_v4 = vpop.f32.mrf.mxu2 }
 0x470   : > { %v3470_v31 = vadd.f32 %v5840_v28, %v3469_v4 }
 0x472   : > { %v3609_v6 = vadd.f32 %v3567_v48, %v3470_v31 }
 0x474   : > { %v3641_v11 = vmax.f32 %v3609_v6, 0.0 }
 0x476   : > { %3674 = vst.msk [vmem:[%s5854_s27 + $0xc8] sm:$0xff] %vm3648_vm2, %v3641_v11 }
 0x477   : > { %v3472_v22 = vpop.f32.mrf.mxu2 }
 0x478   : > { %v3473_v29 = vadd.f32 %v5840_v28, %v3472_v22 }
 0x47a   : > { %v3610_v14 = vadd.f32 %v3570_v55, %v3473_v29 }
 0x47c   : > { %v3642_v5 = vmax.f32 %v3610_v14, 0.0 }
 0x47e   : > { %3675 = vst.msk [vmem:[%s5854_s27 + $0xd0] sm:$0xff] %vm3648_vm2, %v3642_v5 }
 0x47f   : > { %v3474_v36 = vpop.f32.mrf.mxu2 }
 0x480   : > { %v3475_v27 = vadd.f32 %v5840_v28, %v3474_v36 }
 0x482   : > { %v3611_v44 = vadd.f32 %v3572_v0, %v3475_v27 }
 0x484   : > { %v3643_v13 = vmax.f32 %v3611_v44, 0.0 }
 0x486   : > { %3676 = vst.msk [vmem:[%s5854_s27 + $0xd8] sm:$0xff] %vm3648_vm2, %v3643_v13 }
 0x487   : > { %v3477_v42 = vpop.f32.mrf.mxu2 }
 0x488   : > { %v3478_v25 = vadd.f32 %v5840_v28, %v3477_v42 }
 0x48a   : > { %v3612_v7 = vadd.f32 %v3575_v24, %v3478_v25 }
 0x48c   : > { %v3644_v12 = vmax.f32 %v3612_v7, 0.0 }
 0x48e   : > { %3677 = vst.msk [vmem:[%s5854_s27 + $0xe0] sm:$0xff] %vm3648_vm2, %v3644_v12 }
 0x48f   : > { %v3479_v46 = vpop.f32.mrf.mxu2 }
 0x490   : > { %v3480_v21 = vadd.f32 %v5840_v28, %v3479_v46 }
 0x492   : > { %v3613_v49 = vadd.f32 %v3577_v26, %v3480_v21 }
 0x494   : > { %v3645_v41 = vmax.f32 %v3613_v49, 0.0 }
 0x496   : > { %3678 = vst.msk [vmem:[%s5854_s27 + $0xe8] sm:$0xff] %vm3648_vm2, %v3645_v41 }
 0x497   : > { %v3482_v62 = vpop.f32.mrf.mxu2 }
 0x498   : > { %v3483_v53 = vadd.f32 %v5840_v28, %v3482_v62 }
 0x49a   : > { %v3614_v35 = vadd.f32 %v3580_v56, %v3483_v53 }
 0x49c   : > { %v3646_v54 = vmax.f32 %v3614_v35, 0.0 }
 0x49e   : > { %3679 = vst.msk [vmem:[%s5854_s27 + $0xf0] sm:$0xff] %vm3648_vm2, %v3646_v54 }
 0x49f   : > { %v3484_v59 = vpop.f32.mrf.mxu2 }
 0x4a0   : > { %v3485_v39 = vadd.f32 %v5840_v28, %v3484_v59 }
 0x4a2   : > { %v3615_v2 = vadd.f32 %v3582_v19, %v3485_v39 }
 0x4a4   : > { %v3647_v60 = vmax.f32 %v3615_v2, 0.0 }
 0x4a6   : > { %3680 = vst.msk [vmem:[%s5854_s27 + $0xf8] sm:$0xff] %vm3648_vm2, %v3647_v60 }
 0x4a7 PF: > { %s21_s17 = sadd.s32 1, %s4082_s17  }
 0x4a8   : > { %p18_p4 = scmp.ge.s32.totalorder %s21_s17, 4  }
 0x4aa   :  { %20 = sbr.rel (!%p18_p4) target bundleno = 1 (0x1), region = 102 }

</bundles_post_ra>
